<compile_context>
chip_gen: v6e
topology: v6e:2x2x1
jax: 0.10.0
libtpu: 0.0.40
codegen_flags: <defaults>
</compile_context>

<pallas_src>
import numpy as np

import jax
import jax.numpy as jnp
from jax.experimental import pallas as pl
from jax.experimental.pallas import tpu as pltpu


# ----------------------------------------------------------------------------
# Fused kernel: full CDAE forward for ONE image per grid step.
# Layout: every activation is (channels, spatial) -- channels on sublanes,
# flattened row-major spatial positions on lanes.  Each layer is:
#     g        = act_T @ S_T                (exact 0/1 im2col gather, 1 matmul)
#     patches  = stack the 9 tap blocks of g along rows   -> (9*Cin, P_out)
#     out      = relu(W_T @ patches + b)                   -> (Cout, P_out)
# ----------------------------------------------------------------------------
def _cdae_kernel(x_ref,
                 s1_ref, w1_ref, b1_ref,
                 s2_ref, w2_ref, b2_ref,
                 s3_ref, w3_ref, b3_ref,
                 s4_ref, w4_ref, b4_ref,
                 s5_ref, w5_ref, b5_ref,
                 s6_ref, w6_ref, b6_ref,
                 o_ref):

    def gather_taps(s_ref, act_t):
        # act_t: (Cin, P_in); s_ref: (P_in, 9*P_out) stacked 0/1 selection.
        # Returns the 9 per-tap blocks, each (Cin, P_out).
        p_out = s_ref.shape[1] // 9
        g = jnp.dot(act_t, s_ref[...], preferred_element_type=jnp.float32)
        return [g[:, t * p_out:(t + 1) * p_out] for t in range(9)]

    def layer(s_ref, w_ref, b_ref, *acts_t):
        # im2col patches, transposed; rows ordered (source, tap, in_channel)
        # to match the packed weight columns.  Row counts of every piece are
        # multiples of 8, so the axis-0 concat stays sublane-aligned.
        pieces = []
        for a in acts_t:
            pieces += gather_taps(s_ref, a)
        patches_t = jnp.concatenate(pieces, axis=0)          # (9*sum Cin, P_out)
        out = jnp.dot(w_ref[...], patches_t,
                      preferred_element_type=jnp.float32)    # (Cout, P_out)
        return jnp.maximum(out + b_ref[...], 0.0)

    x = x_ref[0]                                             # (1, H*W)

    # enc1 has a single input channel, so its weight contraction is only K=9:
    # do it as 9 VPU outer-product accumulations (keeps the MXU for the deep
    # layers and avoids concatenating 1-row pieces).
    g1 = gather_taps(s1_ref, x)                              # 9 x (1, HW/4)
    w1 = w1_ref[...]                                         # (4c, 9)
    e1 = b1_ref[...]                                         # (4c, 1)
    for t in range(9):
        e1 = e1 + w1[:, t:t + 1] * g1[t]
    e1 = jnp.maximum(e1, 0.0)                                # (4c, HW/4)

    e2 = layer(s2_ref, w2_ref, b2_ref, e1)                   # (2c, HW/16)
    e3 = layer(s3_ref, w3_ref, b3_ref, e2)                   # (c,  HW/64)
    d1 = layer(s4_ref, w4_ref, b4_ref, e3)                   # (2c, HW/16)
    d2 = layer(s5_ref, w5_ref, b5_ref, d1, e2)               # (4c, HW/4)  cat(d1,e2)
    d3 = layer(s6_ref, w6_ref, b6_ref, d2, e1)               # (1,  HW)    cat(d2,e1)
    o_ref[0] = d3                                            # lane-dense store


# ----------------------------------------------------------------------------
# One-time packing: transposed per-image selection matrices + dense weights.
# ----------------------------------------------------------------------------
def _sel_conv_s2p1k3(h, w):
    """Conv2d(k=3, s=2, p=1) im2col selection, transposed & tap-stacked:
    (H*W, 9*OH*OW), columns ordered (tap, out_pos)."""
    oh, ow = h // 2, w // 2
    s = np.zeros((9 * oh * ow, h * w), np.float32)
    for di in range(3):
        for dj in range(3):
            t = di * 3 + dj
            for y in range(oh):
                for x in range(ow):
                    ih, iw = 2 * y + di - 1, 2 * x + dj - 1
                    if 0 <= ih < h and 0 <= iw < w:
                        s[t * oh * ow + y * ow + x, ih * w + iw] = 1.0
    return np.ascontiguousarray(s.T)


def _sel_convt_s2p1op1k3(h, w):
    """ConvTranspose2d(k=3, s=2, p=1, op=1) expressed as zero-dilation +
    asymmetric pad + stride-1 conv with the flipped kernel.  Returns the
    transposed stacked selection (H*W, 9*(2H)*(2W)), cols ordered (tap, pos)."""
    oh, ow = 2 * h, 2 * w
    s = np.zeros((9 * oh * ow, h * w), np.float32)
    for di in range(3):
        for dj in range(3):
            t = di * 3 + dj
            for y in range(oh):
                for x in range(ow):
                    rd, cd = y + di - 1, x + dj - 1       # pad_top = pad_left = 1
                    if (0 <= rd <= 2 * (h - 1) and rd % 2 == 0 and
                            0 <= cd <= 2 * (w - 1) and cd % 2 == 0):
                        s[t * oh * ow + y * ow + x, (rd // 2) * w + cd // 2] = 1.0
    return np.ascontiguousarray(s.T)


def _wt_conv(w):
    """PyTorch Conv2d weight (OC, IC, 3, 3) -> (OC, 9*IC), cols = (tap, in_ch)."""
    oc, ic = w.shape[0], w.shape[1]
    return jnp.transpose(w, (0, 2, 3, 1)).reshape(oc, 9 * ic)


def _wt_convt(w):
    """PyTorch ConvTranspose2d weight (IC, OC, 3, 3) -> (OC, 9*IC), spatially
    flipped to match the zero-dilation + pad forward-conv formulation."""
    ic, oc = w.shape[0], w.shape[1]
    return jnp.transpose(jnp.flip(w, (2, 3)), (1, 2, 3, 0)).reshape(oc, 9 * ic)


def pack_cdae_params(params, *, height, width):
    """One-time packing for a fixed (height, width) -- batch independent."""
    if height % 8 or width % 8:
        raise ValueError("H and W must be divisible by 8 (three stride-2 halvings).")
    h1, w1 = height, width          # enc1 in / dec3 out
    h2, w2 = h1 // 2, w1 // 2       # enc1 out / enc2 in / dec3 in
    h3, w3 = h2 // 2, w2 // 2       # enc2 out / enc3 in / dec2 in
    h4, w4 = h3 // 2, w3 // 2       # enc3 out / dec1 in

    we1, be1 = params["enc1"]
    we2, be2 = params["enc2"]
    we3, be3 = params["enc3"]
    wd1, bd1 = params["dec1"]
    wd2, bd2 = params["dec2"]
    wd3, bd3 = params["dec3"]
    sp2 = wd2.shape[0] // 2         # dec2 input = cat(dec1_out, enc2_out)
    sp3 = wd3.shape[0] // 2         # dec3 input = cat(dec2_out, enc1_out)

    def col(b):
        return b.reshape(-1, 1).astype(jnp.float32)

    return (
        jnp.asarray(_sel_conv_s2p1k3(h1, w1)), _wt_conv(we1), col(be1),
        jnp.asarray(_sel_conv_s2p1k3(h2, w2)), _wt_conv(we2), col(be2),
        jnp.asarray(_sel_conv_s2p1k3(h3, w3)), _wt_conv(we3), col(be3),
        jnp.asarray(_sel_convt_s2p1op1k3(h4, w4)), _wt_convt(wd1), col(bd1),
        jnp.asarray(_sel_convt_s2p1op1k3(h3, w3)),
        jnp.concatenate([_wt_convt(wd2[:sp2]), _wt_convt(wd2[sp2:])], axis=1),
        col(bd2),
        jnp.asarray(_sel_convt_s2p1op1k3(h2, w2)),
        jnp.concatenate([_wt_convt(wd3[:sp3]), _wt_convt(wd3[sp3:])], axis=1),
        col(bd3),
    )


# ----------------------------------------------------------------------------
# Forward: one pallas_call with a parallel grid over the batch.
# ----------------------------------------------------------------------------
@jax.jit
def cdae_forward_packed(packed, x):
    """x: (N, 1, H, W) float32 NCHW -> (N, 1, H, W) float32."""
    n, c, h, w = x.shape
    hw = h * w
    x3 = x.reshape(n, 1, hw)        # single input channel; spatial on lanes

    const_specs = [pl.BlockSpec(a.shape, lambda i: (0, 0)) for a in packed]
    out = pl.pallas_call(
        _cdae_kernel,
        out_shape=jax.ShapeDtypeStruct((n, 1, hw), jnp.float32),
        grid=(n,),
        in_specs=[pl.BlockSpec((1, 1, hw), lambda i: (i, 0, 0))] + const_specs,
        out_specs=pl.BlockSpec((1, 1, hw), lambda i: (i, 0, 0)),
        compiler_params=pltpu.CompilerParams(
            dimension_semantics=("parallel",)),
    )(x3, *packed)
    return out.reshape(n, 1, h, w)


# ----------------------------------------------------------------------------
# Parameter init (deterministic, PyTorch-default-like uniform bounds).
# ----------------------------------------------------------------------------
def _init_conv(key, oc, ic, k):
    kw, kb = jax.random.split(key)
    bound = 1.0 / ((ic * k * k) ** 0.5)
    w = jax.random.uniform(kw, (oc, ic, k, k), jnp.float32, -bound, bound)
    b = jax.random.uniform(kb, (oc,), jnp.float32, -bound, bound)
    return w, b


def _init_convt(key, ic, oc, k):
    kw, kb = jax.random.split(key)
    bound = 1.0 / ((oc * k * k) ** 0.5)   # PyTorch uses weight.size(1)*k*k
    w = jax.random.uniform(kw, (ic, oc, k, k), jnp.float32, -bound, bound)
    b = jax.random.uniform(kb, (oc,), jnp.float32, -bound, bound)
    return w, b


def init_cdae_params(key, bottle_neck_channels=16):
    c = bottle_neck_channels
    keys = jax.random.split(key, 6)
    return {
        "enc1": _init_conv(keys[0], c * 4, 1, 3),
        "enc2": _init_conv(keys[1], c * 2, c * 4, 3),
        "enc3": _init_conv(keys[2], c, c * 2, 3),
        "dec1": _init_convt(keys[3], c, c * 2, 3),
        "dec2": _init_convt(keys[4], 2 * (c * 2), c * 4, 3),
        "dec3": _init_convt(keys[5], 2 * (c * 4), 1, 3),
    }


# ----------------------------------------------------------------------------
# Pure-XLA reference (PyTorch semantics) for in-script validation.
# ----------------------------------------------------------------------------
@jax.jit
def _reference_forward(params, x):
    def conv(x, w, b):
        y = jax.lax.conv_general_dilated(
            x, w, window_strides=(2, 2), padding=((1, 1), (1, 1)),
            dimension_numbers=("NCHW", "OIHW", "NCHW"),
            precision=jax.lax.Precision.HIGHEST)
        return jax.nn.relu(y + b[None, :, None, None])

    def convt(x, w, b):
        w_eq = jnp.transpose(jnp.flip(w, (2, 3)), (1, 0, 2, 3))
        y = jax.lax.conv_general_dilated(
            x, w_eq, window_strides=(1, 1), padding=((1, 2), (1, 2)),
            lhs_dilation=(2, 2),
            dimension_numbers=("NCHW", "OIHW", "NCHW"),
            precision=jax.lax.Precision.HIGHEST)
        return jax.nn.relu(y + b[None, :, None, None])

    e1 = conv(x, *params["enc1"])
    e2 = conv(e1, *params["enc2"])
    e3 = conv(e2, *params["enc3"])
    d1 = convt(e3, *params["dec1"])
    d2 = convt(jnp.concatenate([d1, e2], axis=1), *params["dec2"])
    return convt(jnp.concatenate([d2, e1], axis=1), *params["dec3"])


if __name__ == "__main__":
    key = jax.random.PRNGKey(0)
    kparams, kx = jax.random.split(key)
    params = init_cdae_params(kparams, bottle_neck_channels=16)
    # NCHW input, single channel, like the PyTorch module expects.
    x = jax.random.normal(kx, (2, 1, 16, 16), dtype=jnp.float32)

    packed = pack_cdae_params(params, height=x.shape[2], width=x.shape[3])

    out = jax.block_until_ready(cdae_forward_packed(packed, x))
    assert out.shape == (2, 1, 16, 16), out.shape
    assert out.dtype == jnp.float32

    ref = jax.block_until_ready(_reference_forward(params, x))
    err = float(jnp.max(jnp.abs(out - ref)))
    # All-f32 path with an exact 0/1 gather: error should be ~1e-5; keep the
    # previously-validated 2e-3 bound as the hard assert.
    assert err < 2e-3, f"mismatch vs XLA conv reference: max abs err = {err}"

    print("KERNEL_OK")
</pallas_src>

<mosaic_0001>
module attributes {stable_mosaic.version = 11 : i64} {
  func.func @_cdae_kernel(%arg0: i32, %arg1: memref<1x1x256xf32, #tpu.memory_space<vmem>>, %arg2: memref<256x576xf32, #tpu.memory_space<vmem>>, %arg3: memref<64x9xf32, #tpu.memory_space<vmem>>, %arg4: memref<64x1xf32, #tpu.memory_space<vmem>>, %arg5: memref<64x144xf32, #tpu.memory_space<vmem>>, %arg6: memref<32x576xf32, #tpu.memory_space<vmem>>, %arg7: memref<32x1xf32, #tpu.memory_space<vmem>>, %arg8: memref<16x36xf32, #tpu.memory_space<vmem>>, %arg9: memref<16x288xf32, #tpu.memory_space<vmem>>, %arg10: memref<16x1xf32, #tpu.memory_space<vmem>>, %arg11: memref<4x144xf32, #tpu.memory_space<vmem>>, %arg12: memref<32x144xf32, #tpu.memory_space<vmem>>, %arg13: memref<32x1xf32, #tpu.memory_space<vmem>>, %arg14: memref<16x576xf32, #tpu.memory_space<vmem>>, %arg15: memref<64x576xf32, #tpu.memory_space<vmem>>, %arg16: memref<64x1xf32, #tpu.memory_space<vmem>>, %arg17: memref<64x2304xf32, #tpu.memory_space<vmem>>, %arg18: memref<1x1152xf32, #tpu.memory_space<vmem>>, %arg19: memref<1x1xf32, #tpu.memory_space<vmem>>, %arg20: memref<1x1x256xf32, #tpu.memory_space<vmem>>) attributes {dimension_semantics = [#tpu.dimension_semantics<parallel>], iteration_bounds = array<i64: 2>, scalar_prefetch = 0 : i64, scratch_operands = 0 : i64, tpu.core_type = #tpu.core_type<tc>, window_params = [{transform_indices = @transform_0, window_bounds = array<i64: 1, 1, 256>}, {pipeline_mode = #tpu.pipeline_mode<synchronous>, transform_indices = @transform_1, window_bounds = array<i64: 256, 576>}, {pipeline_mode = #tpu.pipeline_mode<synchronous>, transform_indices = @transform_2, window_bounds = array<i64: 64, 9>}, {pipeline_mode = #tpu.pipeline_mode<synchronous>, transform_indices = @transform_3, window_bounds = array<i64: 64, 1>}, {pipeline_mode = #tpu.pipeline_mode<synchronous>, transform_indices = @transform_4, window_bounds = array<i64: 64, 144>}, {pipeline_mode = #tpu.pipeline_mode<synchronous>, transform_indices = @transform_5, window_bounds = array<i64: 32, 576>}, {pipeline_mode = #tpu.pipeline_mode<synchronous>, transform_indices = @transform_6, window_bounds = array<i64: 32, 1>}, {pipeline_mode = #tpu.pipeline_mode<synchronous>, transform_indices = @transform_7, window_bounds = array<i64: 16, 36>}, {pipeline_mode = #tpu.pipeline_mode<synchronous>, transform_indices = @transform_8, window_bounds = array<i64: 16, 288>}, {pipeline_mode = #tpu.pipeline_mode<synchronous>, transform_indices = @transform_9, window_bounds = array<i64: 16, 1>}, {pipeline_mode = #tpu.pipeline_mode<synchronous>, transform_indices = @transform_10, window_bounds = array<i64: 4, 144>}, {pipeline_mode = #tpu.pipeline_mode<synchronous>, transform_indices = @transform_11, window_bounds = array<i64: 32, 144>}, {pipeline_mode = #tpu.pipeline_mode<synchronous>, transform_indices = @transform_12, window_bounds = array<i64: 32, 1>}, {pipeline_mode = #tpu.pipeline_mode<synchronous>, transform_indices = @transform_13, window_bounds = array<i64: 16, 576>}, {pipeline_mode = #tpu.pipeline_mode<synchronous>, transform_indices = @transform_14, window_bounds = array<i64: 64, 576>}, {pipeline_mode = #tpu.pipeline_mode<synchronous>, transform_indices = @transform_15, window_bounds = array<i64: 64, 1>}, {pipeline_mode = #tpu.pipeline_mode<synchronous>, transform_indices = @transform_16, window_bounds = array<i64: 64, 2304>}, {pipeline_mode = #tpu.pipeline_mode<synchronous>, transform_indices = @transform_17, window_bounds = array<i64: 1, 1152>}, {pipeline_mode = #tpu.pipeline_mode<synchronous>, transform_indices = @transform_18, window_bounds = array<i64: 1, 1>}, {transform_indices = @transform_19, window_bounds = array<i64: 1, 1, 256>}]} {
    %c0 = arith.constant 0 : index
    %c0_0 = arith.constant 0 : index
    %c0_1 = arith.constant 0 : index
    %0 = vector.load %arg1[%c0, %c0_0, %c0_1] : memref<1x1x256xf32, #tpu.memory_space<vmem>>, vector<1x1x256xf32>
    %1 = vector.shape_cast %0 : vector<1x1x256xf32> to vector<1x256xf32>
    %c0_2 = arith.constant 0 : index
    %c0_3 = arith.constant 0 : index
    %2 = vector.load %arg2[%c0_2, %c0_3] : memref<256x576xf32, #tpu.memory_space<vmem>>, vector<256x576xf32>
    %cst = arith.constant dense<0.000000e+00> : vector<1x576xf32>
    %3 = tpu.matmul %1, %2, %cst {dimension_numbers = #tpu.dot_dimension_numbers<[1], [0], [0], [1], [0, 0, 1, 1], [], []>} : vector<1x256xf32>, vector<256x576xf32>, vector<1x576xf32> -> vector<1x576xf32>
    %4 = vector.extract_strided_slice %3 {offsets = [0, 0], sizes = [1, 64], strides = [1, 1]} : vector<1x576xf32> to vector<1x64xf32>
    %5 = vector.extract_strided_slice %3 {offsets = [0, 64], sizes = [1, 64], strides = [1, 1]} : vector<1x576xf32> to vector<1x64xf32>
    %6 = vector.extract_strided_slice %3 {offsets = [0, 128], sizes = [1, 64], strides = [1, 1]} : vector<1x576xf32> to vector<1x64xf32>
    %7 = vector.extract_strided_slice %3 {offsets = [0, 192], sizes = [1, 64], strides = [1, 1]} : vector<1x576xf32> to vector<1x64xf32>
    %8 = vector.extract_strided_slice %3 {offsets = [0, 256], sizes = [1, 64], strides = [1, 1]} : vector<1x576xf32> to vector<1x64xf32>
    %9 = vector.extract_strided_slice %3 {offsets = [0, 320], sizes = [1, 64], strides = [1, 1]} : vector<1x576xf32> to vector<1x64xf32>
    %10 = vector.extract_strided_slice %3 {offsets = [0, 384], sizes = [1, 64], strides = [1, 1]} : vector<1x576xf32> to vector<1x64xf32>
    %11 = vector.extract_strided_slice %3 {offsets = [0, 448], sizes = [1, 64], strides = [1, 1]} : vector<1x576xf32> to vector<1x64xf32>
    %12 = vector.extract_strided_slice %3 {offsets = [0, 512], sizes = [1, 64], strides = [1, 1]} : vector<1x576xf32> to vector<1x64xf32>
    %c0_4 = arith.constant 0 : index
    %c0_5 = arith.constant 0 : index
    %13 = vector.load %arg3[%c0_4, %c0_5] : memref<64x9xf32, #tpu.memory_space<vmem>>, vector<64x9xf32>
    %c0_6 = arith.constant 0 : index
    %c0_7 = arith.constant 0 : index
    %14 = vector.load %arg4[%c0_6, %c0_7] : memref<64x1xf32, #tpu.memory_space<vmem>>, vector<64x1xf32>
    %15 = vector.extract_strided_slice %13 {offsets = [0, 0], sizes = [64, 1], strides = [1, 1]} : vector<64x9xf32> to vector<64x1xf32>
    %16 = vector.broadcast %15 : vector<64x1xf32> to vector<64x64xf32>
    %17 = vector.broadcast %4 : vector<1x64xf32> to vector<64x64xf32>
    %18 = arith.mulf %16, %17 : vector<64x64xf32>
    %19 = vector.broadcast %14 : vector<64x1xf32> to vector<64x64xf32>
    %20 = arith.addf %19, %18 : vector<64x64xf32>
    %21 = vector.extract_strided_slice %13 {offsets = [0, 1], sizes = [64, 1], strides = [1, 1]} : vector<64x9xf32> to vector<64x1xf32>
    %22 = vector.broadcast %21 : vector<64x1xf32> to vector<64x64xf32>
    %23 = vector.broadcast %5 : vector<1x64xf32> to vector<64x64xf32>
    %24 = arith.mulf %22, %23 : vector<64x64xf32>
    %25 = arith.addf %20, %24 : vector<64x64xf32>
    %26 = vector.extract_strided_slice %13 {offsets = [0, 2], sizes = [64, 1], strides = [1, 1]} : vector<64x9xf32> to vector<64x1xf32>
    %27 = vector.broadcast %26 : vector<64x1xf32> to vector<64x64xf32>
    %28 = vector.broadcast %6 : vector<1x64xf32> to vector<64x64xf32>
    %29 = arith.mulf %27, %28 : vector<64x64xf32>
    %30 = arith.addf %25, %29 : vector<64x64xf32>
    %31 = vector.extract_strided_slice %13 {offsets = [0, 3], sizes = [64, 1], strides = [1, 1]} : vector<64x9xf32> to vector<64x1xf32>
    %32 = vector.broadcast %31 : vector<64x1xf32> to vector<64x64xf32>
    %33 = vector.broadcast %7 : vector<1x64xf32> to vector<64x64xf32>
    %34 = arith.mulf %32, %33 : vector<64x64xf32>
    %35 = arith.addf %30, %34 : vector<64x64xf32>
    %36 = vector.extract_strided_slice %13 {offsets = [0, 4], sizes = [64, 1], strides = [1, 1]} : vector<64x9xf32> to vector<64x1xf32>
    %37 = vector.broadcast %36 : vector<64x1xf32> to vector<64x64xf32>
    %38 = vector.broadcast %8 : vector<1x64xf32> to vector<64x64xf32>
    %39 = arith.mulf %37, %38 : vector<64x64xf32>
    %40 = arith.addf %35, %39 : vector<64x64xf32>
    %41 = vector.extract_strided_slice %13 {offsets = [0, 5], sizes = [64, 1], strides = [1, 1]} : vector<64x9xf32> to vector<64x1xf32>
    %42 = vector.broadcast %41 : vector<64x1xf32> to vector<64x64xf32>
    %43 = vector.broadcast %9 : vector<1x64xf32> to vector<64x64xf32>
    %44 = arith.mulf %42, %43 : vector<64x64xf32>
    %45 = arith.addf %40, %44 : vector<64x64xf32>
    %46 = vector.extract_strided_slice %13 {offsets = [0, 6], sizes = [64, 1], strides = [1, 1]} : vector<64x9xf32> to vector<64x1xf32>
    %47 = vector.broadcast %46 : vector<64x1xf32> to vector<64x64xf32>
    %48 = vector.broadcast %10 : vector<1x64xf32> to vector<64x64xf32>
    %49 = arith.mulf %47, %48 : vector<64x64xf32>
    %50 = arith.addf %45, %49 : vector<64x64xf32>
    %51 = vector.extract_strided_slice %13 {offsets = [0, 7], sizes = [64, 1], strides = [1, 1]} : vector<64x9xf32> to vector<64x1xf32>
    %52 = vector.broadcast %51 : vector<64x1xf32> to vector<64x64xf32>
    %53 = vector.broadcast %11 : vector<1x64xf32> to vector<64x64xf32>
    %54 = arith.mulf %52, %53 : vector<64x64xf32>
    %55 = arith.addf %50, %54 : vector<64x64xf32>
    %56 = vector.extract_strided_slice %13 {offsets = [0, 8], sizes = [64, 1], strides = [1, 1]} : vector<64x9xf32> to vector<64x1xf32>
    %57 = vector.broadcast %56 : vector<64x1xf32> to vector<64x64xf32>
    %58 = vector.broadcast %12 : vector<1x64xf32> to vector<64x64xf32>
    %59 = arith.mulf %57, %58 : vector<64x64xf32>
    %60 = arith.addf %55, %59 : vector<64x64xf32>
    %cst_8 = arith.constant 0.000000e+00 : f32
    %61 = vector.broadcast %cst_8 : f32 to vector<64x64xf32>
    %62 = arith.maximumf %60, %61 : vector<64x64xf32>
    %c0_9 = arith.constant 0 : index
    %c0_10 = arith.constant 0 : index
    %63 = vector.load %arg5[%c0_9, %c0_10] : memref<64x144xf32, #tpu.memory_space<vmem>>, vector<64x144xf32>
    %cst_11 = arith.constant dense<0.000000e+00> : vector<64x144xf32>
    %64 = tpu.matmul %62, %63, %cst_11 {dimension_numbers = #tpu.dot_dimension_numbers<[1], [0], [0], [1], [0, 0, 1, 1], [], []>} : vector<64x64xf32>, vector<64x144xf32>, vector<64x144xf32> -> vector<64x144xf32>
    %65 = vector.extract_strided_slice %64 {offsets = [0, 0], sizes = [64, 16], strides = [1, 1]} : vector<64x144xf32> to vector<64x16xf32>
    %66 = vector.extract_strided_slice %64 {offsets = [0, 16], sizes = [64, 16], strides = [1, 1]} : vector<64x144xf32> to vector<64x16xf32>
    %67 = vector.extract_strided_slice %64 {offsets = [0, 32], sizes = [64, 16], strides = [1, 1]} : vector<64x144xf32> to vector<64x16xf32>
    %68 = vector.extract_strided_slice %64 {offsets = [0, 48], sizes = [64, 16], strides = [1, 1]} : vector<64x144xf32> to vector<64x16xf32>
    %69 = vector.extract_strided_slice %64 {offsets = [0, 64], sizes = [64, 16], strides = [1, 1]} : vector<64x144xf32> to vector<64x16xf32>
    %70 = vector.extract_strided_slice %64 {offsets = [0, 80], sizes = [64, 16], strides = [1, 1]} : vector<64x144xf32> to vector<64x16xf32>
    %71 = vector.extract_strided_slice %64 {offsets = [0, 96], sizes = [64, 16], strides = [1, 1]} : vector<64x144xf32> to vector<64x16xf32>
    %72 = vector.extract_strided_slice %64 {offsets = [0, 112], sizes = [64, 16], strides = [1, 1]} : vector<64x144xf32> to vector<64x16xf32>
    %73 = vector.extract_strided_slice %64 {offsets = [0, 128], sizes = [64, 16], strides = [1, 1]} : vector<64x144xf32> to vector<64x16xf32>
    %74 = tpu.concatenate %65, %66, %67, %68, %69, %70, %71, %72, %73 in 0 : vector<64x16xf32>, vector<64x16xf32>, vector<64x16xf32>, vector<64x16xf32>, vector<64x16xf32>, vector<64x16xf32>, vector<64x16xf32>, vector<64x16xf32>, vector<64x16xf32> -> vector<576x16xf32>
    %c0_12 = arith.constant 0 : index
    %c0_13 = arith.constant 0 : index
    %75 = vector.load %arg6[%c0_12, %c0_13] : memref<32x576xf32, #tpu.memory_space<vmem>>, vector<32x576xf32>
    %cst_14 = arith.constant dense<0.000000e+00> : vector<32x16xf32>
    %76 = tpu.matmul %75, %74, %cst_14 {dimension_numbers = #tpu.dot_dimension_numbers<[1], [0], [0], [1], [0, 0, 1, 1], [], []>} : vector<32x576xf32>, vector<576x16xf32>, vector<32x16xf32> -> vector<32x16xf32>
    %c0_15 = arith.constant 0 : index
    %c0_16 = arith.constant 0 : index
    %77 = vector.load %arg7[%c0_15, %c0_16] : memref<32x1xf32, #tpu.memory_space<vmem>>, vector<32x1xf32>
    %78 = vector.broadcast %77 : vector<32x1xf32> to vector<32x16xf32>
    %79 = arith.addf %76, %78 : vector<32x16xf32>
    %cst_17 = arith.constant 0.000000e+00 : f32
    %80 = vector.broadcast %cst_17 : f32 to vector<32x16xf32>
    %81 = arith.maximumf %79, %80 : vector<32x16xf32>
    %c0_18 = arith.constant 0 : index
    %c0_19 = arith.constant 0 : index
    %82 = vector.load %arg8[%c0_18, %c0_19] : memref<16x36xf32, #tpu.memory_space<vmem>>, vector<16x36xf32>
    %cst_20 = arith.constant dense<0.000000e+00> : vector<32x36xf32>
    %83 = tpu.matmul %81, %82, %cst_20 {dimension_numbers = #tpu.dot_dimension_numbers<[1], [0], [0], [1], [0, 0, 1, 1], [], []>} : vector<32x16xf32>, vector<16x36xf32>, vector<32x36xf32> -> vector<32x36xf32>
    %84 = vector.extract_strided_slice %83 {offsets = [0, 0], sizes = [32, 4], strides = [1, 1]} : vector<32x36xf32> to vector<32x4xf32>
    %85 = vector.extract_strided_slice %83 {offsets = [0, 4], sizes = [32, 4], strides = [1, 1]} : vector<32x36xf32> to vector<32x4xf32>
    %86 = vector.extract_strided_slice %83 {offsets = [0, 8], sizes = [32, 4], strides = [1, 1]} : vector<32x36xf32> to vector<32x4xf32>
    %87 = vector.extract_strided_slice %83 {offsets = [0, 12], sizes = [32, 4], strides = [1, 1]} : vector<32x36xf32> to vector<32x4xf32>
    %88 = vector.extract_strided_slice %83 {offsets = [0, 16], sizes = [32, 4], strides = [1, 1]} : vector<32x36xf32> to vector<32x4xf32>
    %89 = vector.extract_strided_slice %83 {offsets = [0, 20], sizes = [32, 4], strides = [1, 1]} : vector<32x36xf32> to vector<32x4xf32>
    %90 = vector.extract_strided_slice %83 {offsets = [0, 24], sizes = [32, 4], strides = [1, 1]} : vector<32x36xf32> to vector<32x4xf32>
    %91 = vector.extract_strided_slice %83 {offsets = [0, 28], sizes = [32, 4], strides = [1, 1]} : vector<32x36xf32> to vector<32x4xf32>
    %92 = vector.extract_strided_slice %83 {offsets = [0, 32], sizes = [32, 4], strides = [1, 1]} : vector<32x36xf32> to vector<32x4xf32>
    %93 = tpu.concatenate %84, %85, %86, %87, %88, %89, %90, %91, %92 in 0 : vector<32x4xf32>, vector<32x4xf32>, vector<32x4xf32>, vector<32x4xf32>, vector<32x4xf32>, vector<32x4xf32>, vector<32x4xf32>, vector<32x4xf32>, vector<32x4xf32> -> vector<288x4xf32>
    %c0_21 = arith.constant 0 : index
    %c0_22 = arith.constant 0 : index
    %94 = vector.load %arg9[%c0_21, %c0_22] : memref<16x288xf32, #tpu.memory_space<vmem>>, vector<16x288xf32>
    %cst_23 = arith.constant dense<0.000000e+00> : vector<16x4xf32>
    %95 = tpu.matmul %94, %93, %cst_23 {dimension_numbers = #tpu.dot_dimension_numbers<[1], [0], [0], [1], [0, 0, 1, 1], [], []>} : vector<16x288xf32>, vector<288x4xf32>, vector<16x4xf32> -> vector<16x4xf32>
    %c0_24 = arith.constant 0 : index
    %c0_25 = arith.constant 0 : index
    %96 = vector.load %arg10[%c0_24, %c0_25] : memref<16x1xf32, #tpu.memory_space<vmem>>, vector<16x1xf32>
    %97 = vector.broadcast %96 : vector<16x1xf32> to vector<16x4xf32>
    %98 = arith.addf %95, %97 : vector<16x4xf32>
    %cst_26 = arith.constant 0.000000e+00 : f32
    %99 = vector.broadcast %cst_26 : f32 to vector<16x4xf32>
    %100 = arith.maximumf %98, %99 : vector<16x4xf32>
    %c0_27 = arith.constant 0 : index
    %c0_28 = arith.constant 0 : index
    %101 = vector.load %arg11[%c0_27, %c0_28] : memref<4x144xf32, #tpu.memory_space<vmem>>, vector<4x144xf32>
    %cst_29 = arith.constant dense<0.000000e+00> : vector<16x144xf32>
    %102 = tpu.matmul %100, %101, %cst_29 {dimension_numbers = #tpu.dot_dimension_numbers<[1], [0], [0], [1], [0, 0, 1, 1], [], []>} : vector<16x4xf32>, vector<4x144xf32>, vector<16x144xf32> -> vector<16x144xf32>
    %103 = vector.extract_strided_slice %102 {offsets = [0, 0], sizes = [16, 16], strides = [1, 1]} : vector<16x144xf32> to vector<16x16xf32>
    %104 = vector.extract_strided_slice %102 {offsets = [0, 16], sizes = [16, 16], strides = [1, 1]} : vector<16x144xf32> to vector<16x16xf32>
    %105 = vector.extract_strided_slice %102 {offsets = [0, 32], sizes = [16, 16], strides = [1, 1]} : vector<16x144xf32> to vector<16x16xf32>
    %106 = vector.extract_strided_slice %102 {offsets = [0, 48], sizes = [16, 16], strides = [1, 1]} : vector<16x144xf32> to vector<16x16xf32>
    %107 = vector.extract_strided_slice %102 {offsets = [0, 64], sizes = [16, 16], strides = [1, 1]} : vector<16x144xf32> to vector<16x16xf32>
    %108 = vector.extract_strided_slice %102 {offsets = [0, 80], sizes = [16, 16], strides = [1, 1]} : vector<16x144xf32> to vector<16x16xf32>
    %109 = vector.extract_strided_slice %102 {offsets = [0, 96], sizes = [16, 16], strides = [1, 1]} : vector<16x144xf32> to vector<16x16xf32>
    %110 = vector.extract_strided_slice %102 {offsets = [0, 112], sizes = [16, 16], strides = [1, 1]} : vector<16x144xf32> to vector<16x16xf32>
    %111 = vector.extract_strided_slice %102 {offsets = [0, 128], sizes = [16, 16], strides = [1, 1]} : vector<16x144xf32> to vector<16x16xf32>
    %112 = tpu.concatenate %103, %104, %105, %106, %107, %108, %109, %110, %111 in 0 : vector<16x16xf32>, vector<16x16xf32>, vector<16x16xf32>, vector<16x16xf32>, vector<16x16xf32>, vector<16x16xf32>, vector<16x16xf32>, vector<16x16xf32>, vector<16x16xf32> -> vector<144x16xf32>
    %c0_30 = arith.constant 0 : index
    %c0_31 = arith.constant 0 : index
    %113 = vector.load %arg12[%c0_30, %c0_31] : memref<32x144xf32, #tpu.memory_space<vmem>>, vector<32x144xf32>
    %cst_32 = arith.constant dense<0.000000e+00> : vector<32x16xf32>
    %114 = tpu.matmul %113, %112, %cst_32 {dimension_numbers = #tpu.dot_dimension_numbers<[1], [0], [0], [1], [0, 0, 1, 1], [], []>} : vector<32x144xf32>, vector<144x16xf32>, vector<32x16xf32> -> vector<32x16xf32>
    %c0_33 = arith.constant 0 : index
    %c0_34 = arith.constant 0 : index
    %115 = vector.load %arg13[%c0_33, %c0_34] : memref<32x1xf32, #tpu.memory_space<vmem>>, vector<32x1xf32>
    %116 = vector.broadcast %115 : vector<32x1xf32> to vector<32x16xf32>
    %117 = arith.addf %114, %116 : vector<32x16xf32>
    %cst_35 = arith.constant 0.000000e+00 : f32
    %118 = vector.broadcast %cst_35 : f32 to vector<32x16xf32>
    %119 = arith.maximumf %117, %118 : vector<32x16xf32>
    %c0_36 = arith.constant 0 : index
    %c0_37 = arith.constant 0 : index
    %120 = vector.load %arg14[%c0_36, %c0_37] : memref<16x576xf32, #tpu.memory_space<vmem>>, vector<16x576xf32>
    %cst_38 = arith.constant dense<0.000000e+00> : vector<32x576xf32>
    %121 = tpu.matmul %119, %120, %cst_38 {dimension_numbers = #tpu.dot_dimension_numbers<[1], [0], [0], [1], [0, 0, 1, 1], [], []>} : vector<32x16xf32>, vector<16x576xf32>, vector<32x576xf32> -> vector<32x576xf32>
    %122 = vector.extract_strided_slice %121 {offsets = [0, 0], sizes = [32, 64], strides = [1, 1]} : vector<32x576xf32> to vector<32x64xf32>
    %123 = vector.extract_strided_slice %121 {offsets = [0, 64], sizes = [32, 64], strides = [1, 1]} : vector<32x576xf32> to vector<32x64xf32>
    %124 = vector.extract_strided_slice %121 {offsets = [0, 128], sizes = [32, 64], strides = [1, 1]} : vector<32x576xf32> to vector<32x64xf32>
    %125 = vector.extract_strided_slice %121 {offsets = [0, 192], sizes = [32, 64], strides = [1, 1]} : vector<32x576xf32> to vector<32x64xf32>
    %126 = vector.extract_strided_slice %121 {offsets = [0, 256], sizes = [32, 64], strides = [1, 1]} : vector<32x576xf32> to vector<32x64xf32>
    %127 = vector.extract_strided_slice %121 {offsets = [0, 320], sizes = [32, 64], strides = [1, 1]} : vector<32x576xf32> to vector<32x64xf32>
    %128 = vector.extract_strided_slice %121 {offsets = [0, 384], sizes = [32, 64], strides = [1, 1]} : vector<32x576xf32> to vector<32x64xf32>
    %129 = vector.extract_strided_slice %121 {offsets = [0, 448], sizes = [32, 64], strides = [1, 1]} : vector<32x576xf32> to vector<32x64xf32>
    %130 = vector.extract_strided_slice %121 {offsets = [0, 512], sizes = [32, 64], strides = [1, 1]} : vector<32x576xf32> to vector<32x64xf32>
    %c0_39 = arith.constant 0 : index
    %c0_40 = arith.constant 0 : index
    %131 = vector.load %arg14[%c0_39, %c0_40] : memref<16x576xf32, #tpu.memory_space<vmem>>, vector<16x576xf32>
    %cst_41 = arith.constant dense<0.000000e+00> : vector<32x576xf32>
    %132 = tpu.matmul %81, %131, %cst_41 {dimension_numbers = #tpu.dot_dimension_numbers<[1], [0], [0], [1], [0, 0, 1, 1], [], []>} : vector<32x16xf32>, vector<16x576xf32>, vector<32x576xf32> -> vector<32x576xf32>
    %133 = vector.extract_strided_slice %132 {offsets = [0, 0], sizes = [32, 64], strides = [1, 1]} : vector<32x576xf32> to vector<32x64xf32>
    %134 = vector.extract_strided_slice %132 {offsets = [0, 64], sizes = [32, 64], strides = [1, 1]} : vector<32x576xf32> to vector<32x64xf32>
    %135 = vector.extract_strided_slice %132 {offsets = [0, 128], sizes = [32, 64], strides = [1, 1]} : vector<32x576xf32> to vector<32x64xf32>
    %136 = vector.extract_strided_slice %132 {offsets = [0, 192], sizes = [32, 64], strides = [1, 1]} : vector<32x576xf32> to vector<32x64xf32>
    %137 = vector.extract_strided_slice %132 {offsets = [0, 256], sizes = [32, 64], strides = [1, 1]} : vector<32x576xf32> to vector<32x64xf32>
    %138 = vector.extract_strided_slice %132 {offsets = [0, 320], sizes = [32, 64], strides = [1, 1]} : vector<32x576xf32> to vector<32x64xf32>
    %139 = vector.extract_strided_slice %132 {offsets = [0, 384], sizes = [32, 64], strides = [1, 1]} : vector<32x576xf32> to vector<32x64xf32>
    %140 = vector.extract_strided_slice %132 {offsets = [0, 448], sizes = [32, 64], strides = [1, 1]} : vector<32x576xf32> to vector<32x64xf32>
    %141 = vector.extract_strided_slice %132 {offsets = [0, 512], sizes = [32, 64], strides = [1, 1]} : vector<32x576xf32> to vector<32x64xf32>
    %142 = tpu.concatenate %122, %123, %124, %125, %126, %127, %128, %129, %130, %133, %134, %135, %136, %137, %138, %139 in 0 : vector<32x64xf32>, vector<32x64xf32>, vector<32x64xf32>, vector<32x64xf32>, vector<32x64xf32>, vector<32x64xf32>, vector<32x64xf32>, vector<32x64xf32>, vector<32x64xf32>, vector<32x64xf32>, vector<32x64xf32>, vector<32x64xf32>, vector<32x64xf32>, vector<32x64xf32>, vector<32x64xf32>, vector<32x64xf32> -> vector<512x64xf32>
    %143 = tpu.concatenate %140, %141 in 0 : vector<32x64xf32>, vector<32x64xf32> -> vector<64x64xf32>
    %144 = tpu.concatenate %142, %143 in 0 : vector<512x64xf32>, vector<64x64xf32> -> vector<576x64xf32>
    %c0_42 = arith.constant 0 : index
    %c0_43 = arith.constant 0 : index
    %145 = vector.load %arg15[%c0_42, %c0_43] : memref<64x576xf32, #tpu.memory_space<vmem>>, vector<64x576xf32>
    %cst_44 = arith.constant dense<0.000000e+00> : vector<64x64xf32>
    %146 = tpu.matmul %145, %144, %cst_44 {dimension_numbers = #tpu.dot_dimension_numbers<[1], [0], [0], [1], [0, 0, 1, 1], [], []>} : vector<64x576xf32>, vector<576x64xf32>, vector<64x64xf32> -> vector<64x64xf32>
    %c0_45 = arith.constant 0 : index
    %c0_46 = arith.constant 0 : index
    %147 = vector.load %arg16[%c0_45, %c0_46] : memref<64x1xf32, #tpu.memory_space<vmem>>, vector<64x1xf32>
    %148 = vector.broadcast %147 : vector<64x1xf32> to vector<64x64xf32>
    %149 = arith.addf %146, %148 : vector<64x64xf32>
    %cst_47 = arith.constant 0.000000e+00 : f32
    %150 = vector.broadcast %cst_47 : f32 to vector<64x64xf32>
    %151 = arith.maximumf %149, %150 : vector<64x64xf32>
    %c0_48 = arith.constant 0 : index
    %c0_49 = arith.constant 0 : index
    %152 = vector.load %arg17[%c0_48, %c0_49] : memref<64x2304xf32, #tpu.memory_space<vmem>>, vector<64x2304xf32>
    %cst_50 = arith.constant dense<0.000000e+00> : vector<64x2304xf32>
    %153 = tpu.matmul %151, %152, %cst_50 {dimension_numbers = #tpu.dot_dimension_numbers<[1], [0], [0], [1], [0, 0, 1, 1], [], []>} : vector<64x64xf32>, vector<64x2304xf32>, vector<64x2304xf32> -> vector<64x2304xf32>
    %154 = vector.extract_strided_slice %153 {offsets = [0, 0], sizes = [64, 256], strides = [1, 1]} : vector<64x2304xf32> to vector<64x256xf32>
    %155 = vector.extract_strided_slice %153 {offsets = [0, 256], sizes = [64, 256], strides = [1, 1]} : vector<64x2304xf32> to vector<64x256xf32>
    %156 = vector.extract_strided_slice %153 {offsets = [0, 512], sizes = [64, 256], strides = [1, 1]} : vector<64x2304xf32> to vector<64x256xf32>
    %157 = vector.extract_strided_slice %153 {offsets = [0, 768], sizes = [64, 256], strides = [1, 1]} : vector<64x2304xf32> to vector<64x256xf32>
    %158 = vector.extract_strided_slice %153 {offsets = [0, 1024], sizes = [64, 256], strides = [1, 1]} : vector<64x2304xf32> to vector<64x256xf32>
    %159 = vector.extract_strided_slice %153 {offsets = [0, 1280], sizes = [64, 256], strides = [1, 1]} : vector<64x2304xf32> to vector<64x256xf32>
    %160 = vector.extract_strided_slice %153 {offsets = [0, 1536], sizes = [64, 256], strides = [1, 1]} : vector<64x2304xf32> to vector<64x256xf32>
    %161 = vector.extract_strided_slice %153 {offsets = [0, 1792], sizes = [64, 256], strides = [1, 1]} : vector<64x2304xf32> to vector<64x256xf32>
    %162 = vector.extract_strided_slice %153 {offsets = [0, 2048], sizes = [64, 256], strides = [1, 1]} : vector<64x2304xf32> to vector<64x256xf32>
    %c0_51 = arith.constant 0 : index
    %c0_52 = arith.constant 0 : index
    %163 = vector.load %arg17[%c0_51, %c0_52] : memref<64x2304xf32, #tpu.memory_space<vmem>>, vector<64x2304xf32>
    %cst_53 = arith.constant dense<0.000000e+00> : vector<64x2304xf32>
    %164 = tpu.matmul %62, %163, %cst_53 {dimension_numbers = #tpu.dot_dimension_numbers<[1], [0], [0], [1], [0, 0, 1, 1], [], []>} : vector<64x64xf32>, vector<64x2304xf32>, vector<64x2304xf32> -> vector<64x2304xf32>
    %165 = vector.extract_strided_slice %164 {offsets = [0, 0], sizes = [64, 256], strides = [1, 1]} : vector<64x2304xf32> to vector<64x256xf32>
    %166 = vector.extract_strided_slice %164 {offsets = [0, 256], sizes = [64, 256], strides = [1, 1]} : vector<64x2304xf32> to vector<64x256xf32>
    %167 = vector.extract_strided_slice %164 {offsets = [0, 512], sizes = [64, 256], strides = [1, 1]} : vector<64x2304xf32> to vector<64x256xf32>
    %168 = vector.extract_strided_slice %164 {offsets = [0, 768], sizes = [64, 256], strides = [1, 1]} : vector<64x2304xf32> to vector<64x256xf32>
    %169 = vector.extract_strided_slice %164 {offsets = [0, 1024], sizes = [64, 256], strides = [1, 1]} : vector<64x2304xf32> to vector<64x256xf32>
    %170 = vector.extract_strided_slice %164 {offsets = [0, 1280], sizes = [64, 256], strides = [1, 1]} : vector<64x2304xf32> to vector<64x256xf32>
    %171 = vector.extract_strided_slice %164 {offsets = [0, 1536], sizes = [64, 256], strides = [1, 1]} : vector<64x2304xf32> to vector<64x256xf32>
    %172 = vector.extract_strided_slice %164 {offsets = [0, 1792], sizes = [64, 256], strides = [1, 1]} : vector<64x2304xf32> to vector<64x256xf32>
    %173 = vector.extract_strided_slice %164 {offsets = [0, 2048], sizes = [64, 256], strides = [1, 1]} : vector<64x2304xf32> to vector<64x256xf32>
    %174 = tpu.concatenate %154, %155, %156, %157, %158, %159, %160, %161, %162, %165, %166, %167, %168, %169, %170, %171 in 0 : vector<64x256xf32>, vector<64x256xf32>, vector<64x256xf32>, vector<64x256xf32>, vector<64x256xf32>, vector<64x256xf32>, vector<64x256xf32>, vector<64x256xf32>, vector<64x256xf32>, vector<64x256xf32>, vector<64x256xf32>, vector<64x256xf32>, vector<64x256xf32>, vector<64x256xf32>, vector<64x256xf32>, vector<64x256xf32> -> vector<1024x256xf32>
    %175 = tpu.concatenate %172, %173 in 0 : vector<64x256xf32>, vector<64x256xf32> -> vector<128x256xf32>
    %176 = tpu.concatenate %174, %175 in 0 : vector<1024x256xf32>, vector<128x256xf32> -> vector<1152x256xf32>
    %c0_54 = arith.constant 0 : index
    %c0_55 = arith.constant 0 : index
    %177 = vector.load %arg18[%c0_54, %c0_55] : memref<1x1152xf32, #tpu.memory_space<vmem>>, vector<1x1152xf32>
    %cst_56 = arith.constant dense<0.000000e+00> : vector<1x256xf32>
    %178 = tpu.matmul %177, %176, %cst_56 {dimension_numbers = #tpu.dot_dimension_numbers<[1], [0], [0], [1], [0, 0, 1, 1], [], []>} : vector<1x1152xf32>, vector<1152x256xf32>, vector<1x256xf32> -> vector<1x256xf32>
    %c0_57 = arith.constant 0 : index
    %c0_58 = arith.constant 0 : index
    %179 = vector.load %arg19[%c0_57, %c0_58] : memref<1x1xf32, #tpu.memory_space<vmem>>, vector<1x1xf32>
    %180 = vector.broadcast %179 : vector<1x1xf32> to vector<1x256xf32>
    %181 = arith.addf %178, %180 : vector<1x256xf32>
    %cst_59 = arith.constant 0.000000e+00 : f32
    %182 = vector.broadcast %cst_59 : f32 to vector<1x256xf32>
    %183 = arith.maximumf %181, %182 : vector<1x256xf32>
    %c0_60 = arith.constant 0 : index
    %c0_61 = arith.constant 0 : index
    %c0_62 = arith.constant 0 : index
    %184 = vector.load %arg20[%c0_60, %c0_61, %c0_62] : memref<1x1x256xf32, #tpu.memory_space<vmem>>, vector<1x1x256xf32>
    %185 = vector.shape_cast %184 : vector<1x1x256xf32> to vector<1x256xf32>
    %186 = vector.shape_cast %183 : vector<1x256xf32> to vector<1x1x256xf32>
    tpu.vector_store %arg20[%c0_60, %c0_61, %c0_62], %186 {strides = array<i32>} : memref<1x1x256xf32, #tpu.memory_space<vmem>>, vector<1x1x256xf32>,
    return
  }
  func.func @transform_0(%arg0: i32) -> (i32, i32, i32) {
    %c0_i32 = arith.constant 0 : i32
    %c0_i32_0 = arith.constant 0 : i32
    %c0_i32_1 = arith.constant 0 : i32
    return %arg0, %c0_i32, %c0_i32_0 : i32, i32, i32
  }
  func.func @transform_1(%arg0: i32) -> (i32, i32) {
    %c0_i32 = arith.constant 0 : i32
    %c0_i32_0 = arith.constant 0 : i32
    %c0_i32_1 = arith.constant 0 : i32
    return %c0_i32, %c0_i32_0 : i32, i32
  }
  func.func @transform_2(%arg0: i32) -> (i32, i32) {
    %c0_i32 = arith.constant 0 : i32
    %c0_i32_0 = arith.constant 0 : i32
    %c0_i32_1 = arith.constant 0 : i32
    return %c0_i32, %c0_i32_0 : i32, i32
  }
  func.func @transform_3(%arg0: i32) -> (i32, i32) {
    %c0_i32 = arith.constant 0 : i32
    %c0_i32_0 = arith.constant 0 : i32
    %c0_i32_1 = arith.constant 0 : i32
    return %c0_i32, %c0_i32_0 : i32, i32
  }
  func.func @transform_4(%arg0: i32) -> (i32, i32) {
    %c0_i32 = arith.constant 0 : i32
    %c0_i32_0 = arith.constant 0 : i32
    %c0_i32_1 = arith.constant 0 : i32
    return %c0_i32, %c0_i32_0 : i32, i32
  }
  func.func @transform_5(%arg0: i32) -> (i32, i32) {
    %c0_i32 = arith.constant 0 : i32
    %c0_i32_0 = arith.constant 0 : i32
    %c0_i32_1 = arith.constant 0 : i32
    return %c0_i32, %c0_i32_0 : i32, i32
  }
  func.func @transform_6(%arg0: i32) -> (i32, i32) {
    %c0_i32 = arith.constant 0 : i32
    %c0_i32_0 = arith.constant 0 : i32
    %c0_i32_1 = arith.constant 0 : i32
    return %c0_i32, %c0_i32_0 : i32, i32
  }
  func.func @transform_7(%arg0: i32) -> (i32, i32) {
    %c0_i32 = arith.constant 0 : i32
    %c0_i32_0 = arith.constant 0 : i32
    %c0_i32_1 = arith.constant 0 : i32
    return %c0_i32, %c0_i32_0 : i32, i32
  }
  func.func @transform_8(%arg0: i32) -> (i32, i32) {
    %c0_i32 = arith.constant 0 : i32
    %c0_i32_0 = arith.constant 0 : i32
    %c0_i32_1 = arith.constant 0 : i32
    return %c0_i32, %c0_i32_0 : i32, i32
  }
  func.func @transform_9(%arg0: i32) -> (i32, i32) {
    %c0_i32 = arith.constant 0 : i32
    %c0_i32_0 = arith.constant 0 : i32
    %c0_i32_1 = arith.constant 0 : i32
    return %c0_i32, %c0_i32_0 : i32, i32
  }
  func.func @transform_10(%arg0: i32) -> (i32, i32) {
    %c0_i32 = arith.constant 0 : i32
    %c0_i32_0 = arith.constant 0 : i32
    %c0_i32_1 = arith.constant 0 : i32
    return %c0_i32, %c0_i32_0 : i32, i32
  }
  func.func @transform_11(%arg0: i32) -> (i32, i32) {
    %c0_i32 = arith.constant 0 : i32
    %c0_i32_0 = arith.constant 0 : i32
    %c0_i32_1 = arith.constant 0 : i32
    return %c0_i32, %c0_i32_0 : i32, i32
  }
  func.func @transform_12(%arg0: i32) -> (i32, i32) {
    %c0_i32 = arith.constant 0 : i32
    %c0_i32_0 = arith.constant 0 : i32
    %c0_i32_1 = arith.constant 0 : i32
    return %c0_i32, %c0_i32_0 : i32, i32
  }
  func.func @transform_13(%arg0: i32) -> (i32, i32) {
    %c0_i32 = arith.constant 0 : i32
    %c0_i32_0 = arith.constant 0 : i32
    %c0_i32_1 = arith.constant 0 : i32
    return %c0_i32, %c0_i32_0 : i32, i32
  }
  func.func @transform_14(%arg0: i32) -> (i32, i32) {
    %c0_i32 = arith.constant 0 : i32
    %c0_i32_0 = arith.constant 0 : i32
    %c0_i32_1 = arith.constant 0 : i32
    return %c0_i32, %c0_i32_0 : i32, i32
  }
  func.func @transform_15(%arg0: i32) -> (i32, i32) {
    %c0_i32 = arith.constant 0 : i32
    %c0_i32_0 = arith.constant 0 : i32
    %c0_i32_1 = arith.constant 0 : i32
    return %c0_i32, %c0_i32_0 : i32, i32
  }
  func.func @transform_16(%arg0: i32) -> (i32, i32) {
    %c0_i32 = arith.constant 0 : i32
    %c0_i32_0 = arith.constant 0 : i32
    %c0_i32_1 = arith.constant 0 : i32
    return %c0_i32, %c0_i32_0 : i32, i32
  }
  func.func @transform_17(%arg0: i32) -> (i32, i32) {
    %c0_i32 = arith.constant 0 : i32
    %c0_i32_0 = arith.constant 0 : i32
    %c0_i32_1 = arith.constant 0 : i32
    return %c0_i32, %c0_i32_0 : i32, i32
  }
  func.func @transform_18(%arg0: i32) -> (i32, i32) {
    %c0_i32 = arith.constant 0 : i32
    %c0_i32_0 = arith.constant 0 : i32
    %c0_i32_1 = arith.constant 0 : i32
    return %c0_i32, %c0_i32_0 : i32, i32
  }
  func.func @transform_19(%arg0: i32) -> (i32, i32, i32) {
    %c0_i32 = arith.constant 0 : i32
    %c0_i32_0 = arith.constant 0 : i32
    %c0_i32_1 = arith.constant 0 : i32
    return %arg0, %c0_i32, %c0_i32_0 : i32, i32, i32
  }
}

</mosaic_0001>

<bundles_post_ra>
// kernel: cdae_forward_packed.1
= control target key start
LH: loop header
LB: loop body
LE: loop exit
PB: predicated region body
PF: predicated region fallthrough
CT: control target
= control target key end

     0   :  { %s7630_s20 = smov 0   ;;  %s11720_s0 = inlined_call_operand.vmem [shape: f32[2,1,256], index: 0, kind: input, shape index: {}]   ;;  %s11721_s1 = inlined_call_operand.vmem [shape: f32[256,576], index: 1, kind: input, shape index: {}]   ;;  %s11722_s2 = inlined_call_operand.vmem [shape: f32[64,9], index: 2, kind: input, shape index: {}]   ;;  %s11723_s3 = inlined_call_operand.vmem [shape: f32[64,1], index: 3, kind: input, shape index: {}]   ;;  %s11724_s4 = inlined_call_operand.vmem [shape: f32[64,144], index: 4, kind: input, shape index: {}]   ;;  %s11725_s5 = inlined_call_operand.vmem [shape: f32[32,576], index: 5, kind: input, shape index: {}]   ;;  %s11726_s6 = inlined_call_operand.vmem [shape: f32[32,1], index: 6, kind: input, shape index: {}]   ;;  %s11727_s7 = inlined_call_operand.vmem [shape: f32[16,36], index: 7, kind: input, shape index: {}]   ;;  %s11728_s8 = inlined_call_operand.vmem [shape: f32[16,288], index: 8, kind: input, shape index: {}]   ;;  %s11729_s9 = inlined_call_operand.vmem [shape: f32[16,1], index: 9, kind: input, shape index: {}]   ;;  %s11730_s10 = inlined_call_operand.vmem [shape: f32[4,144], index: 10, kind: input, shape index: {}]   ;;  %s11731_s11 = inlined_call_operand.vmem [shape: f32[32,144], index: 11, kind: input, shape index: {}]   ;;  %s11732_s12 = inlined_call_operand.vmem [shape: f32[32,1], index: 12, kind: input, shape index: {}]   ;;  %s11733_s13 = inlined_call_operand.vmem [shape: f32[16,576], index: 13, kind: input, shape index: {}]   ;;  %s11734_s14 = inlined_call_operand.vmem [shape: f32[64,576], index: 14, kind: input, shape index: {}]   ;;  %s11735_s15 = inlined_call_operand.vmem [shape: f32[64,1], index: 15, kind: input, shape index: {}]   ;;  %s11736_s16 = inlined_call_operand.vmem [shape: f32[64,2304], index: 16, kind: input, shape index: {}]   ;;  %s11737_s17 = inlined_call_operand.vmem [shape: f32[1,1152], index: 17, kind: input, shape index: {}]   ;;  %s11738_s18 = inlined_call_operand.<no memory space> [shape: f32[1,1], index: 18, kind: input, shape index: {}]   ;;  %s11739_s19 = inlined_call_operand.vmem [shape: f32[2,1,256], index: 19, kind: output, shape index: {}]  }
   0x1   :  { %11828 = sst [smem:[#allocation74_spill]] %s11720_s0  ;;  %v24_v0 = vstv %s11738_s18 }
   0x2   :  { %11829 = sst [smem:[#allocation75_spill]] %s11721_s1  ;;  %25 = vst [vmem:[#allocation2] sm:$0x1] %v24_v0 }
   0x3   :  { %11830 = sst [smem:[#allocation76_spill]] %s11722_s2 }
   0x4   :  { %11831 = sst [smem:[#allocation77_spill]] %s11723_s3 }
   0x5 LB: > { %11832 = sst [smem:[#allocation3_spill]] %s7501_s20  ;;  %s6756_s21 = sadd.s32 4294967295, %s7501_s20   ;;  %s7501_s20 = sphi %s7630_s20, %s31_s20  }
   0x6   : > { %p6760_p0 = scmp.ge.s32.totalorder %s7501_s20, 1  ;;  %p538_p1 = scmp.lt.s32.totalorder %s7501_s20, 3 }
   0x8   : > { %p539_p2 = pnand %p6760_p0, %p538_p1 }
   0xa   : > { %542 = sbr.rel (%p539_p2) target bundleno = 3536 (0xdd0), region = 96 }
   0xf   : > { %s11833_s2 = sld [smem:[#allocation75_spill]]  ;;  %v7503_v4 = vmov 3   ;;  %v7504_v18 = vmov 1   ;;  %v7505_v29 = vmov 5   ;;  %p8006_p3 = scmp.lt.s32.totalorder %s6756_s21, 1  ;;  %vm1652_vm0 = vcmask 523264  }
  0x10   : > { %s11834_s3 = sld [smem:[#allocation76_spill]]  ;;  %7420 = vset.pattern.permute.xlu1 %v7503_v4  ;;  %7422 = vset.pattern.permute.xlu0 %v7503_v4  ;;  %s11748_s20 = smov 64   ;;  %vm2283_vm1 = vcmask 130048   ;;  %vm2499_vm2 = vcmask 261120   ;;  %vm2668_vm3 = vcmask 1043456   ;;  %vm2661_vm4 = vcmask 31744  }
  0x11   : > { %s12015_s21 = smov (!%p8006_p3, %s6756_s21), 1  ;;  %s11837_s18 = sld [smem:[#allocation74_spill]] }
  0x12   : > { %s11745_s30 = sshll.u32 %s12015_s21, 1  ;;  %s11839_s26 = sld [smem:[#allocation77_spill]] }
  0x13   : > { %s7514_s25 = smov 16   ;;  %s11746_s1 = smov 80  }
  0x14   : > { %s7517_s27 = smov 112   ;;  %s7518_s28 = smov 96  }
  0x15   : > { %v677_v1 = vld [vmem:[%s11833_s2 + $0x260] sm:$0xff]  ;;  %v679_v2 = vld [vmem:[%s11833_s2 + $0x270] sm:$0xff]  ;;  %v676_v5 = vld [vmem:[%s11833_s2 + $0x258] sm:$0xff]  ;;  %s7519_s29 = smov 32   ;;  %s7524_s0 = smov 124  }
  0x16   : > { %v7647_v3 = vld [vmem:[%s11834_s3] sm:$0xff]  ;;  %772 = vmatprep.subr.mxu0 %v677_v1  ;;  %v678_v6 = vld [vmem:[%s11833_s2 + $0x268] sm:$0xff]  ;;  %v672_v7 = vld [vmem:[%s11833_s2 + $0x238] sm:$0xff]  ;;  %843 = vmatprep.subr.mxu1 %v679_v2  ;;  %s7525_s22 = smov 108  }
  0x17   : > { %1233 = vperm.xlu1 %7420, %v7647_v3   ;;  %v674_v8 = vld [vmem:[%s11833_s2 + $0x248] sm:$0xff]  ;;  %v671_v9 = vld [vmem:[%s11833_s2 + $0x230] sm:$0xff]  ;;  %v673_v10 = vld [vmem:[%s11833_s2 + $0x240] sm:$0xff]  ;;  %773 = vmatpush1.msra.mxu0 %v676_v5  ;;  %s595_s23 = scalar_lea.vmem %s11837_s18, %s11745_s30  ;;  %s7520_s30 = smov 116  }
  0x18   : > { %844 = vmatpush1.msra.mxu1 %v678_v6  ;;  %v667_v11 = vld [vmem:[%s11833_s2 + $0x210] sm:$0xff]  ;;  %v669_v12 = vld [vmem:[%s11833_s2 + $0x220] sm:$0xff]  ;;  %774 = vmatprep.subr.mxu0 %v672_v7  ;;  %v666_v13 = vld [vmem:[%s11833_s2 + $0x208] sm:$0xff] }
  0x19   : > { %845 = vmatprep.subr.mxu1 %v674_v8  ;;  %775 = vmatpush1.msra.mxu0 %v671_v9  ;;  %v668_v14 = vld [vmem:[%s11833_s2 + $0x218] sm:$0xff]  ;;  %v7684_v15 = vld [vmem:[%s11834_s3 + $0x10] sm:$0xff]  ;;  %v662_v16 = vld [vmem:[%s11833_s2 + $0x1e8] sm:$0xff] }
  0x1a   : > { %846 = vmatpush1.msra.mxu1 %v673_v10  ;;  %776 = vmatprep.subr.mxu0 %v667_v11  ;;  %v664_v17 = vld [vmem:[%s11833_s2 + $0x1f8] sm:$0xff]  ;;  %v661_v19 = vld [vmem:[%s11833_s2 + $0x1e0] sm:$0xff]  ;;  %v663_v20 = vld [vmem:[%s11833_s2 + $0x1f0] sm:$0xff] }
  0x1b   : > { %847 = vmatprep.subr.mxu1 %v669_v12  ;;  %7421 = vset.pattern.permute.xlu1 %v7504_v18  ;;  %v657_v21 = vld [vmem:[%s11833_s2 + $0x1c0] sm:$0xff]  ;;  %v659_v22 = vld [vmem:[%s11833_s2 + $0x1d0] sm:$0xff]  ;;  %v656_v23 = vld [vmem:[%s11833_s2 + $0x1b8] sm:$0xff] }
  0x1c   : > { %777 = vmatpush1.msra.mxu0 %v666_v13  ;;  %848 = vmatpush1.msra.mxu1 %v668_v14  ;;  %v658_v24 = vld [vmem:[%s11833_s2 + $0x1c8] sm:$0xff]  ;;  %v652_v25 = vld [vmem:[%s11833_s2 + $0x198] sm:$0xff]  ;;  %v651_v27 = vld [vmem:[%s11833_s2 + $0x190] sm:$0xff] }
  0x1d   : > { %1109 = vperm.xlu1 %7421, %v7684_v15   ;;  %778 = vmatprep.subr.mxu0 %v662_v16  ;;  %v654_v26 = vld [vmem:[%s11833_s2 + $0x1a8] sm:$0xff]  ;;  %v653_v28 = vld [vmem:[%s11833_s2 + $0x1a0] sm:$0xff]  ;;  %v647_v30 = vld [vmem:[%s11833_s2 + $0x170] sm:$0xff] }
  0x1e   : > { %849 = vmatprep.subr.mxu1 %v664_v17  ;;  %779 = vmatpush1.msra.mxu0 %v661_v19  ;;  %v649_v31 = vld [vmem:[%s11833_s2 + $0x180] sm:$0xff]  ;;  %v646_v32 = vld [vmem:[%s11833_s2 + $0x168] sm:$0xff]  ;;  %v648_v33 = vld [vmem:[%s11833_s2 + $0x178] sm:$0xff] }
  0x1f   : > { %850 = vmatpush1.msra.mxu1 %v663_v20  ;;  %780 = vmatprep.subr.mxu0 %v657_v21  ;;  %v642_v34 = vld [vmem:[%s11833_s2 + $0x148] sm:$0xff]  ;;  %v644_v35 = vld [vmem:[%s11833_s2 + $0x158] sm:$0xff]  ;;  %v641_v36 = vld [vmem:[%s11833_s2 + $0x140] sm:$0xff] }
  0x20   : > { %851 = vmatprep.subr.mxu1 %v659_v22  ;;  %781 = vmatpush1.msra.mxu0 %v656_v23  ;;  %v643_v37 = vld [vmem:[%s11833_s2 + $0x150] sm:$0xff]  ;;  %v7753_v38 = vld [vmem:[%s11834_s3 + $0x18] sm:$0xff]  ;;  %v637_v39 = vld [vmem:[%s11833_s2 + $0x120] sm:$0xff]  ;;  %v7506_v23 = vmov 7  }
  0x21   : > { %852 = vmatpush1.msra.mxu1 %v658_v24  ;;  %7423 = vset.pattern.permute.xlu1 %v7505_v29  ;;  %v639_v40 = vld [vmem:[%s11833_s2 + $0x130] sm:$0xff]  ;;  %v636_v41 = vld [vmem:[%s11833_s2 + $0x118] sm:$0xff]  ;;  %v638_v42 = vld [vmem:[%s11833_s2 + $0x128] sm:$0xff] }
  0x22   : > { %782 = vmatprep.subr.mxu0 %v652_v25  ;;  %853 = vmatprep.subr.mxu1 %v654_v26  ;;  %v632_v43 = vld [vmem:[%s11833_s2 + $0xf8] sm:$0xff]  ;;  %v634_v44 = vld [vmem:[%s11833_s2 + $0x108] sm:$0xff]  ;;  %v631_v45 = vld [vmem:[%s11833_s2 + $0xf0] sm:$0xff] }
  0x23   : > { %1365 = vperm.xlu1 %7423, %v7647_v3   ;;  %783 = vmatpush1.msra.mxu0 %v651_v27  ;;  %v633_v46 = vld [vmem:[%s11833_s2 + $0x100] sm:$0xff]  ;;  %v627_v47 = vld [vmem:[%s11833_s2 + $0xd0] sm:$0xff]  ;;  %v7790_v49 = vld [vmem:[%s11834_s3 + $0x8] sm:$0xff] }
  0x24   : > { %854 = vmatpush1.msra.mxu1 %v653_v28  ;;  %784 = vmatprep.subr.mxu0 %v647_v30  ;;  %v629_v48 = vld [vmem:[%s11833_s2 + $0xe0] sm:$0xff]  ;;  %v626_v50 = vld [vmem:[%s11833_s2 + $0xc8] sm:$0xff]  ;;  %v628_v51 = vld [vmem:[%s11833_s2 + $0xd8] sm:$0xff] }
  0x25   : > { %855 = vmatprep.subr.mxu1 %v649_v31  ;;  %785 = vmatpush1.msra.mxu0 %v646_v32  ;;  %v622_v52 = vld [vmem:[%s11833_s2 + $0xa8] sm:$0xff]  ;;  %v624_v53 = vld [vmem:[%s11833_s2 + $0xb8] sm:$0xff]  ;;  %v621_v54 = vld [vmem:[%s11833_s2 + $0xa0] sm:$0xff] }
  0x26   : > { %856 = vmatpush1.msra.mxu1 %v648_v33  ;;  %786 = vmatprep.subr.mxu0 %v642_v34  ;;  %v623_v55 = vld [vmem:[%s11833_s2 + $0xb0] sm:$0xff]  ;;  %v617_v56 = vld [vmem:[%s11833_s2 + $0x80] sm:$0xff]  ;;  %v616_v58 = vld [vmem:[%s11833_s2 + $0x78] sm:$0xff] }
  0x27   : > { %857 = vmatprep.subr.mxu1 %v644_v35  ;;  %7424 = vset.pattern.permute.xlu1 %v7504_v18  ;;  %v619_v57 = vld [vmem:[%s11833_s2 + $0x90] sm:$0xff]  ;;  %v618_v59 = vld [vmem:[%s11833_s2 + $0x88] sm:$0xff]  ;;  %v7827_v60 = vld [vmem:[%s11834_s3 + $0x20] sm:$0xff] }
  0x28   : > { %787 = vmatpush1.msra.mxu0 %v641_v36  ;;  %858 = vmatpush1.msra.mxu1 %v643_v37  ;;  %v612_v61 = vld [vmem:[%s11833_s2 + $0x58] sm:$0xff]  ;;  %v614_v62 = vld [vmem:[%s11833_s2 + $0x68] sm:$0xff]  ;;  %v611_v63 = vld [vmem:[%s11833_s2 + $0x50] sm:$0xff] }
  0x29   : > { %1113 = vperm.xlu1 %7424, %v7753_v38   ;;  %788 = vmatprep.subr.mxu0 %v637_v39  ;;  %v613_v0 = vld [vmem:[%s11833_s2 + $0x60] sm:$0xff]  ;;  %v607_v1 = vld [vmem:[%s11833_s2 + $0x30] sm:$0xff]  ;;  %v606_v5 = vld [vmem:[%s11833_s2 + $0x28] sm:$0xff] }
  0x2a   : > { %859 = vmatprep.subr.mxu1 %v639_v40  ;;  %789 = vmatpush1.msra.mxu0 %v636_v41  ;;  %v609_v2 = vld [vmem:[%s11833_s2 + $0x40] sm:$0xff]  ;;  %v608_v6 = vld [vmem:[%s11833_s2 + $0x38] sm:$0xff]  ;;  %v602_v7 = vld [vmem:[%s11833_s2 + $0x8] sm:$0xff] }
  0x2b   : > { %860 = vmatpush1.msra.mxu1 %v638_v42  ;;  %790 = vmatprep.subr.mxu0 %v632_v43  ;;  %v604_v8 = vld [vmem:[%s11833_s2 + $0x18] sm:$0xff]  ;;  %v601_v9 = vld [vmem:[%s11833_s2] sm:$0xff]  ;;  %v603_v10 = vld [vmem:[%s11833_s2 + $0x10] sm:$0xff] }
  0x2c   : > { %861 = vmatprep.subr.mxu1 %v634_v44  ;;  %791 = vmatpush1.msra.mxu0 %v631_v45  ;;  %v757_v11 = vld [vmem:[%s11833_s2 + $0x4e0] sm:$0xff]  ;;  %v759_v12 = vld [vmem:[%s11833_s2 + $0x4f0] sm:$0xff]  ;;  %v756_v13 = vld [vmem:[%s11833_s2 + $0x4d8] sm:$0xff] }
  0x2d   : > { %862 = vmatpush1.msra.mxu1 %v633_v46  ;;  %7425 = vset.pattern.permute.xlu1 %v7505_v29  ;;  %v758_v14 = vld [vmem:[%s11833_s2 + $0x4e8] sm:$0xff]  ;;  %v752_v16 = vld [vmem:[%s11833_s2 + $0x4b8] sm:$0xff]  ;;  %v751_v19 = vld [vmem:[%s11833_s2 + $0x4b0] sm:$0xff] }
  0x2e   : > { %792 = vmatprep.subr.mxu0 %v627_v47  ;;  %863 = vmatprep.subr.mxu1 %v629_v48  ;;  %v754_v17 = vld [vmem:[%s11833_s2 + $0x4c8] sm:$0xff]  ;;  %v753_v20 = vld [vmem:[%s11833_s2 + $0x4c0] sm:$0xff]  ;;  %v747_v21 = vld [vmem:[%s11833_s2 + $0x490] sm:$0xff] }
  0x2f   : > { %1369 = vperm.xlu1 %7425, %v7790_v49   ;;  %793 = vmatpush1.msra.mxu0 %v626_v50  ;;  %v749_v22 = vld [vmem:[%s11833_s2 + $0x4a0] sm:$0xff]  ;;  %v746_v24 = vld [vmem:[%s11833_s2 + $0x488] sm:$0xff]  ;;  %v748_v25 = vld [vmem:[%s11833_s2 + $0x498] sm:$0xff] }
  0x30   : > { %864 = vmatpush1.msra.mxu1 %v628_v51  ;;  %794 = vmatprep.subr.mxu0 %v622_v52  ;;  %v742_v26 = vld [vmem:[%s11833_s2 + $0x468] sm:$0xff]  ;;  %v744_v27 = vld [vmem:[%s11833_s2 + $0x478] sm:$0xff]  ;;  %v741_v28 = vld [vmem:[%s11833_s2 + $0x460] sm:$0xff] }
  0x31   : > { %865 = vmatprep.subr.mxu1 %v624_v53  ;;  %795 = vmatpush1.msra.mxu0 %v621_v54  ;;  %v743_v30 = vld [vmem:[%s11833_s2 + $0x470] sm:$0xff]  ;;  %v737_v31 = vld [vmem:[%s11833_s2 + $0x440] sm:$0xff]  ;;  %v7933_v33 = vld [vmem:[%s11834_s3 + $0x28] sm:$0xff] }
  0x32   : > { %866 = vmatpush1.msra.mxu1 %v623_v55  ;;  %796 = vmatprep.subr.mxu0 %v617_v56  ;;  %v739_v32 = vld [vmem:[%s11833_s2 + $0x450] sm:$0xff]  ;;  %v736_v34 = vld [vmem:[%s11833_s2 + $0x438] sm:$0xff]  ;;  %v738_v35 = vld [vmem:[%s11833_s2 + $0x448] sm:$0xff] }
  0x33   : > { %867 = vmatprep.subr.mxu1 %v619_v57  ;;  %7426 = vset.pattern.permute.xlu1 %v7504_v18  ;;  %v732_v36 = vld [vmem:[%s11833_s2 + $0x418] sm:$0xff]  ;;  %v734_v37 = vld [vmem:[%s11833_s2 + $0x428] sm:$0xff]  ;;  %v731_v39 = vld [vmem:[%s11833_s2 + $0x410] sm:$0xff] }
  0x34   : > { %797 = vmatpush1.msra.mxu0 %v616_v58  ;;  %868 = vmatpush1.msra.mxu1 %v618_v59  ;;  %v733_v40 = vld [vmem:[%s11833_s2 + $0x420] sm:$0xff]  ;;  %v727_v41 = vld [vmem:[%s11833_s2 + $0x3f0] sm:$0xff]  ;;  %v726_v43 = vld [vmem:[%s11833_s2 + $0x3e8] sm:$0xff] }
  0x35   : > { %1117 = vperm.xlu1 %7426, %v7827_v60   ;;  %798 = vmatprep.subr.mxu0 %v612_v61  ;;  %v729_v42 = vld [vmem:[%s11833_s2 + $0x400] sm:$0xff]  ;;  %v728_v44 = vld [vmem:[%s11833_s2 + $0x3f8] sm:$0xff]  ;;  %v722_v45 = vld [vmem:[%s11833_s2 + $0x3c8] sm:$0xff] }
  0x36   : > { %869 = vmatprep.subr.mxu1 %v614_v62  ;;  %1237 = vperm.xlu0 %7422, %v7790_v49   ;;  %v724_v46 = vld [vmem:[%s11833_s2 + $0x3d8] sm:$0xff]  ;;  %v721_v47 = vld [vmem:[%s11833_s2 + $0x3c0] sm:$0xff]  ;;  %v723_v48 = vld [vmem:[%s11833_s2 + $0x3d0] sm:$0xff] }
  0x37   : > { %799 = vmatpush1.msra.mxu0 %v611_v63  ;;  %870 = vmatpush1.msra.mxu1 %v613_v0  ;;  %v7985_v50 = vld [vmem:[%s11834_s3 + $0x30] sm:$0xff]  ;;  %v717_v51 = vld [vmem:[%s11833_s2 + $0x3a0] sm:$0xff]  ;;  %v716_v53 = vld [vmem:[%s11833_s2 + $0x398] sm:$0xff]  ;;  %v11744_v0 = vlaneseq }
  0x38   : > { %800 = vmatprep.subr.mxu0 %v607_v1  ;;  %871 = vmatprep.subr.mxu1 %v609_v2  ;;  %v719_v52 = vld [vmem:[%s11833_s2 + $0x3b0] sm:$0xff]  ;;  %v718_v54 = vld [vmem:[%s11833_s2 + $0x3a8] sm:$0xff]  ;;  %v712_v55 = vld [vmem:[%s11833_s2 + $0x378] sm:$0xff] }
  0x39   : > { %801 = vmatpush1.msra.mxu0 %v606_v5  ;;  %872 = vmatpush1.msra.mxu1 %v608_v6  ;;  %v714_v56 = vld [vmem:[%s11833_s2 + $0x388] sm:$0xff]  ;;  %v711_v57 = vld [vmem:[%s11833_s2 + $0x370] sm:$0xff]  ;;  %v713_v58 = vld [vmem:[%s11833_s2 + $0x380] sm:$0xff] }
  0x3a   : > { %7427 = vset.pattern.permute.xlu1 %v7503_v4  ;;  %802 = vmatprep.subr.mxu0 %v602_v7  ;;  %v707_v59 = vld [vmem:[%s11833_s2 + $0x350] sm:$0xff]  ;;  %v709_v61 = vld [vmem:[%s11833_s2 + $0x360] sm:$0xff]  ;;  %v706_v62 = vld [vmem:[%s11833_s2 + $0x348] sm:$0xff] }
  0x3b   : > { %873 = vmatprep.subr.mxu1 %v604_v8  ;;  %1241 = vperm.xlu0 %7422, %v7684_v15   ;;  %v708_v63 = vld [vmem:[%s11833_s2 + $0x358] sm:$0xff]  ;;  %v702_v1 = vld [vmem:[%s11833_s2 + $0x328] sm:$0xff]  ;;  %v701_v5 = vld [vmem:[%s11833_s2 + $0x320] sm:$0xff] }
  0x3c   : > { %1245 = vperm.xlu1 %7427, %v7753_v38   ;;  %803 = vmatpush1.msra.mxu0 %v601_v9  ;;  %v704_v2 = vld [vmem:[%s11833_s2 + $0x338] sm:$0xff]  ;;  %v703_v6 = vld [vmem:[%s11833_s2 + $0x330] sm:$0xff]  ;;  %v697_v7 = vld [vmem:[%s11833_s2 + $0x300] sm:$0xff]  ;;  %v8061_v9 = vshrl.u32 %v11744_v0, 7 }
  0x3d   : > { %874 = vmatpush1.msra.mxu1 %v603_v10  ;;  %804 = vmatprep.subr.mxu0 %v757_v11  ;;  %v699_v8 = vld [vmem:[%s11833_s2 + $0x310] sm:$0xff]  ;;  %v696_v10 = vld [vmem:[%s11833_s2 + $0x2f8] sm:$0xff]  ;;  %v698_v11 = vld [vmem:[%s11833_s2 + $0x308] sm:$0xff] }
  0x3e   : > { %875 = vmatprep.subr.mxu1 %v759_v12  ;;  %805 = vmatpush2.msra.mxu0 %v756_v13  ;;  %11836 = vst [vmem:[#allocation4_spill] sm:$0xff] %v8061_v9  ;;  %v692_v12 = vld [vmem:[%s11833_s2 + $0x2d8] sm:$0xff]  ;;  %v694_v13 = vld [vmem:[%s11833_s2 + $0x2e8] sm:$0xff] }
  0x3f   : > { %876 = vmatpush2.msra.mxu1 %v758_v14  ;;  %806 = vmatprep.subr.mxu0 %v752_v16  ;;  %v691_v14 = vld [vmem:[%s11833_s2 + $0x2d0] sm:$0xff]  ;;  %v693_v16 = vld [vmem:[%s11833_s2 + $0x2e0] sm:$0xff] }
  0x40   : > { %877 = vmatprep.subr.mxu1 %v754_v17  ;;  %1249 = vperm.xlu0 %7422, %v7827_v60   ;;  %v11752_v17 = vsub.s32 1, %v8061_v9 }
  0x41   : > { %7428 = vset.pattern.permute.xlu1 %v7506_v23  ;;  %807 = vmatpush2.msra.mxu0 %v751_v19  ;;  %v687_v19 = vld [vmem:[%s11833_s2 + $0x2b0] sm:$0xff] }
  0x42   : > { %878 = vmatpush2.msra.mxu1 %v753_v20  ;;  %1501 = vperm.xlu1 %7428, %v7790_v49   ;;  %v689_v20 = vld [vmem:[%s11833_s2 + $0x2c0] sm:$0xff] }
  0x43   : > { %808 = vmatprep.subr.mxu0 %v747_v21  ;;  %879 = vmatprep.subr.mxu1 %v749_v22  ;;  %v600_v21 = vld [vmem:[%s595_s23] sm:$0x3]  ;;  %v8097_v22 = vsub.s32 0, %v8061_v9  ;;  %s11750_s23 = smov 48  }
  0x44   : > { %809 = vmatpush2.msra.mxu0 %v746_v24  ;;  %880 = vmatpush2.msra.mxu1 %v748_v25  ;;  %v686_v24 = vld [vmem:[%s11833_s2 + $0x2a8] sm:$0xff]  ;;  %v688_v25 = vld [vmem:[%s11833_s2 + $0x2b8] sm:$0xff] }
  0x45   : > { %810 = vmatprep.subr.mxu0 %v742_v26  ;;  %881 = vmatprep.subr.mxu1 %v744_v27  ;;  %11838 = vst [vmem:[#allocation5_spill] sm:$0xff] %v8097_v22  ;;  %v682_v26 = vld [vmem:[%s11833_s2 + $0x288] sm:$0xff]  ;;  %v684_v27 = vld [vmem:[%s11833_s2 + $0x298] sm:$0xff] }
  0x46   : > { %7430 = vset.pattern.permute.xlu0 %v7504_v18  ;;  %811 = vmatpush2.msra.mxu0 %v741_v28  ;;  %v681_v28 = vld [vmem:[%s11833_s2 + $0x280] sm:$0xff] }
  0x47   : > { %882 = vmatpush2.msra.mxu1 %v743_v30  ;;  %1101 = vperm.xlu0 %7430, %v7647_v3   ;;  %v683_v30 = vld [vmem:[%s11833_s2 + $0x290] sm:$0xff] }
  0x48   : > { %7429 = vset.pattern.permute.xlu1 %v7504_v18  ;;  %812 = vmatprep.subr.mxu0 %v737_v31  ;;  %v8123_v31 = vrot.slane %v600_v21, %v8097_v22 }
  0x49   : > { %883 = vmatprep.subr.mxu1 %v739_v32  ;;  %1121 = vperm.xlu1 %7429, %v7933_v33   ;;  %v760_v32 = vld [vmem:[%s11833_s2 + $0x4f8] sm:$0xff] }
  0x4a   : > { %813 = vmatpush2.msra.mxu0 %v736_v34  ;;  %884 = vmatpush2.msra.mxu1 %v738_v35  ;;  %v8131_v34 = vld [vmem:[%s11834_s3 + $0x38] sm:$0xff] }
  0x4b   : > { %814 = vmatprep.subr.mxu0 %v732_v36  ;;  %885 = vmatprep.subr.mxu1 %v734_v37  ;;  %v680_v35 = vld [vmem:[%s11833_s2 + $0x278] sm:$0xff]  ;;  %v755_v36 = vld [vmem:[%s11833_s2 + $0x4d0] sm:$0xff] }
  0x4c   : > { %815 = vmatpush2.msra.mxu0 %v731_v39  ;;  %886 = vmatpush2.msra.mxu1 %v733_v40  ;;  %v675_v37 = vld [vmem:[%s11833_s2 + $0x250] sm:$0xff]  ;;  %v750_v39 = vld [vmem:[%s11833_s2 + $0x4a8] sm:$0xff] }
  0x4d   : > { %1105 = vperm.xlu0 %7430, %v7790_v49   ;;  %816 = vmatprep.subr.mxu0 %v727_v41  ;;  %v670_v40 = vld [vmem:[%s11833_s2 + $0x228] sm:$0xff]  ;;  %v745_v41 = vld [vmem:[%s11833_s2 + $0x480] sm:$0xff] }
  0x4e   : > { %887 = vmatprep.subr.mxu1 %v729_v42  ;;  %7431 = vset.pattern.permute.xlu1 %v7505_v29  ;;  %v740_v42 = vld [vmem:[%s11833_s2 + $0x458] sm:$0xff] }
  0x4f   : > { %817 = vmatpush2.msra.mxu0 %v726_v43  ;;  %888 = vmatpush2.msra.mxu1 %v728_v44  ;;  %v660_v43 = vld [vmem:[%s11833_s2 + $0x1d8] sm:$0xff]  ;;  %v735_v44 = vld [vmem:[%s11833_s2 + $0x430] sm:$0xff] }
  0x50   : > { %1377 = vperm.xlu1 %7431, %v7753_v38   ;;  %818 = vmatprep.subr.mxu0 %v722_v45  ;;  %v655_v45 = vld [vmem:[%s11833_s2 + $0x1b0] sm:$0xff] }
  0x51   : > { %889 = vmatprep.subr.mxu1 %v724_v46  ;;  %819 = vmatpush2.msra.mxu0 %v721_v47  ;;  %v730_v46 = vld [vmem:[%s11833_s2 + $0x408] sm:$0xff] }
  0x52   : > { %890 = vmatpush2.msra.mxu1 %v723_v48  ;;  %1125 = vperm.xlu0 %7430, %v7985_v50   ;;  %v650_v47 = vld [vmem:[%s11833_s2 + $0x188] sm:$0xff]  ;;  %v725_v48 = vld [vmem:[%s11833_s2 + $0x3e0] sm:$0xff] }
  0x53   : > { %820 = vmatprep.subr.mxu0 %v717_v51  ;;  %891 = vmatprep.subr.mxu1 %v719_v52  ;;  %v645_v51 = vld [vmem:[%s11833_s2 + $0x160] sm:$0xff]  ;;  %v720_v52 = vld [vmem:[%s11833_s2 + $0x3b8] sm:$0xff] }
  0x54   : > { %821 = vmatpush2.msra.mxu0 %v716_v53  ;;  %892 = vmatpush2.msra.mxu1 %v718_v54  ;;  %v640_v53 = vld [vmem:[%s11833_s2 + $0x138] sm:$0xff]  ;;  %v715_v54 = vld [vmem:[%s11833_s2 + $0x390] sm:$0xff] }
  0x55   : > { %7432 = vset.pattern.permute.xlu1 %v7506_v23  ;;  %822 = vmatprep.subr.mxu0 %v712_v55  ;;  %v635_v55 = vld [vmem:[%s11833_s2 + $0x110] sm:$0xff] }
  0x56   : > { %893 = vmatprep.subr.mxu1 %v714_v56  ;;  %1505 = vperm.xlu1 %7432, %v7684_v15   ;;  %v710_v56 = vld [vmem:[%s11833_s2 + $0x368] sm:$0xff] }
  0x57   : > { %823 = vmatpush2.msra.mxu0 %v711_v57  ;;  %894 = vmatpush2.msra.mxu1 %v713_v58  ;;  %v7507_v57 = vmov 0   ;;  %v705_v58 = vld [vmem:[%s11833_s2 + $0x340] sm:$0xff] }
  0x58   : > { %7433 = vset.pattern.permute.xlu0 %v7505_v29  ;;  %824 = vmatprep.subr.mxu0 %v707_v59  ;;  %v625_v59 = vld [vmem:[%s11833_s2 + $0xc0] sm:$0xff] }
  0x59   : > { %895 = vmatprep.subr.mxu1 %v709_v61  ;;  %1373 = vperm.xlu0 %7433, %v7684_v15   ;;  %v700_v61 = vld [vmem:[%s11833_s2 + $0x318] sm:$0xff] }
  0x5a   : > { %825 = vmatpush2.msra.mxu0 %v706_v62  ;;  %896 = vmatpush2.msra.mxu1 %v708_v63  ;;  %v620_v62 = vld [vmem:[%s11833_s2 + $0x98] sm:$0xff]  ;;  %v695_v63 = vld [vmem:[%s11833_s2 + $0x2f0] sm:$0xff] }
  0x5b   : > { %826 = vmatprep.subr.mxu0 %v702_v1  ;;  %897 = vmatprep.subr.mxu1 %v704_v2  ;;  %v690_v1 = vld [vmem:[%s11833_s2 + $0x2c8] sm:$0xff] }
  0x5c   : > { %7434 = vset.pattern.permute.xlu1 %v7503_v4  ;;  %827 = vmatpush2.msra.mxu0 %v701_v5  ;;  %v610_v2 = vld [vmem:[%s11833_s2 + $0x48] sm:$0xff]  ;;  %v685_v5 = vld [vmem:[%s11833_s2 + $0x2a0] sm:$0xff] }
  0x5d   : > { %898 = vmatpush2.msra.mxu1 %v703_v6  ;;  %1253 = vperm.xlu1 %7434, %v7933_v33   ;;  %v995_v6 = vld [vmem:[%s11839_s26 + $0x18] sm:$0xff] }
  0x5e   : > { %828 = vmatprep.subr.mxu0 %v697_v7  ;;  %899 = vmatprep.subr.mxu1 %v699_v8  ;;  %v605_v7 = vld [vmem:[%s11833_s2 + $0x20] sm:$0xff] }
  0x5f   : > { %1385 = vperm.xlu0 %7433, %v7933_v33   ;;  %829 = vmatpush2.msra.mxu0 %v696_v10  ;;  %v992_v8 = vld [vmem:[%s11839_s26] sm:$0xff]  ;;  %v7508_v10 = vmov 2  }
  0x60   : > { %900 = vmatpush2.msra.mxu1 %v698_v11  ;;  %830 = vmatprep.subr.mxu0 %v692_v12  ;;  %v993_v11 = vld [vmem:[%s11839_s26 + $0x8] sm:$0xff] }
  0x61   : > { %901 = vmatprep.subr.mxu1 %v694_v13  ;;  %831 = vmatpush2.msra.mxu0 %v691_v14  ;;  %v7509_v13 = vmov 8   ;;  %v994_v14 = vld [vmem:[%s11839_s26 + $0x10] sm:$0xff] }
  0x62   : > { %902 = vmatpush2.msra.mxu1 %v693_v16  ;;  %7435 = vset.pattern.permute.xlu1 %v7505_v29  ;;  %v769_v29 = vrot.slane %v600_v21, %v11752_v17 }
  0x63   : > { %832 = vmatprep.subr.mxu0 %v687_v19  ;;  %903 = vmatprep.subr.mxu1 %v689_v20  ;;  %v7510_v19 = vmov 4  }
  0x64   : > { %1389 = vperm.xlu0 %7433, %v7985_v50   ;;  %1381 = vperm.xlu1 %7435, %v7827_v60  }
  0x65   : > { %833 = vmatpush2.msra.mxu0 %v686_v24  ;;  %904 = vmatpush2.msra.mxu1 %v688_v25  ;;  %v7511_v24 = vmov 6  }
  0x66   : > { %834 = vmatprep.subr.mxu0 %v682_v26  ;;  %905 = vmatprep.subr.mxu1 %v684_v27 }
  0x67   : > { %835 = vmatpush2.msra.mxu0 %v681_v28  ;;  %836 = vmatprep.mubr.f32.mxu0 %v769_v29 }
  0x68   : > { %906 = vmatpush2.msra.mxu1 %v683_v30  ;;  %907 = vmatprep.mubr.f32.mxu1 %v769_v29 }
  0x69   : > { %837 = vmatmul.mubr.f32.vlgmr.msra.gmra.mxu0 %v8123_v31  ;;  %908 = vmatmul.mubr.f32.vlgmr.msra.gmra.mxu1 %v8123_v31 }
  0x6a   : > { %6968 = vmatprep.subr.mxu0 %v760_v32  ;;  %1393 = vperm.xlu0 %7433, %v8131_v34  }
  0x6b   : > { %7436 = vset.pattern.permute.xlu1 %v7504_v18  ;;  %6969 = vmatpush3.msra.mxu0 %v680_v35  ;;  %v665_v18 = vld [vmem:[%s11833_s2 + $0x200] sm:$0xff] }
  0x6c   : > { %1129 = vperm.xlu1 %7436, %v8131_v34   ;;  %6970 = vmatprep.subr.mxu0 %v755_v36 }
  0x6d   : > { %6971 = vmatpush3.msra.mxu0 %v675_v37  ;;  %978 = vmatprep.mubr.f32.mxu0 %v769_v29  ;;  %v996_v29 = vld [vmem:[%s11839_s26 + $0x20] sm:$0xff]  ;;  %v998_v37 = vld [vmem:[%s11839_s26 + $0x30] sm:$0xff] }
  0x6e   : > { %6972 = vmatprep.subr.mxu0 %v750_v39  ;;  %7441 = vset.pattern.permute.xlu0 %v7506_v23 }
  0x6f   : > { %6973 = vmatpush3.msra.mxu0 %v670_v40  ;;  %1497 = vperm.xlu0 %7441, %v7647_v3  }
  0x70   : > { %7437 = vset.pattern.permute.xlu1 %v7503_v4  ;;  %6974 = vmatprep.subr.mxu0 %v745_v41 }
  0x71   : > { %1257 = vperm.xlu1 %7437, %v7985_v50   ;;  %6975 = vmatpush3.msra.mxu0 %v665_v18 }
  0x72   : > { %6976 = vmatprep.subr.mxu0 %v740_v42  ;;  %v999_v42 = vld [vmem:[%s11839_s26 + $0x38] sm:$0xff] }
  0x73   : > { %6977 = vmatpush3.msra.mxu0 %v660_v43  ;;  %1509 = vperm.xlu0 %7441, %v7753_v38  }
  0x74   : > { %6978 = vmatprep.subr.mxu0 %v735_v44 }
  0x75   : > { %7438 = vset.pattern.permute.xlu1 %v7506_v23  ;;  %6979 = vmatpush3.msra.mxu0 %v655_v45 }
  0x76   : > { %1513 = vperm.xlu1 %7438, %v7827_v60   ;;  %6980 = vmatprep.subr.mxu0 %v730_v46 }
  0x77   : > { %6981 = vmatpush3.msra.mxu0 %v650_v47  ;;  %1525 = vperm.xlu0 %7441, %v8131_v34  }
  0x78   : > { %6982 = vmatprep.subr.mxu0 %v725_v48 }
  0x79   : > { %6983 = vmatpush3.msra.mxu0 %v645_v51 }
  0x7a   : > { %7439 = vset.pattern.permute.xlu1 %v7503_v4  ;;  %6984 = vmatprep.subr.mxu0 %v720_v52  ;;  %v630_v4 = vld [vmem:[%s11833_s2 + $0xe8] sm:$0xff] }
  0x7b   : > { %1261 = vperm.xlu1 %7439, %v8131_v34   ;;  %6985 = vmatpush3.msra.mxu0 %v640_v53 }
  0x7c   : > { %7443 = vset.pattern.permute.xlu0 %v7507_v57  ;;  %6986 = vmatprep.subr.mxu0 %v715_v54 }
  0x7d   : > { %1007 = vperm.xlu0 %7443, %v7790_v49   ;;  %6987 = vmatpush3.msra.mxu0 %v635_v55 }
  0x7e   : > { %6988 = vmatprep.subr.mxu0 %v710_v56 }
  0x7f   : > { %7440 = vset.pattern.permute.xlu1 %v7506_v23  ;;  %6989 = vmatpush3.msra.mxu0 %v630_v4  ;;  %v615_v23 = vld [vmem:[%s11833_s2 + $0x70] sm:$0xff] }
  0x80   : > { %1517 = vperm.xlu1 %7440, %v7933_v33   ;;  %6990 = vmatprep.subr.mxu0 %v705_v58 }
  0x81   : > { %1012 = vperm.xlu0 %7443, %v7684_v15   ;;  %6991 = vmatpush3.msra.mxu0 %v625_v59 }
  0x82   : > { %6992 = vmatprep.subr.mxu0 %v700_v61 }
  0x83   : > { %6993 = vmatpush3.msra.mxu0 %v620_v62 }
  0x84   : > { %1521 = vperm.xlu1 %7440, %v7985_v50   ;;  %6994 = vmatprep.subr.mxu0 %v695_v63 }
  0x85   : > { %1017 = vperm.xlu0 %7443, %v7753_v38   ;;  %6995 = vmatpush3.msra.mxu0 %v615_v23 }
  0x86   : > { %6996 = vmatprep.subr.mxu0 %v690_v1 }
  0x87   : > { %6997 = vmatpush3.msra.mxu0 %v610_v2 }
  0x88   : > { %7442 = vset.pattern.permute.xlu1 %v7507_v57  ;;  %6998 = vmatprep.subr.mxu0 %v685_v5 }
  0x89   : > { %1069 = vperm.xlu0 %7443, %v995_v6   ;;  %1002 = vperm.xlu1 %7442, %v7647_v3  }
  0x8a   : > { %6999 = vmatpush3.msra.mxu0 %v605_v7 }
  0x8b   : > { %979 = vmatmul.mubr.f32.vlgmr.msra.gmra.mxu0 %v8123_v31  ;;  %v997_v31 = vld [vmem:[%s11839_s26 + $0x28] sm:$0xff] }
  0x8d   : > { %1027 = vperm.xlu0 %7443, %v7933_v33   ;;  %1054 = vperm.xlu1 %7442, %v992_v8  }
  0x91   : > { %1032 = vperm.xlu0 %7443, %v7985_v50   ;;  %7444 = vset.pattern.permute.xlu1 %v7508_v10 }
  0x92   : > { %1181 = vperm.xlu1 %7444, %v7647_v3   ;;  %v8267_v12 = vpop.permute.xlu1 %1233 }
  0x95   : > { %1037 = vperm.xlu0 %7443, %v8131_v34  }
  0x96   : > { %7445 = vset.pattern.permute.xlu1 %v7507_v57 }
  0x97   : > { %1059 = vperm.xlu1 %7445, %v993_v11  }
  0x98   : > { %v8277_v16 = vpop.permute.xlu1 %1109 }
  0x99   : > { %7467 = vset.pattern.permute.xlu0 %v7508_v10 }
  0x9a   : > { %1209 = vperm.xlu0 %7467, %v8131_v34  }
  0x9b   : > { %7446 = vset.pattern.permute.xlu1 %v7508_v10 }
  0x9c   : > { %1185 = vperm.xlu1 %7446, %v7790_v49  }
  0x9e   : > { %7470 = vset.pattern.permute.xlu0 %v7509_v13  ;;  %v8283_v20 = vpop.permute.xlu1 %1365 }
  0x9f   : > { %1593 = vperm.xlu0 %7470, %v7827_v60  }
  0xa0   : > { %7447 = vset.pattern.permute.xlu1 %v7507_v57 }
  0xa1   : > { %1064 = vperm.xlu1 %7447, %v994_v14  }
  0xa3   : > { %7471 = vset.pattern.permute.xlu0 %v7510_v19 }
  0xa4   : > { %1313 = vperm.xlu0 %7471, %v7647_v3   ;;  %v8289_v21 = vpop.permute.xlu1 %1113 }
  0xa5   : > { %7448 = vset.pattern.permute.xlu1 %v7508_v10 }
  0xa6   : > { %1189 = vperm.xlu1 %7448, %v7684_v15  }
  0xa8   : > { %1321 = vperm.xlu0 %7471, %v7684_v15  }
  0xaa   : > { %7449 = vset.pattern.permute.xlu1 %v7510_v19  ;;  %v8296_v25 = vpop.permute.xlu1 %1369 }
  0xab   : > { %1317 = vperm.xlu1 %7449, %v7790_v49  }
  0xac   : > { %1341 = vperm.xlu0 %7471, %v8131_v34  }
  0xaf   : > { %7450 = vset.pattern.permute.xlu1 %v7507_v57 }
  0xb0   : > { %7472 = vset.pattern.permute.xlu0 %v7511_v24  ;;  %1022 = vperm.xlu1 %7450, %v7827_v60   ;;  %v8301_v26 = vpop.permute.xlu1 %1117 }
  0xb1   : > { %1445 = vperm.xlu0 %7472, %v7647_v3   ;;  %v8355_v40 = vpop.permute.xlu0 %1237 }
  0xb4   : > { %7451 = vset.pattern.permute.xlu1 %v7508_v10 }
  0xb5   : > { %1453 = vperm.xlu0 %7472, %v7684_v15   ;;  %1193 = vperm.xlu1 %7451, %v7753_v38  }
  0xb6   : > { %v8361_v41 = vpop.permute.xlu0 %1241 }
  0xb7   : > { %v8307_v27 = vpop.permute.xlu1 %1245 }
  0xb9   : > { %1457 = vperm.xlu0 %7472, %v7753_v38   ;;  %7452 = vset.pattern.permute.xlu1 %v7511_v24 }
  0xba   : > { %1449 = vperm.xlu1 %7452, %v7790_v49  }
  0xbb   : > { %v8373_v44 = vpop.permute.xlu0 %1249 }
  0xbd   : > { %1461 = vperm.xlu0 %7472, %v7827_v60   ;;  %v8315_v28 = vpop.permute.xlu1 %1501 }
  0xbe   : > { %7453 = vset.pattern.permute.xlu1 %v7509_v13 }
  0xbf   : > { %1577 = vperm.xlu1 %7453, %v7647_v3  }
  0xc3   : > { %7454 = vset.pattern.permute.xlu1 %v7507_v57 }
  0xc4   : > { %1074 = vperm.xlu1 %7454, %v996_v29   ;;  %v8319_v30 = vpop.permute.xlu1 %1121 }
  0xc8   : > { %7455 = vset.pattern.permute.xlu1 %v7508_v10 }
  0xc9   : > { %1197 = vperm.xlu1 %7455, %v7827_v60  }
  0xcb   : > { %v8323_v3 = vpop.permute.xlu1 %1377 }
  0xcd   : > { %7456 = vset.pattern.permute.xlu1 %v7510_v19 }
  0xce   : > { %1325 = vperm.xlu1 %7456, %v7753_v38  }
  0xd1   : > { %v8330_v32 = vpop.permute.xlu1 %1505 }
  0xd2   : > { %7457 = vset.pattern.permute.xlu1 %v7509_v13 }
  0xd3   : > { %1581 = vperm.xlu1 %7457, %v7790_v49  }
  0xd7   : > { %7458 = vset.pattern.permute.xlu1 %v7507_v57 }
  0xd8   : > { %1079 = vperm.xlu1 %7458, %v997_v31   ;;  %v8333_v35 = vpop.permute.xlu1 %1253 }
  0xdc   : > { %7459 = vset.pattern.permute.xlu1 %v7508_v10 }
  0xdd   : > { %1201 = vperm.xlu1 %7459, %v7933_v33  }
  0xdf   : > { %v8338_v36 = vpop.permute.xlu1 %1381 }
  0xe1   : > { %7460 = vset.pattern.permute.xlu1 %v7510_v19 }
  0xe2   : > { %1329 = vperm.xlu1 %7460, %v7827_v60  }
  0xe6   : > { %7461 = vset.pattern.permute.xlu1 %v7509_v13 }
  0xe7   : > { %1585 = vperm.xlu1 %7461, %v7684_v15   ;;  %v8343_v49 = vpop.permute.xlu1 %1129 }
  0xeb   : > { %7462 = vset.pattern.permute.xlu1 %v7507_v57 }
  0xec   : > { %1084 = vperm.xlu1 %7462, %v998_v37   ;;  %v8349_v39 = vpop.permute.xlu1 %1257 }
  0xf0   : > { %7463 = vset.pattern.permute.xlu1 %v7508_v10 }
  0xf1   : > { %1205 = vperm.xlu1 %7463, %v7985_v50   ;;  %v8353_v60 = vpop.permute.xlu1 %1513 }
  0xf5   : > { %7464 = vset.pattern.permute.xlu1 %v7510_v19 }
  0xf6   : > { %1333 = vperm.xlu1 %7464, %v7933_v33   ;;  %v8359_v15 = vpop.permute.xlu1 %1261 }
  0xfa   : > { %7465 = vset.pattern.permute.xlu1 %v7509_v13 }
  0xfb   : > { %1589 = vperm.xlu1 %7465, %v7753_v38   ;;  %v8365_v18 = vpop.permute.xlu1 %1517  ;;  %v1102_v38 = vpop.permute.xlu0 %1101 }
  0xff   : > { %7466 = vset.pattern.permute.xlu1 %v7507_v57  ;;  %v8371_v43 = vpop.permute.xlu1 %1521  ;;  %v1106_v47 = vpop.permute.xlu0 %1105 }
 0x100   : > { %1089 = vperm.xlu1 %7466, %v999_v42  }
 0x103   : > { %v8386_v51 = vpop.permute.xlu0 %1125 }
 0x104   : > { %7468 = vset.pattern.permute.xlu1 %v7510_v19  ;;  %v8376_v45 = vpop.permute.xlu1 %1002 }
 0x105   : > { %1337 = vperm.xlu1 %7468, %v7985_v50  }
 0x107   : > { %v1374_v54 = vpop.permute.xlu0 %1373 }
 0x108   : > { %v8379_v46 = vpop.permute.xlu1 %1054 }
 0x109   : > { %7469 = vset.pattern.permute.xlu1 %v7511_v24 }
 0x10a   : > { %1465 = vperm.xlu1 %7469, %v7933_v33  }
 0x10b   : > { %v1386_v56 = vpop.permute.xlu0 %1385 }
 0x10d   : > { %v8383_v48 = vpop.permute.xlu1 %1181 }
 0x10e   : > { %1469 = vperm.xlu1 %7469, %v7985_v50  }
 0x10f   : > { %v8398_v58 = vpop.permute.xlu0 %1389 }
 0x112   : > { %v8388_v52 = vpop.permute.xlu1 %1059  ;;  %7473 = vset.pattern.permute.xlu1 %v7509_v13 }
 0x113   : > { %1597 = vperm.xlu1 %7473, %v7933_v33   ;;  %v8402_v63 = vpop.permute.xlu0 %1393 }
 0x117   : > { %v8392_v53 = vpop.permute.xlu1 %1185  ;;  %v1498_v6 = vpop.permute.xlu0 %1497 }
 0x11c   : > { %v8394_v55 = vpop.permute.xlu1 %1064 }
 0x121   : > { %v8396_v4 = vpop.permute.xlu1 %1189 }
 0x126   : > { %v8400_v59 = vpop.permute.xlu1 %1317 }
 0x129   : > { %v838_v61 = vpop.f32.mrf.mxu0  ;;  %v909_v62 = vpop.f32.mrf.mxu1 }
 0x12a   : > { %v8405_v23 = vrot.slane %v838_v61, %v8097_v22  ;;  %v8408_v33 = vrot.slane %v909_v62, %v8097_v22 }
 0x12b   : > { %v8410_v1 = vpop.permute.xlu1 %1022  ;;  %v840_v29 = vpop.f32.mrf.mxu0 }
 0x12c   : > { %v1134_v2 = vmul.f32 %v8277_v16, %v8405_v23  ;;  %v1132_v5 = vmul.f32 %v1102_v38, %v8405_v23  ;;  %v1396_v7 = vmul.f32 %v8283_v20, %v8408_v33  ;;  %v1133_v8 = vmul.f32 %v1106_v47, %v8405_v23  ;;  %v8428_v16 = vpop.permute.xlu0 %1509  ;;  %v1651_v47 = vld [vmem:[%s11724_s4 + $0x78] sm:$0xff] }
 0x12d   : > { %v1400_v11 = vmul.f32 %v8338_v36, %v8408_v33  ;;  %v1135_v14 = vmul.f32 %v8289_v21, %v8405_v23  ;;  %v1139_v20 = vmul.f32 %v8343_v49, %v8405_v23  ;;  %v1397_v24 = vmul.f32 %v8296_v25, %v8408_v33  ;;  %v911_v25 = vpop.f32.mrf.mxu1  ;;  %1693 = vmatprep.subr.mxu1 %v1651_v47  ;;  %v1641_v47 = vld [vmem:[%s11724_s4 + $0x28] sm:$0xff] }
 0x12e   : > { %1152 = vrot.lane.b32.xlu0 %v1134_v2, %s11748_s20  ;;  %1148 = vrot.lane.b32.xlu1 %v1132_v5, %s11748_s20  ;;  %v8443_v31 = vrot.slane %v840_v29, %v8097_v22  ;;  %v1401_v37 = vmul.f32 %v1386_v56, %v8408_v33  ;;  %v1136_v49 = vmul.f32 %v8301_v26, %v8405_v23  ;;  %v1650_v56 = vld [vmem:[%s11724_s4 + $0x70] sm:$0xff] }
 0x12f   : > { %v1398_v42 = vmul.f32 %v1374_v54, %v8408_v33  ;;  %v8464_v26 = vrot.slane %v911_v25, %v8097_v22  ;;  %1694 = vmatpush1.msra.mxu1 %v1650_v56  ;;  %v1644_v25 = vld [vmem:[%s11724_s4 + $0x40] sm:$0xff] }
 0x130   : > { %v8420_v10 = vpop.permute.xlu1 %1193  ;;  %v8440_v21 = vpop.permute.xlu0 %1525  ;;  %v1266_v38 = vmul.f32 %v8361_v41, %v8443_v31  ;;  %v1137_v41 = vmul.f32 %v8319_v30, %v8405_v23  ;;  %v1138_v30 = vmul.f32 %v8386_v51, %v8405_v23  ;;  %v1649_v51 = vld [vmem:[%s11724_s4 + $0x68] sm:$0xff] }
 0x131   : > { %v1528_v54 = vmul.f32 %v1498_v6, %v8464_v26  ;;  %v1529_v6 = vmul.f32 %v8315_v28, %v8464_v26  ;;  %1695 = vmatprep.subr.mxu1 %v1649_v51  ;;  %v1648_v28 = vld [vmem:[%s11724_s4 + $0x60] sm:$0xff]  ;;  %v1530_v29 = vmul.f32 %v8330_v32, %v8464_v26  ;;  %v1643_v32 = vld [vmem:[%s11724_s4 + $0x38] sm:$0xff] }
 0x132   : > { %1412 = vrot.lane.b32.xlu0 %v1396_v7, %s11748_s20  ;;  %1150 = vrot.lane.b32.xlu1 %v1133_v8, %s11748_s20  ;;  %v1399_v7 = vmul.f32 %v8323_v3, %v8408_v33  ;;  %v1267_v8 = vmul.f32 %v8307_v27, %v8443_v31  ;;  %v1268_v27 = vmul.f32 %v8373_v44, %v8443_v31 }
 0x133   : > { %v1264_v3 = vmul.f32 %v8267_v12, %v8443_v31  ;;  %v1646_v12 = vld [vmem:[%s11724_s4 + $0x50] sm:$0xff]  ;;  %1696 = vmatpush1.msra.mxu1 %v1648_v28 }
 0x134   : > { %v8461_v61 = vpop.permute.xlu0 %1007 }
 0x135   : > { %v8430_v19 = vpop.permute.xlu1 %1449 }
 0x136   : > { %1420 = vrot.lane.b32.xlu0 %v1400_v11, %s11748_s20  ;;  %1154 = vrot.lane.b32.xlu1 %v1135_v14, %s11748_s20 }
 0x138   : > { %v8475_v2 = vpop.permute.xlu0 %1012 }
 0x13a   : > { %1162 = vrot.lane.b32.xlu0 %v1139_v20, %s11748_s20  ;;  %1414 = vrot.lane.b32.xlu1 %v1397_v24, %s11748_s20  ;;  %v8445_v36 = vpop.permute.xlu1 %1577  ;;  %v1647_v20 = vld [vmem:[%s11724_s4 + $0x58] sm:$0xff] }
 0x13b   : > { %1697 = vmatprep.subr.mxu1 %v1647_v20 }
 0x13c   : > { %v8489_v11 = vpop.permute.xlu0 %1017  ;;  %1698 = vmatpush1.msra.mxu1 %v1646_v12 }
 0x13e   : > { %1422 = vrot.lane.b32.xlu0 %v1401_v37, %s11748_s20  ;;  %1156 = vrot.lane.b32.xlu1 %v1136_v49, %s11748_s20  ;;  %v1265_v37 = vmul.f32 %v8355_v40, %v8443_v31  ;;  %v1645_v49 = vld [vmem:[%s11724_s4 + $0x48] sm:$0xff]  ;;  %v11753_v40 = vmov 0.0  }
 0x13f   : > { %v8466_v62 = vpop.permute.xlu1 %1074  ;;  %1699 = vmatprep.subr.mxu1 %v1645_v49  ;;  %1741 = vmatprep.mubr.f32.mxu1 %v11753_v40 }
 0x140   : > { %v8515_v44 = vpop.permute.xlu0 %1069  ;;  %1700 = vmatpush1.msra.mxu1 %v1644_v25 }
 0x141   : > { %1701 = vmatprep.subr.mxu1 %v1643_v32 }
 0x142   : > { %1416 = vrot.lane.b32.xlu1 %v1398_v42, %s11748_s20  ;;  %1284 = vrot.lane.b32.xlu0 %v1266_v38, %s11748_s20  ;;  %v1642_v38 = vld [vmem:[%s11724_s4 + $0x30] sm:$0xff] }
 0x143   : > { %1702 = vmatpush1.msra.mxu1 %v1642_v38 }
 0x144   : > { %v8477_v5 = vpop.permute.xlu1 %1197  ;;  %v8541_v56 = vpop.permute.xlu0 %1027  ;;  %1703 = vmatprep.subr.mxu1 %v1641_v47 }
 0x146   : > { %1158 = vrot.lane.b32.xlu1 %v1137_v41, %s11748_s20  ;;  %1544 = vrot.lane.b32.xlu0 %v1528_v54, %s11748_s20  ;;  %v1640_v41 = vld [vmem:[%s11724_s4 + $0x20] sm:$0xff]  ;;  %v1402_v54 = vmul.f32 %v8398_v58, %v8408_v33  ;;  %v1637_v58 = vld [vmem:[%s11724_s4 + $0x8] sm:$0xff] }
 0x147   : > { %1704 = vmatpush1.msra.mxu1 %v1640_v41 }
 0x149   : > { %v8491_v14 = vpop.permute.xlu1 %1325 }
 0x14a   : > { %1418 = vrot.lane.b32.xlu1 %v1399_v7, %s11748_s20  ;;  %1286 = vrot.lane.b32.xlu0 %v1267_v8, %s11748_s20  ;;  %v1403_v7 = vmul.f32 %v8402_v63, %v8408_v33  ;;  %v1639_v8 = vld [vmem:[%s11724_s4 + $0x18] sm:$0xff]  ;;  %v8566_v63 = vpop.permute.xlu0 %1032 }
 0x14b   : > { %1705 = vmatprep.subr.mxu1 %v1639_v8 }
 0x14e   : > { %1160 = vrot.lane.b32.xlu1 %v1138_v30, %s11748_s20  ;;  %1546 = vrot.lane.b32.xlu0 %v1529_v6, %s11748_s20  ;;  %v8508_v24 = vpop.permute.xlu1 %1581  ;;  %v1269_v6 = vmul.f32 %v8333_v35, %v8443_v31  ;;  %v1531_v35 = vmul.f32 %v8428_v16, %v8464_v26  ;;  %v1038_v51 = vpop.permute.xlu0 %1037  ;;  %v1271_v16 = vmul.f32 %v8359_v15, %v8443_v31 }
 0x152   : > { %1288 = vrot.lane.b32.xlu0 %v1268_v27, %s11748_s20  ;;  %1280 = vrot.lane.b32.xlu1 %v1264_v3, %s11748_s20  ;;  %v1636_v27 = vld [vmem:[%s11724_s4] sm:$0xff]  ;;  %v1535_v3 = vmul.f32 %v8440_v21, %v8464_v26  ;;  %v1210_v20 = vpop.permute.xlu0 %1209  ;;  %v1532_v21 = vmul.f32 %v8353_v60, %v8464_v26  ;;  %v1534_v60 = vmul.f32 %v8371_v43, %v8464_v26 }
 0x153   : > { %v8533_v42 = vpop.permute.xlu1 %1079 }
 0x156   : > { %1548 = vrot.lane.b32.xlu0 %v1530_v29, %s11748_s20  ;;  %1282 = vrot.lane.b32.xlu1 %v1265_v37, %s11748_s20  ;;  %v8597_v29 = vpop.permute.xlu0 %1593 }
 0x158   : > { %v8558_v30 = vpop.permute.xlu1 %1201 }
 0x15a   : > { %1473 = vperm.xlu0 %7472, %v8131_v34   ;;  %1601 = vperm.xlu1 %7473, %v7985_v50   ;;  %v1638_v50 = vld [vmem:[%s11724_s4 + $0x10] sm:$0xff]  ;;  %v8605_v37 = vpop.permute.xlu0 %1313 }
 0x15b   : > { %1706 = vmatpush1.msra.mxu1 %v1638_v50  ;;  %v1046_v50 = vmul.f32 %v8405_v23, %v8475_v2  ;;  %v1216_v2 = vmul.f32 %v8443_v31, %v8383_v48  ;;  %v1219_v48 = vmul.f32 %v8443_v31, %v8420_v10 }
 0x15c   : > { %1707 = vmatprep.subr.mxu1 %v1637_v58  ;;  %v1044_v58 = vmul.f32 %v8405_v23, %v8376_v45 }
 0x15d   : > { %1708 = vmatpush1.msra.mxu1 %v1636_v27  ;;  %v1094_v27 = vadd.f32 %v8394_v55, %v1046_v50  ;;  %v1047_v55 = vmul.f32 %v8405_v23, %v8489_v11 }
 0x15e   : > { %1424 = vrot.lane.b32.xlu0 %v1402_v54, %s11748_s20  ;;  %1426 = vrot.lane.b32.xlu1 %v1403_v7, %s11748_s20  ;;  %v8612_v15 = vpop.permute.xlu0 %1321 }
 0x15f   : > { %7474 = vset.pattern.permute.xlu0 %v7509_v13  ;;  %7475 = vset.pattern.permute.xlu1 %v7507_v57  ;;  %v8576_v13 = vpop.permute.xlu1 %1329 }
 0x162   : > { %1605 = vperm.xlu0 %7474, %v8131_v34   ;;  %1290 = vrot.lane.b32.xlu1 %v1269_v6, %s11748_s20  ;;  %v1270_v34 = vmul.f32 %v8349_v39, %v8443_v31  ;;  %v1533_v39 = vmul.f32 %v8365_v18, %v8464_v26  ;;  %v8616_v32 = vpop.permute.xlu0 %1341 }
 0x163   : > { %v8585_v28 = vpop.permute.xlu1 %1585 }
 0x166   : > { %1558 = vrot.lane.b32.xlu0 %v1535_v3, %s11748_s20  ;;  %1550 = vrot.lane.b32.xlu1 %v1531_v35, %s11748_s20  ;;  %v8618_v47 = vpop.permute.xlu0 %1445  ;;  %v1092_v3 = vadd.f32 %v8379_v46, %v1044_v58  ;;  %v1045_v35 = vmul.f32 %v8405_v23, %v8461_v61 }
 0x167   : > { %7476 = vset.pattern.permute.xlu0 %v7507_v57  ;;  %v8592_v12 = vpop.permute.xlu1 %1084 }
 0x168   : > { %v1093_v45 = vadd.f32 %v8388_v52, %v1045_v35  ;;  %v1051_v52 = vmul.f32 %v8405_v23, %v1038_v51  ;;  %v1220_v51 = vmul.f32 %v8443_v31, %v8477_v5 }
 0x16a   : > { %1292 = vrot.lane.b32.xlu1 %v1270_v34, %s11748_s20  ;;  %v8622_v41 = vpop.permute.xlu0 %1453 }
 0x16c   : > { %v8600_v57 = vpop.permute.xlu1 %1205 }
 0x16e   : > { %1552 = vrot.lane.b32.xlu1 %v1532_v21, %s11748_s20  ;;  %v8626_v43 = vpop.permute.xlu0 %1457 }
 0x171   : > { %v8609_v49 = vpop.permute.xlu1 %1333 }
 0x172   : > { %1294 = vrot.lane.b32.xlu1 %v1271_v16, %s11748_s20  ;;  %v8636_v6 = vpop.permute.xlu0 %1461 }
 0x176   : > { %1554 = vrot.lane.b32.xlu1 %v1533_v39, %s11748_s20  ;;  %v8614_v25 = vpop.permute.xlu1 %1589 }
 0x17a   : > { %1556 = vrot.lane.b32.xlu1 %v1534_v60, %s11748_s20  ;;  %v1218_v60 = vmul.f32 %v8443_v31, %v8396_v4 }
 0x17b   : > { %v1090_v38 = vpop.permute.xlu1 %1089 }
 0x17c   : > { %v1099_v35 = vadd.f32 %v1090_v38, %v1051_v52 }
 0x180   : > { %v8620_v18 = vpop.permute.xlu1 %1337 }
 0x185   : > { %v8624_v54 = vpop.permute.xlu1 %1465 }
 0x189   : > { %v8628_v7 = vpop.permute.xlu1 %1469 }
 0x18e   : > { %v8630_v8 = vpop.permute.xlu1 %1597 }
 0x1a0   : > { %v1153_v34 = vpop.permute.xlu0 %1152  ;;  %v1149_v21 = vpop.permute.xlu1 %1148 }
 0x1a1   : > { %v1174_v16 = vadd.f32 %v1153_v34, %v1094_v27  ;;  %v1172_v39 = vadd.f32 %v1149_v21, %v1092_v3  ;;  %v1217_v27 = vmul.f32 %v8443_v31, %v8392_v53  ;;  %v1095_v3 = vadd.f32 %v8515_v44, %v1047_v55 }
 0x1a2   : > { %v1048_v53 = vmul.f32 %v8405_v23, %v8410_v1  ;;  %v1223_v44 = vmul.f32 %v8443_v31, %v1210_v20  ;;  %v1049_v1 = vmul.f32 %v8405_v23, %v8541_v56 }
 0x1a3   : > { %v1226_v50 = vadd.f32 %v1218_v60, %v1174_v16  ;;  %v1224_v46 = vadd.f32 %v1216_v2, %v1172_v39 }
 0x1a4   : > { %v1413_v58 = vpop.permute.xlu0 %1412  ;;  %v1151_v0 = vpop.permute.xlu1 %1150  ;;  %v1096_v2 = vadd.f32 %v8466_v62, %v1048_v53  ;;  %v1097_v20 = vadd.f32 %v8533_v42, %v1049_v1  ;;  %v1222_v42 = vmul.f32 %v8443_v31, %v8600_v57 }
 0x1a5   : > { %v1173_v61 = vadd.f32 %v1151_v0, %v1093_v45  ;;  %v7000_v53 = vpop.f32.mrf.mxu0 }
 0x1a7   : > { %v1225_v34 = vadd.f32 %v1217_v27, %v1173_v61 }
 0x1a8   : > { %v8652_v4 = vpop.permute.xlu0 %1420  ;;  %v1155_v21 = vpop.permute.xlu1 %1154 }
 0x1a9   : > { %v1175_v11 = vadd.f32 %v1155_v21, %v1095_v3 }
 0x1ab   : > { %v8657_v16 = vadd.f32 %v1219_v48, %v1175_v11  ;;  %v1221_v48 = vmul.f32 %v8443_v31, %v8558_v30  ;;  %v1480_v31 = vmul.f32 %v8464_v26, %v8618_v47 }
 0x1ac   : > { %v1163_v39 = vpop.permute.xlu0 %1162  ;;  %v1415_v0 = vpop.permute.xlu1 %1414 }
 0x1ad   : > { %v1179_v60 = vadd.f32 %v1163_v39, %v1099_v35  ;;  %v1050_v39 = vmul.f32 %v8405_v23, %v8566_v63  ;;  %v1348_v23 = vmul.f32 %v8408_v33, %v8605_v37  ;;  %v1482_v37 = vmul.f32 %v8464_v26, %v8622_v41 }
 0x1af   : > { %v8663_v45 = vadd.f32 %v1223_v44, %v1179_v60  ;;  %v1098_v60 = vadd.f32 %v8592_v12, %v1050_v39 }
 0x1b0   : > { %v8665_v55 = vpop.permute.xlu0 %1422  ;;  %v1157_v10 = vpop.permute.xlu1 %1156 }
 0x1b1   : > { %v1176_v38 = vadd.f32 %v1157_v10, %v1096_v2  ;;  %v7001_v2 = vpop.f32.mrf.mxu0 }
 0x1b2   : > { %v7002_v1 = vadd.f32 %v7001_v2, %v7000_v53 }
 0x1b3   : > { %v8669_v61 = vadd.f32 %v1220_v51, %v1176_v38 }
 0x1b4   : > { %v1417_v27 = vpop.permute.xlu1 %1416  ;;  %v1285_v3 = vpop.permute.xlu0 %1284 }
 0x1b5   : > { %v1306_v51 = vadd.f32 %v1285_v3, %v1226_v50  ;;  %v8692_v50 = vrot.slane %v7002_v1, %v8097_v22 }
 0x1b7   : > { %v1612_v47 = vmul.f32 %v8692_v50, %v8445_v36 }
 0x1b8   : > { %v1159_v21 = vpop.permute.xlu1 %1158  ;;  %v1545_v62 = vpop.permute.xlu0 %1544 }
 0x1b9   : > { %v1177_v52 = vadd.f32 %v1159_v21, %v1097_v20  ;;  %v1350_v20 = vmul.f32 %v8408_v33, %v8612_v15 }
 0x1bb   : > { %v8676_v11 = vadd.f32 %v1221_v48, %v1177_v52  ;;  %v1358_v12 = vadd.f32 %v1350_v20, %v1306_v51  ;;  %v1349_v52 = vmul.f32 %v8408_v33, %v8400_v59  ;;  %v1613_v59 = vmul.f32 %v8692_v50, %v8508_v24 }
 0x1bc   : > { %v1419_v35 = vpop.permute.xlu1 %1418  ;;  %v1287_v5 = vpop.permute.xlu0 %1286  ;;  %v1351_v24 = vmul.f32 %v8408_v33, %v8491_v14  ;;  %v1483_v14 = vmul.f32 %v8464_v26, %v8626_v43  ;;  %v1484_v43 = vmul.f32 %v8464_v26, %v8636_v6 }
 0x1bd   : > { %v1438_v53 = vadd.f32 %v1417_v27, %v1358_v12  ;;  %v1307_v36 = vadd.f32 %v1287_v5, %v8657_v16 }
 0x1bf   : > { %v1490_v2 = vadd.f32 %v1482_v37, %v1438_v53 }
 0x1c0   : > { %v1161_v44 = vpop.permute.xlu1 %1160  ;;  %v1547_v10 = vpop.permute.xlu0 %1546 }
 0x1c1   : > { %v1178_v56 = vadd.f32 %v1161_v44, %v1098_v60 }
 0x1c3   : > { %v8683_v30 = vadd.f32 %v1222_v42, %v1178_v56 }
 0x1c4   : > { %v1281_v38 = vpop.permute.xlu1 %1280  ;;  %v1289_v48 = vpop.permute.xlu0 %1288 }
 0x1c5   : > { %v1304_v63 = vadd.f32 %v1281_v38, %v1224_v46  ;;  %v1481_v46 = vmul.f32 %v8464_v26, %v8430_v19  ;;  %v1614_v19 = vmul.f32 %v8692_v50, %v8585_v28  ;;  %v1308_v16 = vadd.f32 %v1289_v48, %v8669_v61 }
 0x1c7   : > { %v1356_v21 = vadd.f32 %v1348_v23, %v1304_v63  ;;  %v1352_v63 = vmul.f32 %v8408_v33, %v8576_v13  ;;  %v1353_v13 = vmul.f32 %v8408_v33, %v8609_v49  ;;  %v1616_v49 = vmul.f32 %v8692_v50, %v8597_v29 }
 0x1c8   : > { %v1283_v57 = vpop.permute.xlu1 %1282  ;;  %v1549_v56 = vpop.permute.xlu0 %1548 }
 0x1c9   : > { %v1436_v3 = vadd.f32 %v1413_v58, %v1356_v21  ;;  %v1305_v39 = vadd.f32 %v1283_v57, %v1225_v34  ;;  %v1570_v27 = vadd.f32 %v1549_v56, %v1490_v2  ;;  %v1360_v12 = vadd.f32 %v1352_v63, %v1308_v16 }
 0x1ca   : > { %v1615_v57 = vmul.f32 %v8692_v50, %v8614_v25 }
 0x1cb   : > { %v1488_v15 = vadd.f32 %v1480_v31, %v1436_v3  ;;  %v1357_v60 = vadd.f32 %v1349_v52, %v1305_v39  ;;  %v1440_v48 = vadd.f32 %v8652_v4, %v1360_v12  ;;  %v1354_v4 = vmul.f32 %v8408_v33, %v8620_v18 }
 0x1cd   : > { %v1568_v44 = vadd.f32 %v1545_v62, %v1488_v15  ;;  %v1437_v42 = vadd.f32 %v1415_v0, %v1357_v60  ;;  %v1622_v0 = vadd.f32 %v1614_v19, %v1570_v27  ;;  %v1492_v25 = vadd.f32 %v1484_v43, %v1440_v48 }
 0x1cf   : > { %v1620_v58 = vadd.f32 %v1612_v47, %v1568_v44  ;;  %v1489_v51 = vadd.f32 %v1481_v46, %v1437_v42  ;;  %v8719_v28 = vmax.f32 %v1622_v0, 0.0  ;;  %v1485_v42 = vmul.f32 %v8464_v26, %v8624_v54 }
 0x1d0   : > { %v1617_v54 = vmul.f32 %v8692_v50, %v8630_v8 }
 0x1d1   : > { %v8704_v34 = vmax.f32 %v1620_v58, 0.0  ;;  %v1569_v41 = vadd.f32 %v1547_v10, %v1489_v51  ;;  %v1359_v10 = vadd.f32 %v1351_v24, %v1307_v36  ;;  %v1355_v58 = vmul.f32 %v8408_v33, %v8616_v32 }
 0x1d3   : > { %v1621_v62 = vadd.f32 %v1613_v59, %v1569_v41  ;;  %6763 = vmatmul.mubr.msk.f32.vlgmr.msra.gmra.mxu1 %vm1652_vm0, %v8704_v34  ;;  %v1439_v5 = vadd.f32 %v1419_v35, %v1359_v10 }
 0x1d4   : > { %1747 = vmatprep.mubr.f32.mxu1 %v11753_v40 }
 0x1d5   : > { %v8712_v38 = vmax.f32 %v1621_v62, 0.0  ;;  %v1602_v1 = vpop.permute.xlu1 %1601  ;;  %v1491_v21 = vadd.f32 %v1483_v14, %v1439_v5  ;;  %v1474_v52 = vpop.permute.xlu0 %1473 }
 0x1d6   : > { %v1487_v33 = vmul.f32 %v8464_v26, %v1474_v52  ;;  %v1618_v24 = vmul.f32 %v8692_v50, %v1602_v1 }
 0x1d7   : > { %6764 = vmatmul.mubr.msk.f32.gmra.mxu1 %vm1652_vm0, %v8712_v38 }
 0x1d8   : > { %1753 = vmatprep.mubr.f32.mxu1 %v11753_v40 }
 0x1d9   : > { %v1427_v20 = vpop.permute.xlu1 %1426 }
 0x1db   : > { %6765 = vmatmul.mubr.msk.f32.gmra.mxu1 %vm1652_vm0, %v8719_v28 }
 0x1dc   : > { %1759 = vmatprep.mubr.f32.mxu1 %v11753_v40 }
 0x1dd   : > { %v1291_v23 = vpop.permute.xlu1 %1290 }
 0x1de   : > { %v1309_v61 = vadd.f32 %v1291_v23, %v8676_v11  ;;  %v1425_v11 = vpop.permute.xlu0 %1424 }
 0x1e0   : > { %v1361_v53 = vadd.f32 %v1353_v13, %v1309_v61  ;;  %v1967_v13 = vld [vmem:[%s11725_s5 + $0x8] sm:$0xff] }
 0x1e1   : > { %v1551_v31 = vpop.permute.xlu1 %1550 }
 0x1e2   : > { %v1571_v3 = vadd.f32 %v1551_v31, %v1491_v21  ;;  %v1441_v47 = vadd.f32 %v8665_v55, %v1361_v53  ;;  %v1606_v18 = vpop.permute.xlu0 %1605  ;;  %v1486_v55 = vmul.f32 %v8464_v26, %v8628_v7  ;;  %v1969_v53 = vld [vmem:[%s11725_s5 + $0x18] sm:$0xff] }
 0x1e3   : > { %v1619_v5 = vmul.f32 %v8692_v50, %v1606_v18  ;;  %2171 = vmatprep.mubr.f32.mxu0 %v1969_v53 }
 0x1e4   : > { %v1623_v35 = vadd.f32 %v1615_v57, %v1571_v3  ;;  %v1493_v29 = vadd.f32 %v1485_v42, %v1441_v47 }
 0x1e5   : > { %v1293_v39 = vpop.permute.xlu1 %1292 }
 0x1e6   : > { %v8737_v15 = vmax.f32 %v1623_v35, 0.0  ;;  %v1310_v60 = vadd.f32 %v1293_v39, %v8683_v30  ;;  %v1559_v36 = vpop.permute.xlu0 %1558 }
 0x1e8   : > { %6766 = vmatmul.mubr.msk.f32.gmra.mxu1 %vm1652_vm0, %v8737_v15  ;;  %v1362_v46 = vadd.f32 %v1354_v4, %v1310_v60 }
 0x1e9   : > { %v1553_v37 = vpop.permute.xlu1 %1552  ;;  %1765 = vmatprep.mubr.f32.mxu1 %v11753_v40 }
 0x1ea   : > { %v1572_v6 = vadd.f32 %v1553_v37, %v1492_v25  ;;  %v1442_v59 = vadd.f32 %v1425_v11, %v1362_v46  ;;  %v1986_v11 = vld [vmem:[%s11726_s6] sm:$0xff]  ;;  %v1987_v37 = vld [vmem:[%s11726_s6 + $0x8] sm:$0xff] }
 0x1ec   : > { %v1624_v44 = vadd.f32 %v1616_v49, %v1572_v6  ;;  %v1494_v62 = vadd.f32 %v1486_v55, %v1442_v59  ;;  %v1988_v6 = vld [vmem:[%s11726_s6 + $0x10] sm:$0xff] }
 0x1ed   : > { %v1295_v30 = vpop.permute.xlu1 %1294 }
 0x1ee   : > { %v8750_v56 = vmax.f32 %v1624_v44, 0.0  ;;  %v1311_v2 = vadd.f32 %v1295_v30, %v8663_v45  ;;  %v1989_v44 = vld [vmem:[%s11726_s6 + $0x18] sm:$0xff] }
 0x1f0   : > { %v1363_v51 = vadd.f32 %v1355_v58, %v1311_v2  ;;  %6767 = vmatmul.mubr.msk.f32.gmra.mxu1 %vm1652_vm0, %v8750_v56 }
 0x1f1   : > { %v1555_v27 = vpop.permute.xlu1 %1554  ;;  %1771 = vmatprep.mubr.f32.mxu1 %v11753_v40 }
 0x1f2   : > { %v1443_v32 = vadd.f32 %v1427_v20, %v1363_v51  ;;  %v1573_v45 = vadd.f32 %v1555_v27, %v1493_v29 }
 0x1f4   : > { %v1495_v41 = vadd.f32 %v1487_v33, %v1443_v32  ;;  %v1625_v19 = vadd.f32 %v1617_v54, %v1573_v45 }
 0x1f5   : > { %v1557_v0 = vpop.permute.xlu1 %1556 }
 0x1f6   : > { %v1575_v10 = vadd.f32 %v1559_v36, %v1495_v41  ;;  %v8764_v16 = vmax.f32 %v1625_v19, 0.0  ;;  %v1574_v7 = vadd.f32 %v1557_v0, %v1494_v62 }
 0x1f8   : > { %v1626_v23 = vadd.f32 %v1618_v24, %v1574_v7  ;;  %6768 = vmatmul.mubr.msk.f32.gmra.mxu1 %vm1652_vm0, %v8764_v16  ;;  %v1627_v26 = vadd.f32 %v1619_v5, %v1575_v10 }
 0x1f9   : > { %1777 = vmatprep.mubr.f32.mxu1 %v11753_v40 }
 0x1fa   : > { %v8770_v8 = vmax.f32 %v1626_v23, 0.0  ;;  %v8775_v1 = vmax.f32 %v1627_v26, 0.0 }
 0x1fc   : > { %6769 = vmatmul.mubr.msk.f32.gmra.mxu1 %vm1652_vm0, %v8770_v8  ;;  %11840 = vst [vmem:[#allocation6_spill] sm:$0xff] %v8775_v1 }
 0x1fd   : > { %1783 = vmatprep.mubr.f32.mxu1 %v11753_v40 }
 0x200   : > { %6770 = vmatmul.mubr.msk.f32.gmra.mxu1 %vm1652_vm0, %v8775_v1 }
 0x201   : > { %2086 = vmatprep.mubr.f32.mxu1 %v1967_v13 }
 0x293   : > { %v8779_v50 = vpop.f32.mrf.mxu1 }
 0x294   : > { %1942 = vrot.lane.b32.xlu1 %v8779_v50, %s7514_s25  ;;  %1846 = vrot.lane.b32.xlu0 %v8779_v50, %s11746_s1 }
 0x295   : > { %v8785_v20 = vpop.f32.mrf.mxu1 }
 0x297   : > { %v8787_v14 = vpop.f32.mrf.mxu1 }
 0x298   : > { %1894 = vrot.lane.b32.xlu1 %v8779_v50, %s11750_s23  ;;  %1798 = vrot.lane.b32.xlu0 %v8779_v50, %s7517_s27 }
 0x299   : > { %v8793_v63 = vpop.f32.mrf.mxu1 }
 0x29b   : > { %v8795_v12 = vpop.f32.mrf.mxu1 }
 0x29c   : > { %1848 = vrot.lane.b32.xlu0 %v8787_v14, %s11746_s1  ;;  %1946 = vrot.lane.b32.xlu1 %v8795_v12, %s7514_s25 }
 0x29d   : > { %v8807_v21 = vpop.f32.mrf.mxu1 }
 0x2a0   : > { %1800 = vrot.lane.b32.xlu0 %v8787_v14, %s7517_s27  ;;  %1898 = vrot.lane.b32.xlu1 %v8795_v12, %s11750_s23 }
 0x2a4   : > { %1944 = vrot.lane.b32.xlu0 %v8787_v14, %s7514_s25 }
 0x2a8   : > { %1896 = vrot.lane.b32.xlu0 %v8787_v14, %s11750_s23  ;;  %v8811_v31 = vpop.f32.mrf.mxu1 }
 0x2a9   : > { %1948 = vrot.lane.b32.xlu1 %v8811_v31, %s7514_s25 }
 0x2aa   : > { %v8819_v57 = vpop.f32.mrf.mxu1 }
 0x2ac   : > { %1850 = vrot.lane.b32.xlu0 %v8795_v12, %s11746_s1 }
 0x2ad   : > { %1900 = vrot.lane.b32.xlu1 %v8811_v31, %s11750_s23 }
 0x2b0   : > { %1802 = vrot.lane.b32.xlu0 %v8795_v12, %s7517_s27  ;;  %v8823_v3 = vpop.f32.mrf.mxu1 }
 0x2b1   : > { %1950 = vrot.lane.b32.xlu1 %v8823_v3, %s7514_s25 }
 0x2b2   : > { %v8835_v52 = vpop.f32.mrf.mxu1 }
 0x2b4   : > { %1852 = vrot.lane.b32.xlu0 %v8811_v31, %s11746_s1 }
 0x2b5   : > { %1902 = vrot.lane.b32.xlu1 %v8823_v3, %s11750_s23 }
 0x2b8   : > { %1804 = vrot.lane.b32.xlu0 %v8811_v31, %s7517_s27  ;;  %v8837_v61 = vpop.f32.mrf.mxu1 }
 0x2b9   : > { %1830 = vrot.lane.b32.xlu1 %v8823_v3, %s7518_s28 }
 0x2ba   : > { %v8847_v35 = vpop.f32.mrf.mxu1 }
 0x2bc   : > { %1828 = vrot.lane.b32.xlu0 %v8811_v31, %s7518_s28  ;;  %v8853_v48 = vpop.f32.mrf.mxu1 }
 0x2bd   : > { %1856 = vrot.lane.b32.xlu1 %v8837_v61, %s11746_s1 }
 0x2be   : > { %v8863_v39 = vpop.f32.mrf.mxu1 }
 0x2c0   : > { %1854 = vrot.lane.b32.xlu0 %v8823_v3, %s11746_s1  ;;  %v8869_v43 = vpop.f32.mrf.mxu1 }
 0x2c1   : > { %1952 = vrot.lane.b32.xlu1 %v8837_v61, %s7514_s25 }
 0x2c4   : > { %1806 = vrot.lane.b32.xlu0 %v8823_v3, %s7517_s27 }
 0x2c5   : > { %1904 = vrot.lane.b32.xlu1 %v8837_v61, %s11750_s23 }
 0x2c8   : > { %1808 = vrot.lane.b32.xlu0 %v8837_v61, %s7517_s27 }
 0x2c9   : > { %1858 = vrot.lane.b32.xlu1 %v8853_v48, %s11746_s1 }
 0x2cc   : > { %1832 = vrot.lane.b32.xlu0 %v8837_v61, %s7518_s28 }
 0x2cd   : > { %1954 = vrot.lane.b32.xlu1 %v8853_v48, %s7514_s25 }
 0x2d0   : > { %1810 = vrot.lane.b32.xlu0 %v8853_v48, %s7517_s27 }
 0x2d1   : > { %1906 = vrot.lane.b32.xlu1 %v8853_v48, %s11750_s23 }
 0x2d4   : > { %1812 = vrot.lane.b32.xlu0 %v8869_v43, %s7517_s27 }
 0x2d5   : > { %1834 = vrot.lane.b32.xlu1 %v8853_v48, %s7518_s28 }
 0x2d8   : > { %1928 = vrot.lane.b32.xlu0 %v8837_v61, %s7519_s29 }
 0x2d9   : > { %1930 = vrot.lane.b32.xlu1 %v8853_v48, %s7519_s29 }
 0x2dc   : > { %1880 = vrot.lane.b32.xlu0 %v8837_v61, %s11748_s20 }
 0x2dd   : > { %1860 = vrot.lane.b32.xlu1 %v8869_v43, %s11746_s1  ;;  %s7522_s1 = smov 120  }
 0x2e0   : > { %1824 = vrot.lane.b32.xlu0 %v8787_v14, %s7518_s28 }
 0x2e1   : > { %1956 = vrot.lane.b32.xlu1 %v8869_v43, %s7514_s25 }
 0x2e4   : > { %1924 = vrot.lane.b32.xlu0 %v8811_v31, %s7519_s29 }
 0x2e5   : > { %1908 = vrot.lane.b32.xlu1 %v8869_v43, %s11750_s23  ;;  %s7523_s23 = smov 104  }
 0x2e8   : > { %1836 = vrot.lane.b32.xlu0 %v8869_v43, %s7518_s28 }
 0x2e9   : > { %1882 = vrot.lane.b32.xlu1 %v8853_v48, %s11748_s20 }
 0x2ec   : > { %1932 = vrot.lane.b32.xlu0 %v8869_v43, %s7519_s29 }
 0x2ed   : > { %1826 = vrot.lane.b32.xlu1 %v8795_v12, %s7518_s28 }
 0x2f0   : > { %1884 = vrot.lane.b32.xlu0 %v8869_v43, %s11748_s20 }
 0x2f1   : > { %1926 = vrot.lane.b32.xlu1 %v8823_v3, %s7519_s29 }
 0x2f4   : > { %1876 = vrot.lane.b32.xlu0 %v8811_v31, %s11748_s20 }
 0x2f5   : > { %1878 = vrot.lane.b32.xlu1 %v8823_v3, %s11748_s20 }
 0x2f8   : > { %1874 = vrot.lane.b32.xlu0 %v8795_v12, %s11748_s20 }
 0x2f9   : > { %1822 = vrot.lane.b32.xlu1 %v8779_v50, %s7518_s28 }
 0x2fc   : > { %1872 = vrot.lane.b32.xlu0 %v8787_v14, %s11748_s20 }
 0x2fd   : > { %1922 = vrot.lane.b32.xlu1 %v8795_v12, %s7519_s29 }
 0x300   : > { %1870 = vrot.lane.b32.xlu0 %v8779_v50, %s11748_s20  ;;  %s7521_s20 = smov 100  }
 0x301   : > { %1920 = vrot.lane.b32.xlu1 %v8787_v14, %s7519_s29 }
 0x304   : > { %1997 = vperm.xlu0 %7476, %v1987_v37  }
 0x305   : > { %1918 = vrot.lane.b32.xlu1 %v8779_v50, %s7519_s29 }
 0x306   : > { %v8927_v60 = vpop.permute.xlu1 %1942  ;;  %v8929_v25 = vpop.permute.xlu0 %1846 }
 0x309   : > { %1992 = vperm.xlu1 %7475, %v1986_v11  }
 0x30a   : > { %v8937_v4 = vpop.permute.xlu0 %1798  ;;  %v8942_v49 = vpop.permute.xlu1 %1894 }
 0x30d   : > { %2002 = vperm.xlu1 %7475, %v1988_v6  }
 0x30e   : > { %v1849_v46 = vpop.permute.xlu0 %1848  ;;  %v8947_v47 = vpop.permute.xlu1 %1946 }
 0x311   : > { %2007 = vperm.xlu1 %7475, %v1989_v44  }
 0x312   : > { %v1801_v30 = vpop.permute.xlu0 %1800  ;;  %v8951_v58 = vpop.permute.xlu1 %1898 }
 0x316   : > { %v8949_v42 = vpop.permute.xlu0 %1944 }
 0x31a   : > { %v8953_v2 = vpop.permute.xlu0 %1896 }
 0x31b   : > { %v1949_v18 = vpop.permute.xlu1 %1948 }
 0x31e   : > { %v1851_v51 = vpop.permute.xlu0 %1850 }
 0x31f   : > { %v1901_v29 = vpop.permute.xlu1 %1900 }
 0x322   : > { %v1803_v59 = vpop.permute.xlu0 %1802 }
 0x323   : > { %v1951_v55 = vpop.permute.xlu1 %1950 }
 0x326   : > { %v1853_v27 = vpop.permute.xlu0 %1852 }
 0x327   : > { %v1903_v54 = vpop.permute.xlu1 %1902 }
 0x32a   : > { %v1805_v33 = vpop.permute.xlu0 %1804 }
 0x32b   : > { %v8955_v32 = vpop.permute.xlu1 %1830 }
 0x32e   : > { %v8957_v45 = vpop.permute.xlu0 %1828 }
 0x32f   : > { %v1857_v41 = vpop.permute.xlu1 %1856 }
 0x332   : > { %v1855_v19 = vpop.permute.xlu0 %1854 }
 0x333   : > { %v1953_v62 = vpop.permute.xlu1 %1952 }
 0x336   : > { %v1807_v36 = vpop.permute.xlu0 %1806 }
 0x337   : > { %v1905_v0 = vpop.permute.xlu1 %1904 }
 0x33a   : > { %v1809_v24 = vpop.permute.xlu0 %1808 }
 0x33b   : > { %v1859_v10 = vpop.permute.xlu1 %1858 }
 0x33e   : > { %v1833_v7 = vpop.permute.xlu0 %1832 }
 0x33f   : > { %v1955_v5 = vpop.permute.xlu1 %1954 }
 0x342   : > { %v1811_v23 = vpop.permute.xlu0 %1810 }
 0x343   : > { %v1907_v26 = vpop.permute.xlu1 %1906 }
 0x346   : > { %v1813_v13 = vpop.permute.xlu0 %1812 }
 0x347   : > { %v1835_v53 = vpop.permute.xlu1 %1834 }
 0x34a   : > { %v8959_v11 = vpop.permute.xlu0 %1928 }
 0x34b   : > { %v1931_v37 = vpop.permute.xlu1 %1930 }
 0x34e   : > { %v8961_v6 = vpop.permute.xlu0 %1880 }
 0x34f   : > { %v1861_v44 = vpop.permute.xlu1 %1860 }
 0x350   : > { %7003 = vmatprep.subr.mxu1 %v1861_v44 }
 0x351   : > { %7004 = vmatpush3.msra.mxu1 %v1813_v13 }
 0x352   : > { %v1825_v17 = vpop.permute.xlu0 %1824  ;;  %7005 = vmatprep.subr.mxu1 %v1859_v10 }
 0x353   : > { %7006 = vmatpush3.msra.mxu1 %v1811_v23  ;;  %v1957_v40 = vpop.permute.xlu1 %1956 }
 0x354   : > { %7007 = vmatprep.subr.mxu1 %v1857_v41  ;;  %7047 = vmatprep.subr.mxu0 %v1957_v40 }
 0x355   : > { %7008 = vmatpush3.msra.mxu1 %v1809_v24 }
 0x356   : > { %v1925_v22 = vpop.permute.xlu0 %1924  ;;  %7009 = vmatprep.subr.mxu1 %v1855_v19 }
 0x357   : > { %7010 = vmatpush3.msra.mxu1 %v1807_v36  ;;  %v1909_v9 = vpop.permute.xlu1 %1908 }
 0x358   : > { %7011 = vmatprep.subr.mxu1 %v1853_v27  ;;  %7048 = vmatpush3.msra.mxu0 %v1909_v9 }
 0x359   : > { %7012 = vmatpush3.msra.mxu1 %v1805_v33  ;;  %7049 = vmatprep.subr.mxu0 %v1955_v5 }
 0x35a   : > { %v1837_v1 = vpop.permute.xlu0 %1836  ;;  %7013 = vmatprep.subr.mxu1 %v1851_v51  ;;  %7050 = vmatpush3.msra.mxu0 %v1907_v26 }
 0x35b   : > { %7014 = vmatpush3.msra.mxu1 %v1803_v59  ;;  %7051 = vmatprep.subr.mxu0 %v1953_v62  ;;  %v1883_v13 = vpop.permute.xlu1 %1882  ;;  %v2281_v59 = vld [vmem:[%s11727_s7] sm:$0xff] }
 0x35c   : > { %7015 = vmatprep.subr.mxu1 %v1849_v46  ;;  %7052 = vmatpush3.msra.mxu0 %v1905_v0 }
 0x35d   : > { %7016 = vmatpush3.msra.mxu1 %v1801_v30  ;;  %7053 = vmatprep.subr.mxu0 %v1951_v55  ;;  %v1973_v30 = vld [vmem:[%s11725_s5 + $0x38] sm:$0xff] }
 0x35e   : > { %v1933_v40 = vpop.permute.xlu0 %1932  ;;  %7017 = vmatprep.subr.mxu1 %v8929_v25  ;;  %7054 = vmatpush3.msra.mxu0 %v1903_v54 }
 0x35f   : > { %7018 = vmatpush3.msra.mxu1 %v8937_v4  ;;  %7055 = vmatprep.subr.mxu0 %v1949_v18  ;;  %v1827_v9 = vpop.permute.xlu1 %1826  ;;  %v1976_v4 = vld [vmem:[%s11725_s5 + $0x50] sm:$0xff]  ;;  %v1985_v18 = vld [vmem:[%s11725_s5 + $0x98] sm:$0xff] }
 0x360   : > { %7019 = vmatprep.subr.mxu1 %v1837_v1  ;;  %7056 = vmatpush3.msra.mxu0 %v1901_v29  ;;  %v2282_v29 = vld [vmem:[%s11727_s7 + $0x8] sm:$0xff] }
 0x361   : > { %7020 = vmatpush3.msra.mxu1 %v8869_v43  ;;  %7057 = vmatprep.subr.mxu0 %v8947_v47  ;;  %v1974_v47 = vld [vmem:[%s11725_s5 + $0x40] sm:$0xff] }
 0x362   : > { %v1885_v51 = vpop.permute.xlu0 %1884  ;;  %7021 = vmatprep.subr.mxu1 %v1835_v53  ;;  %7058 = vmatpush3.msra.mxu0 %v8951_v58  ;;  %v1980_v58 = vld [vmem:[%s11725_s5 + $0x70] sm:$0xff] }
 0x363   : > { %7022 = vmatpush3.msra.mxu1 %v8853_v48  ;;  %7059 = vmatprep.subr.mxu0 %v8949_v42  ;;  %v1927_v25 = vpop.permute.xlu1 %1926  ;;  %v1975_v42 = vld [vmem:[%s11725_s5 + $0x48] sm:$0xff] }
 0x364   : > { %7023 = vmatprep.subr.mxu1 %v1833_v7  ;;  %7060 = vmatpush3.msra.mxu0 %v8953_v2  ;;  %v1984_v2 = vld [vmem:[%s11725_s5 + $0x90] sm:$0xff] }
 0x365   : > { %7024 = vmatpush3.msra.mxu1 %v8837_v61  ;;  %7061 = vmatprep.subr.mxu0 %v8927_v60 }
 0x366   : > { %7025 = vmatprep.subr.mxu1 %v8955_v32  ;;  %7062 = vmatpush3.msra.mxu0 %v8942_v49  ;;  %v1877_v1 = vpop.permute.xlu0 %1876 }
 0x367   : > { %7026 = vmatpush3.msra.mxu1 %v8823_v3  ;;  %7063 = vmatprep.subr.mxu0 %v1933_v40  ;;  %v1879_v43 = vpop.permute.xlu1 %1878  ;;  %v1966_v3 = vld [vmem:[%s11725_s5] sm:$0xff] }
 0x368   : > { %7027 = vmatprep.subr.mxu1 %v8957_v45  ;;  %7064 = vmatpush3.msra.mxu0 %v1885_v51 }
 0x369   : > { %7028 = vmatpush3.msra.mxu1 %v8811_v31  ;;  %7065 = vmatprep.subr.mxu0 %v1931_v37  ;;  %v1787_v31 = vpop.f32.mrf.mxu1 }
 0x36a   : > { %7029 = vmatprep.subr.mxu1 %v1827_v9  ;;  %7066 = vmatpush3.msra.mxu0 %v1883_v13  ;;  %v1875_v48 = vpop.permute.xlu0 %1874 }
 0x36b   : > { %7030 = vmatpush3.msra.mxu1 %v8795_v12  ;;  %7067 = vmatprep.subr.mxu0 %v8959_v11  ;;  %v1823_v61 = vpop.permute.xlu1 %1822 }
 0x36c   : > { %7031 = vmatprep.subr.mxu1 %v1825_v17  ;;  %7068 = vmatpush3.msra.mxu0 %v8961_v6  ;;  %v1972_v17 = vld [vmem:[%s11725_s5 + $0x30] sm:$0xff] }
 0x36d   : > { %7032 = vmatpush3.msra.mxu1 %v8787_v14  ;;  %7069 = vmatprep.subr.mxu0 %v1927_v25  ;;  %v1971_v14 = vld [vmem:[%s11725_s5 + $0x28] sm:$0xff] }
 0x36e   : > { %7033 = vmatprep.subr.mxu1 %v1823_v61  ;;  %7070 = vmatpush3.msra.mxu0 %v1879_v43  ;;  %v1873_v60 = vpop.permute.xlu0 %1872 }
 0x36f   : > { %7034 = vmatpush3.msra.mxu1 %v8779_v50  ;;  %7071 = vmatprep.subr.mxu0 %v1925_v22  ;;  %v1923_v12 = vpop.permute.xlu1 %1922  ;;  %v1977_v50 = vld [vmem:[%s11725_s5 + $0x58] sm:$0xff] }
 0x370   : > { %2087 = vmatmul.mubr.f32.vlgmr.msra.gmra.mxu1 %v1966_v3  ;;  %7072 = vmatpush3.msra.mxu0 %v1877_v1 }
 0x371   : > { %7293 = vmatprep.subr.mxu1 %v1787_v31  ;;  %7073 = vmatprep.subr.mxu0 %v1923_v12 }
 0x372   : > { %7294 = vmatpush3.msra.mxu1 %v1787_v31  ;;  %7074 = vmatpush3.msra.mxu0 %v1875_v48  ;;  %v1871_v46 = vpop.permute.xlu0 %1870 }
 0x373   : > { %7295 = vmatprep.subr.mxu1 %v8863_v39  ;;  %2091 = vmatprep.mubr.f32.mxu1 %v1972_v17  ;;  %v1921_v22 = vpop.permute.xlu1 %1920 }
 0x374   : > { %7296 = vmatpush3.msra.mxu1 %v8863_v39  ;;  %7075 = vmatprep.subr.mxu0 %v1921_v22  ;;  %v1968_v39 = vld [vmem:[%s11725_s5 + $0x10] sm:$0xff] }
 0x375   : > { %2092 = vmatmul.mubr.f32.gmra.mxu1 %v1971_v14  ;;  %7297 = vmatprep.subr.mxu1 %v8847_v35 }
 0x376   : > { %7076 = vmatpush3.msra.mxu0 %v1873_v60  ;;  %7298 = vmatpush3.msra.mxu1 %v8847_v35  ;;  %v1982_v35 = vld [vmem:[%s11725_s5 + $0x80] sm:$0xff] }
 0x377   : > { %7299 = vmatprep.subr.mxu1 %v8835_v52  ;;  %2096 = vmatprep.mubr.f32.mxu1 %v1977_v50  ;;  %v1919_v49 = vpop.permute.xlu1 %1918 }
 0x378   : > { %7300 = vmatpush3.msra.mxu1 %v8835_v52  ;;  %7077 = vmatprep.subr.mxu0 %v1919_v49  ;;  %v1981_v52 = vld [vmem:[%s11725_s5 + $0x78] sm:$0xff] }
 0x379   : > { %2097 = vmatmul.mubr.f32.gmra.mxu1 %v1976_v4  ;;  %7301 = vmatprep.subr.mxu1 %v8819_v57 }
 0x37a   : > { %7078 = vmatpush3.msra.mxu0 %v1871_v46  ;;  %7302 = vmatpush3.msra.mxu1 %v8819_v57  ;;  %v1970_v57 = vld [vmem:[%s11725_s5 + $0x20] sm:$0xff] }
 0x37b   : > { %2172 = vmatmul.mubr.f32.vlgmr.msra.gmra.mxu0 %v1968_v39  ;;  %7303 = vmatprep.subr.mxu1 %v8807_v21 }
 0x37c   : > { %2101 = vmatprep.mubr.f32.mxu1 %v1982_v35  ;;  %7304 = vmatpush3.msra.mxu1 %v8807_v21  ;;  %v1979_v21 = vld [vmem:[%s11725_s5 + $0x68] sm:$0xff] }
 0x37d   : > { %2102 = vmatmul.mubr.f32.gmra.mxu1 %v1981_v52  ;;  %7305 = vmatprep.subr.mxu1 %v8793_v63 }
 0x37e   : > { %2176 = vmatprep.mubr.f32.mxu0 %v1974_v47  ;;  %7306 = vmatpush3.msra.mxu1 %v8793_v63  ;;  %v1978_v63 = vld [vmem:[%s11725_s5 + $0x60] sm:$0xff] }
 0x37f   : > { %2177 = vmatmul.mubr.f32.gmra.mxu0 %v1973_v30  ;;  %7307 = vmatprep.subr.mxu1 %v8785_v20  ;;  %v1998_v10 = vpop.permute.xlu0 %1997 }
 0x380   : > { %7308 = vmatpush3.msra.mxu1 %v8785_v20  ;;  %7309 = vmatprep.mubr.msk.f32.mxu1 %vm1652_vm0, %v1970_v57  ;;  %v1983_v20 = vld [vmem:[%s11725_s5 + $0x88] sm:$0xff] }
 0x381   : > { %7310 = vmatmul.mubr.msk.f32.vlgmr.msra.gmra.mxu1 %vm1652_vm0, %v1975_v42  ;;  %2181 = vmatprep.mubr.f32.mxu0 %v1979_v21 }
 0x382   : > { %7312 = vmatprep.mubr.msk.f32.mxu1 %vm1652_vm0, %v1980_v58  ;;  %7315 = vmatprep.subr.mxu1 %v2282_v29 }
 0x383   : > { %2182 = vmatmul.mubr.f32.gmra.mxu0 %v1978_v63  ;;  %7316 = vmatpush3.msra.mxu1 %v2282_v29  ;;  %v2487_v29 = vld [vmem:[%s11729_s9] sm:$0xff] }
 0x384   : > { %2186 = vmatprep.mubr.f32.mxu0 %v1984_v2  ;;  %7317 = vmatprep.subr.mxu1 %v2281_v59  ;;  %v1993_v62 = vpop.permute.xlu1 %1992  ;;  %v2482_v2 = vld [vmem:[%s11728_s8 + $0x8] sm:$0xff] }
 0x385   : > { %7313 = vmatmul.mubr.msk.f32.gmra.mxu1 %vm1652_vm0, %v1985_v18  ;;  %v2483_v18 = vld [vmem:[%s11728_s8 + $0x10] sm:$0xff] }
 0x386   : > { %7318 = vmatpush3.msra.mxu1 %v2281_v59 }
 0x387   : > { %2187 = vmatmul.mubr.f32.gmra.mxu0 %v1983_v20  ;;  %v2488_v20 = vld [vmem:[%s11729_s9 + $0x8] sm:$0xff] }
 0x388   : > { %v2003_v53 = vpop.permute.xlu1 %2002  ;;  %2570 = vmatprep.mubr.f32.mxu0 %v2482_v2 }
 0x38c   : > { %v2008_v12 = vpop.permute.xlu1 %2007 }
 0x430   : > { %v7035_v55 = vpop.f32.mrf.mxu1 }
 0x432   : > { %v7036_v27 = vpop.f32.mrf.mxu1 }
 0x433   : > { %v7037_v19 = vadd.f32 %v7036_v27, %v7035_v55 }
 0x435   : > { %v7038_v54 = vpop.f32.mrf.mxu1  ;;  %v2089_v26 = vadd.f32 %v7037_v19, %v1993_v62 }
 0x437   : > { %v7039_v33 = vpop.f32.mrf.mxu1 }
 0x438   : > { %v7040_v24 = vadd.f32 %v7039_v33, %v7038_v54 }
 0x439   : > { %v7041_v32 = vpop.f32.mrf.mxu1 }
 0x43a   : > { %v2094_v44 = vadd.f32 %v7040_v24, %v1998_v10 }
 0x43b   : > { %v7042_v45 = vpop.f32.mrf.mxu1  ;;  %v7079_v41 = vpop.f32.mrf.mxu0 }
 0x43c   : > { %v7043_v11 = vadd.f32 %v7042_v45, %v7041_v32 }
 0x43d   : > { %v7044_v36 = vpop.f32.mrf.mxu1  ;;  %v7080_v0 = vpop.f32.mrf.mxu0 }
 0x43e   : > { %v7081_v7 = vadd.f32 %v7080_v0, %v7079_v41  ;;  %v2099_v43 = vadd.f32 %v7043_v11, %v2003_v53 }
 0x43f   : > { %v7045_v5 = vpop.f32.mrf.mxu1  ;;  %v7082_v23 = vpop.f32.mrf.mxu0 }
 0x440   : > { %v2174_v40 = vadd.f32 %v7081_v7, %v2089_v26  ;;  %v7046_v3 = vadd.f32 %v7045_v5, %v7044_v36 }
 0x441   : > { %v7083_v37 = vpop.f32.mrf.mxu0  ;;  %v7311_v6 = vpop.f32.mrf.mxu1 }
 0x442   : > { %v7084_v13 = vadd.f32 %v7083_v37, %v7082_v23  ;;  %v2104_v39 = vadd.f32 %v7046_v3, %v2008_v12  ;;  %v2484_v12 = vld [vmem:[%s11728_s8 + $0x18] sm:$0xff] }
 0x443   : > { %v7085_v9 = vpop.f32.mrf.mxu0  ;;  %v2258_v51 = vpop.f32.mrf.mxu1 }
 0x444   : > { %v2179_v25 = vadd.f32 %v7084_v13, %v2094_v44  ;;  %v2259_v1 = vadd.f32 %v2258_v51, %v2174_v40 }
 0x445   : > { %v7086_v61 = vpop.f32.mrf.mxu0  ;;  %v7314_v48 = vpop.f32.mrf.mxu1 }
 0x446   : > { %v2264_v31 = vadd.f32 %v7311_v6, %v2179_v25  ;;  %v9061_v17 = vmax.f32 %v2259_v1, 0.0  ;;  %v7087_v14 = vadd.f32 %v7086_v61, %v7085_v9  ;;  %v2481_v61 = vld [vmem:[%s11728_s8] sm:$0xff] }
 0x447   : > { %v7088_v60 = vpop.f32.mrf.mxu0  ;;  %v2268_v22 = vpop.f32.mrf.mxu1 }
 0x448   : > { %v9063_v50 = vmax.f32 %v2264_v31, 0.0  ;;  %7319 = vmatprep.mubr.msk.f32.mxu1 %vm2283_vm1, %v9061_v17  ;;  %v2184_v4 = vadd.f32 %v7087_v14, %v2099_v43  ;;  %v2486_v14 = vld [vmem:[%s11728_s8 + $0x28] sm:$0xff] }
 0x449   : > { %v7089_v49 = vpop.f32.mrf.mxu0 }
 0x44a   : > { %v7090_v46 = vadd.f32 %v7089_v49, %v7088_v60  ;;  %v2269_v35 = vadd.f32 %v2268_v22, %v2184_v4  ;;  %7320 = vmatmul.mubr.msk.f32.vlgmr.msra.gmra.mxu1 %vm2283_vm1, %v9063_v50  ;;  %v11841_v60 = vmov 0.0   ;;  %v2658_v22 = vld [vmem:[%s11730_s10] sm:$0xff] }
 0x44b   : > { %v2660_v4 = vcombine.high %v2658_v22, %v2658_v22 }
 0x44c   : > { %v2189_v52 = vadd.f32 %v7090_v46, %v2104_v39  ;;  %v9069_v47 = vmax.f32 %v2269_v35, 0.0 }
 0x44e   : > { %v2274_v30 = vadd.f32 %v7314_v48, %v2189_v52  ;;  %7322 = vmatprep.mubr.msk.f32.mxu1 %vm2283_vm1, %v9069_v47  ;;  %v2485_v48 = vld [vmem:[%s11728_s8 + $0x20] sm:$0xff] }
 0x450   : > { %v9073_v57 = vmax.f32 %v2274_v30, 0.0 }
 0x452   : > { %7323 = vmatmul.mubr.msk.f32.gmra.mxu1 %vm2283_vm1, %v9073_v57 }
 0x453   : > { %7333 = vmatprep.mubr.msk.f32.mxu1 %vm2499_vm2, %v2483_v18 }
 0x50a   : > { %v9077_v42 = vpop.f32.mrf.mxu1 }
 0x50b   : > { %2411 = vrot.lane.b32.xlu1 %v9077_v42, %s7520_s30  ;;  %2459 = vrot.lane.b32.xlu0 %v9077_v42, %s7521_s20 }
 0x50c   : > { %v9083_v21 = vpop.f32.mrf.mxu1 }
 0x50f   : > { %2399 = vrot.lane.b32.xlu1 %v9077_v42, %s7522_s1  ;;  %2447 = vrot.lane.b32.xlu0 %v9077_v42, %s7523_s23 }
 0x512   : > { %v9089_v58 = vpop.f32.mrf.mxu1 }
 0x513   : > { %2409 = vrot.lane.b32.xlu1 %v9083_v21, %s7520_s30  ;;  %2457 = vrot.lane.b32.xlu0 %v9083_v21, %s7521_s20 }
 0x514   : > { %v9097_v63 = vpop.f32.mrf.mxu1 }
 0x517   : > { %2397 = vrot.lane.b32.xlu1 %v9083_v21, %s7522_s1  ;;  %2445 = vrot.lane.b32.xlu0 %v9083_v21, %s7523_s23 }
 0x51b   : > { %2415 = vrot.lane.b32.xlu1 %v9089_v58, %s7520_s30  ;;  %2463 = vrot.lane.b32.xlu0 %v9089_v58, %s7521_s20 }
 0x51f   : > { %2403 = vrot.lane.b32.xlu1 %v9089_v58, %s7522_s1  ;;  %2451 = vrot.lane.b32.xlu0 %v9089_v58, %s7523_s23 }
 0x523   : > { %2391 = vrot.lane.b32.xlu1 %v9089_v58, %s7524_s0  ;;  %2439 = vrot.lane.b32.xlu0 %v9089_v58, %s7525_s22 }
 0x527   : > { %2413 = vrot.lane.b32.xlu1 %v9097_v63, %s7520_s30  ;;  %2461 = vrot.lane.b32.xlu0 %v9097_v63, %s7521_s20  ;;  %s11842_s30 = smov 48   ;;  %s11843_s20 = smov 64  }
 0x52b   : > { %2387 = vrot.lane.b32.xlu1 %v9077_v42, %s7524_s0  ;;  %2435 = vrot.lane.b32.xlu0 %v9077_v42, %s7525_s22 }
 0x52f   : > { %2401 = vrot.lane.b32.xlu1 %v9097_v63, %s7522_s1  ;;  %2449 = vrot.lane.b32.xlu0 %v9097_v63, %s7523_s23  ;;  %s11844_s1 = smov 80  }
 0x533   : > { %2385 = vrot.lane.b32.xlu1 %v9083_v21, %s7524_s0  ;;  %2433 = vrot.lane.b32.xlu0 %v9083_v21, %s7525_s22 }
 0x537   : > { %2389 = vrot.lane.b32.xlu1 %v9097_v63, %s7524_s0  ;;  %2437 = vrot.lane.b32.xlu0 %v9097_v63, %s7525_s22  ;;  %s12011_s0 = sshll.u32 %s12015_s21, 1 }
 0x538   : > { %s599_s24 = scalar_lea.vmem %s11739_s19, %s12011_s0 }
 0x53b   : > { %2475 = vrot.lane.b32.xlu1 %v9089_v58, %s7518_s28  ;;  %2427 = vrot.lane.b32.xlu0 %v9089_v58, %s7517_s27 }
 0x53f   : > { %2425 = vrot.lane.b32.xlu1 %v9097_v63, %s7517_s27  ;;  %2423 = vrot.lane.b32.xlu0 %v9077_v42, %s7517_s27 }
 0x543   : > { %2473 = vrot.lane.b32.xlu1 %v9097_v63, %s7518_s28  ;;  %2421 = vrot.lane.b32.xlu0 %v9083_v21, %s7517_s27 }
 0x547   : > { %2469 = vrot.lane.b32.xlu1 %v9083_v21, %s7518_s28  ;;  %2471 = vrot.lane.b32.xlu0 %v9077_v42, %s7518_s28 }
 0x54b   : > { %2496 = vperm.xlu1 %7475, %v2488_v20   ;;  %2491 = vperm.xlu0 %7476, %v2487_v29  }
 0x57d   : > { %v2412_v59 = vpop.permute.xlu1 %2411  ;;  %v2460_v55 = vpop.permute.xlu0 %2459 }
 0x581   : > { %v2400_v27 = vpop.permute.xlu1 %2399  ;;  %v2448_v54 = vpop.permute.xlu0 %2447 }
 0x585   : > { %v2410_v33 = vpop.permute.xlu1 %2409  ;;  %v2458_v32 = vpop.permute.xlu0 %2457 }
 0x589   : > { %v2398_v45 = vpop.permute.xlu1 %2397  ;;  %v2446_v41 = vpop.permute.xlu0 %2445 }
 0x58d   : > { %v2416_v19 = vpop.permute.xlu1 %2415  ;;  %v2464_v62 = vpop.permute.xlu0 %2463 }
 0x58e   : > { %7109 = vmatprep.subr.mxu0 %v2464_v62  ;;  %v2804_v62 = vld [vmem:[%s11732_s12 + $0x10] sm:$0xff] }
 0x58f   : > { %7110 = vmatpush3.msra.mxu0 %v2416_v19  ;;  %v2802_v19 = vld [vmem:[%s11732_s12] sm:$0xff] }
 0x591   : > { %v2404_v36 = vpop.permute.xlu1 %2403  ;;  %v2452_v0 = vpop.permute.xlu0 %2451 }
 0x595   : > { %v2392_v24 = vpop.permute.xlu1 %2391  ;;  %v2440_v10 = vpop.permute.xlu0 %2439 }
 0x599   : > { %v2414_v7 = vpop.permute.xlu1 %2413  ;;  %v2462_v5 = vpop.permute.xlu0 %2461 }
 0x59a   : > { %7111 = vmatprep.subr.mxu0 %v2462_v5 }
 0x59b   : > { %7112 = vmatpush3.msra.mxu0 %v2414_v7 }
 0x59c   : > { %7113 = vmatprep.subr.mxu0 %v2460_v55 }
 0x59d   : > { %v2388_v23 = vpop.permute.xlu1 %2387  ;;  %7114 = vmatpush3.msra.mxu0 %v2412_v59  ;;  %v2436_v26 = vpop.permute.xlu0 %2435 }
 0x59e   : > { %7115 = vmatprep.subr.mxu0 %v2458_v32  ;;  %v2803_v32 = vld [vmem:[%s11732_s12 + $0x8] sm:$0xff] }
 0x59f   : > { %7116 = vmatpush3.msra.mxu0 %v2410_v33 }
 0x5a0   : > { %7117 = vmatprep.subr.mxu0 %v2452_v0  ;;  %v9220_v0 = vld [vmem:[%s11733_s13 + $0x28] sm:$0xff] }
 0x5a1   : > { %v2402_v53 = vpop.permute.xlu1 %2401  ;;  %7118 = vmatpush3.msra.mxu0 %v2404_v36  ;;  %v2450_v11 = vpop.permute.xlu0 %2449  ;;  %v9215_v36 = vld [vmem:[%s11733_s13 + $0x30] sm:$0xff] }
 0x5a2   : > { %7119 = vmatprep.subr.mxu0 %v2450_v11 }
 0x5a3   : > { %7120 = vmatpush3.msra.mxu0 %v2402_v53 }
 0x5a4   : > { %7121 = vmatprep.subr.mxu0 %v2448_v54 }
 0x5a5   : > { %v2386_v37 = vpop.permute.xlu1 %2385  ;;  %7122 = vmatpush3.msra.mxu0 %v2400_v27  ;;  %v2434_v6 = vpop.permute.xlu0 %2433 }
 0x5a6   : > { %7123 = vmatprep.subr.mxu0 %v2446_v41  ;;  %v2805_v41 = vld [vmem:[%s11732_s12 + $0x18] sm:$0xff] }
 0x5a7   : > { %7124 = vmatpush3.msra.mxu0 %v2398_v45  ;;  %v2795_v45 = vld [vmem:[%s11731_s11 + $0x8] sm:$0xff] }
 0x5a8   : > { %7125 = vmatprep.subr.mxu0 %v2440_v10  ;;  %v9232_v10 = vld [vmem:[%s11733_s13] sm:$0xff] }
 0x5a9   : > { %v2390_v44 = vpop.permute.xlu1 %2389  ;;  %7126 = vmatpush3.msra.mxu0 %v2392_v24  ;;  %v2438_v13 = vpop.permute.xlu0 %2437  ;;  %v9226_v24 = vld [vmem:[%s11733_s13 + $0x8] sm:$0xff] }
 0x5aa   : > { %7127 = vmatprep.subr.mxu0 %v2438_v13 }
 0x5ab   : > { %7128 = vmatpush3.msra.mxu0 %v2390_v44 }
 0x5ac   : > { %7129 = vmatprep.subr.mxu0 %v2436_v26 }
 0x5ad   : > { %v2476_v40 = vpop.permute.xlu1 %2475  ;;  %7130 = vmatpush3.msra.mxu0 %v2388_v23  ;;  %v2428_v9 = vpop.permute.xlu0 %2427 }
 0x5ae   : > { %7131 = vmatprep.subr.mxu0 %v2434_v6  ;;  %7325 = vmatprep.subr.mxu1 %v2476_v40 }
 0x5af   : > { %7132 = vmatpush3.msra.mxu0 %v2386_v37  ;;  %7326 = vmatpush3.msra.mxu1 %v2476_v40 }
 0x5b0   : > { %7133 = vmatprep.subr.mxu0 %v2428_v9 }
 0x5b1   : > { %v2426_v51 = vpop.permute.xlu1 %2425  ;;  %7134 = vmatpush3.msra.mxu0 %v9089_v58  ;;  %v2424_v25 = vpop.permute.xlu0 %2423 }
 0x5b2   : > { %7135 = vmatprep.subr.mxu0 %v2426_v51 }
 0x5b3   : > { %7136 = vmatpush3.msra.mxu0 %v9097_v63 }
 0x5b4   : > { %7137 = vmatprep.subr.mxu0 %v2424_v25 }
 0x5b5   : > { %v2474_v1 = vpop.permute.xlu1 %2473  ;;  %7138 = vmatpush3.msra.mxu0 %v9077_v42  ;;  %v2422_v43 = vpop.permute.xlu0 %2421 }
 0x5b6   : > { %7139 = vmatprep.subr.mxu0 %v2422_v43  ;;  %7327 = vmatprep.subr.mxu1 %v2474_v1  ;;  %v2794_v43 = vld [vmem:[%s11731_s11] sm:$0xff] }
 0x5b7   : > { %7140 = vmatpush3.msra.mxu0 %v9083_v21  ;;  %7328 = vmatpush3.msra.mxu1 %v2474_v1 }
 0x5b8   : > { %2571 = vmatmul.mubr.f32.vlgmr.msra.gmra.mxu0 %v2481_v61  ;;  %2977 = vmatprep.subr.mxu0 %v9215_v36  ;;  %v2797_v61 = vld [vmem:[%s11731_s11 + $0x18] sm:$0xff] }
 0x5b9   : > { %v2472_v3 = vpop.permute.xlu0 %2471  ;;  %2575 = vmatprep.mubr.f32.mxu0 %v2485_v48  ;;  %v2470_v31 = vpop.permute.xlu1 %2469  ;;  %2978 = vmatpush1.msra.mxu0 %v9220_v0  ;;  %v2796_v48 = vld [vmem:[%s11731_s11 + $0x10] sm:$0xff] }
 0x5ba   : > { %7329 = vmatprep.subr.mxu1 %v2472_v3  ;;  %2979 = vmatprep.subr.mxu0 %v9226_v24 }
 0x5bb   : > { %7330 = vmatpush3.msra.mxu1 %v2472_v3  ;;  %2980 = vmatpush1.msra.mxu0 %v9232_v10  ;;  %v9271_v3 = vld [vmem:[%s11733_s13 + $0x48] sm:$0xff] }
 0x5bc   : > { %2576 = vmatmul.mubr.f32.gmra.mxu0 %v2484_v12  ;;  %7331 = vmatprep.subr.mxu1 %v2470_v31  ;;  %v2799_v12 = vld [vmem:[%s11731_s11 + $0x28] sm:$0xff] }
 0x5bd   : > { %7332 = vmatpush3.msra.mxu1 %v2470_v31  ;;  %3013 = vmatprep.mubr.f32.mxu0 %v11841_v60  ;;  %v2798_v31 = vld [vmem:[%s11731_s11 + $0x20] sm:$0xff] }
 0x5be   : > { %7334 = vmatmul.mubr.msk.f32.vlgmr.msra.gmra.mxu1 %vm2499_vm2, %v2486_v14  ;;  %6781 = vmatprep.subr.msk.mxu1 %vm2668_vm3, %v2660_v4  ;;  %v2801_v14 = vld [vmem:[%s11731_s11 + $0x38] sm:$0xff]  ;;  %v2931_v4 = vld [vmem:[%s11733_s13 + $0x20] sm:$0xff] }
 0x5bf   : > { %2737 = vmatprep.mubr.f32.mxu1 %v11841_v60  ;;  %6782 = vmatpush1.msk.msra.mxu1 %vm2668_vm3, %v2658_v22  ;;  %v2800_v22 = vld [vmem:[%s11731_s11 + $0x30] sm:$0xff] }
 0x5c0   : > { %2838 = vmatprep.subr.mxu1 %v11841_v60 }
 0x5c6   : > { %v2492_v52 = vpop.permute.xlu0 %2491  ;;  %v2497_v63 = vpop.permute.xlu1 %2496 }
 0x678   : > { %v7141_v49 = vpop.f32.mrf.mxu0 }
 0x67a   : > { %v7142_v39 = vpop.f32.mrf.mxu0 }
 0x67b   : > { %v7143_v46 = vadd.f32 %v7142_v39, %v7141_v49  ;;  %v9308_v49 = vld [vmem:[%s11733_s13 + $0x40] sm:$0xff] }
 0x67c   : > { %v7144_v35 = vpop.f32.mrf.mxu0  ;;  %3066 = vmatprep.subr.mxu0 %v9308_v49 }
 0x67d   : > { %v2573_v58 = vadd.f32 %v7143_v46, %v2492_v52 }
 0x67e   : > { %v7145_v30 = vpop.f32.mrf.mxu0  ;;  %v7335_v42 = vpop.f32.mrf.mxu1 }
 0x67f   : > { %v7146_v21 = vadd.f32 %v7145_v30, %v7144_v35 }
 0x680   : > { %v2647_v2 = vpop.f32.mrf.mxu1 }
 0x681   : > { %v2578_v18 = vadd.f32 %v7146_v21, %v2497_v63  ;;  %v2648_v20 = vadd.f32 %v2647_v2, %v2573_v58  ;;  %v2930_v63 = vld [vmem:[%s11733_s13 + $0x18] sm:$0xff] }
 0x683   : > { %v2653_v29 = vadd.f32 %v7335_v42, %v2578_v18  ;;  %v2656_v59 = vmax.f32 %v2648_v20, 0.0  ;;  %v2934_v42 = vld [vmem:[%s11733_s13 + $0x38] sm:$0xff]  ;;  %v2929_v18 = vld [vmem:[%s11733_s13 + $0x10] sm:$0xff] }
 0x685   : > { %6783 = vmatmul.mubr.msk.f32.vlgmr.msra.gmra.mxu1 %vm2661_vm4, %v2656_v59  ;;  %v2657_v55 = vmax.f32 %v2653_v29, 0.0 }
 0x686   : > { %2743 = vmatprep.mubr.f32.mxu1 %v11841_v60 }
 0x689   : > { %6784 = vmatmul.mubr.msk.f32.gmra.mxu1 %vm2661_vm4, %v2657_v55 }
 0x68a   : > { %6785 = vmatprep.mubr.msk.f32.mxu1 %vm2283_vm1, %v2795_v45 }
 0x745   : > { %v9162_v27 = vpop.f32.mrf.mxu1 }
 0x746   : > { %2788 = vrot.lane.b32.xlu1 %v9162_v27, %s7514_s25 }
 0x747   : > { %v9166_v54 = vpop.f32.mrf.mxu1 }
 0x749   : > { %v9168_v33 = vpop.f32.mrf.mxu1 }
 0x74a   : > { %2782 = vrot.lane.b32.xlu1 %v9162_v27, %s7519_s29  ;;  %2790 = vrot.lane.b32.xlu0 %v9168_v33, %s7514_s25 }
 0x74b   : > { %v2747_v1 = vpop.f32.mrf.mxu1 }
 0x74e   : > { %2776 = vrot.lane.b32.xlu1 %v9162_v27, %s11842_s30  ;;  %2784 = vrot.lane.b32.xlu0 %v9168_v33, %s7519_s29 }
 0x752   : > { %2770 = vrot.lane.b32.xlu1 %v9162_v27, %s11843_s20  ;;  %2778 = vrot.lane.b32.xlu0 %v9168_v33, %s11842_s30 }
 0x756   : > { %2764 = vrot.lane.b32.xlu1 %v9162_v27, %s11844_s1  ;;  %2772 = vrot.lane.b32.xlu0 %v9168_v33, %s11843_s20 }
 0x75a   : > { %2758 = vrot.lane.b32.xlu1 %v9162_v27, %s7518_s28  ;;  %2766 = vrot.lane.b32.xlu0 %v9168_v33, %s11844_s1 }
 0x75e   : > { %2752 = vrot.lane.b32.xlu1 %v9162_v27, %s7517_s27  ;;  %2760 = vrot.lane.b32.xlu0 %v9168_v33, %s7518_s28 }
 0x762   : > { %2813 = vperm.xlu1 %7475, %v2803_v32   ;;  %2754 = vrot.lane.b32.xlu0 %v9168_v33, %s7517_s27 }
 0x766   : > { %2823 = vperm.xlu1 %7475, %v2805_v41   ;;  %2808 = vperm.xlu0 %7476, %v2802_v19  }
 0x76a   : > { %2818 = vperm.xlu0 %7476, %v2804_v62  }
 0x7b8   : > { %v2789_v7 = vpop.permute.xlu1 %2788 }
 0x7bc   : > { %v2783_v5 = vpop.permute.xlu1 %2782  ;;  %v2791_v23 = vpop.permute.xlu0 %2790 }
 0x7bd   : > { %2839 = vmatpush1.msra.mxu1 %v2791_v23 }
 0x7be   : > { %2840 = vmatprep.subr.mxu1 %v11841_v60 }
 0x7bf   : > { %2841 = vmatpush1.msra.mxu1 %v2789_v7 }
 0x7c0   : > { %v2777_v26 = vpop.permute.xlu1 %2776  ;;  %2842 = vmatprep.subr.mxu1 %v11841_v60  ;;  %v2785_v53 = vpop.permute.xlu0 %2784 }
 0x7c1   : > { %2843 = vmatpush1.msra.mxu1 %v2785_v53 }
 0x7c2   : > { %2844 = vmatprep.subr.mxu1 %v11841_v60 }
 0x7c3   : > { %2845 = vmatpush1.msra.mxu1 %v2783_v5 }
 0x7c4   : > { %v2771_v11 = vpop.permute.xlu1 %2770  ;;  %2846 = vmatprep.subr.mxu1 %v11841_v60  ;;  %v2779_v37 = vpop.permute.xlu0 %2778 }
 0x7c5   : > { %2847 = vmatpush1.msra.mxu1 %v2779_v37 }
 0x7c6   : > { %2848 = vmatprep.subr.mxu1 %v11841_v60 }
 0x7c7   : > { %2849 = vmatpush1.msra.mxu1 %v2777_v26 }
 0x7c8   : > { %2850 = vmatprep.subr.mxu1 %v11841_v60  ;;  %v2773_v6 = vpop.permute.xlu0 %2772  ;;  %v2765_v44 = vpop.permute.xlu1 %2764 }
 0x7c9   : > { %2851 = vmatpush1.msra.mxu1 %v2773_v6 }
 0x7ca   : > { %2852 = vmatprep.subr.mxu1 %v11841_v60 }
 0x7cb   : > { %2853 = vmatpush1.msra.mxu1 %v2771_v11 }
 0x7cc   : > { %2854 = vmatprep.subr.mxu1 %v11841_v60  ;;  %v2767_v13 = vpop.permute.xlu0 %2766  ;;  %v2759_v40 = vpop.permute.xlu1 %2758 }
 0x7cd   : > { %2855 = vmatpush1.msra.mxu1 %v2767_v13 }
 0x7ce   : > { %2856 = vmatprep.subr.mxu1 %v11841_v60 }
 0x7cf   : > { %2857 = vmatpush1.msra.mxu1 %v2765_v44 }
 0x7d0   : > { %2858 = vmatprep.subr.mxu1 %v11841_v60  ;;  %v2761_v9 = vpop.permute.xlu0 %2760  ;;  %v2753_v25 = vpop.permute.xlu1 %2752 }
 0x7d1   : > { %2859 = vmatpush1.msra.mxu1 %v2761_v9 }
 0x7d2   : > { %2860 = vmatprep.subr.mxu1 %v11841_v60 }
 0x7d3   : > { %2861 = vmatpush1.msra.mxu1 %v2759_v40 }
 0x7d4   : > { %2862 = vmatprep.subr.mxu1 %v11841_v60  ;;  %v2755_v51 = vpop.permute.xlu0 %2754 }
 0x7d5   : > { %2863 = vmatpush1.msra.mxu1 %v2755_v51 }
 0x7d6   : > { %2864 = vmatprep.subr.mxu1 %v11841_v60 }
 0x7d7   : > { %2865 = vmatpush1.msra.mxu1 %v2753_v25 }
 0x7d8   : > { %2866 = vmatprep.subr.mxu1 %v11841_v60 }
 0x7d9   : > { %2867 = vmatpush1.msra.mxu1 %v9168_v33 }
 0x7da   : > { %2868 = vmatprep.subr.mxu1 %v11841_v60 }
 0x7db   : > { %2869 = vmatpush1.msra.mxu1 %v9162_v27 }
 0x7dc   : > { %2898 = vmatprep.subr.mxu1 %v11841_v60 }
 0x7dd   : > { %2899 = vmatpush2.msra.mxu1 %v2747_v1  ;;  %v2814_v21 = vpop.permute.xlu1 %2813 }
 0x7de   : > { %2900 = vmatprep.subr.mxu1 %v11841_v60 }
 0x7df   : > { %2901 = vmatpush2.msra.mxu1 %v9166_v54 }
 0x7e0   : > { %2903 = vmatmul.mubr.f32.vlgmr.msra.gmra.mxu1 %v2794_v43  ;;  %7384 = vmatprep.subr.mxu1 %v9215_v36 }
 0x7e1   : > { %6786 = vmatprep.mubr.msk.f32.mxu1 %vm2283_vm1, %v2797_v61  ;;  %7386 = vmatpush1.msra.mxu1 %v9220_v0  ;;  %v2809_v39 = vpop.permute.xlu0 %2808  ;;  %v2824_v32 = vpop.permute.xlu1 %2823 }
 0x7e2   : > { %7385 = vmatprep.subr.mxu1 %v9226_v24 }
 0x7e3   : > { %7387 = vmatpush1.msra.mxu1 %v9232_v10 }
 0x7e4   : > { %2908 = vmatmul.mubr.f32.gmra.mxu1 %v2796_v48  ;;  %7346 = vmatprep.subr.mxu1 %v9271_v3 }
 0x7e5   : > { %6787 = vmatprep.mubr.msk.f32.mxu1 %vm2283_vm1, %v2799_v12  ;;  %v2819_v59 = vpop.permute.xlu0 %2818 }
 0x7e8   : > { %2913 = vmatmul.mubr.f32.gmra.mxu1 %v2798_v31 }
 0x7e9   : > { %6788 = vmatprep.mubr.msk.f32.mxu1 %vm2283_vm1, %v2801_v14 }
 0x7ec   : > { %2918 = vmatmul.mubr.f32.gmra.mxu1 %v2800_v22 }
 0x7ed   : > { %3294 = vmatprep.mubr.f32.mxu1 %v11841_v60 }
 0x7f0   : > { %6804 = vmatmul.mubr.msk.f32.vlgmr.msra.gmra.mxu1 %vm2283_vm1, %v9073_v57 }
 0x7f1   : > { %7347 = vmatpush3.msra.mxu1 %v9271_v3  ;;  %7350 = vmatprep.mubr.msk.f32.mxu1 %vm2283_vm1, %v9061_v17 }
 0x7f2   : > { %7348 = vmatprep.subr.mxu1 %v2931_v4 }
 0x7f3   : > { %7349 = vmatpush3.msra.mxu1 %v2931_v4 }
 0x7f4   : > { %7351 = vmatmul.mubr.msk.f32.vlgmr.msra.gmra.mxu1 %vm2283_vm1, %v9063_v50 }
 0x7f5   : > { %7353 = vmatprep.mubr.msk.f32.mxu1 %vm2283_vm1, %v9069_v47 }
 0x7f8   : > { %7354 = vmatmul.mubr.msk.f32.gmra.mxu1 %vm2283_vm1, %v9073_v57 }
 0x8a0   : > { %v2904_v46 = vpop.f32.mrf.mxu1 }
 0x8a1   : > { %v2905_v35 = vadd.f32 %v2904_v46, %v2809_v39 }
 0x8a2   : > { %v2906_v52 = vpop.f32.mrf.mxu1 }
 0x8a3   : > { %v2923_v30 = vmax.f32 %v2905_v35, 0.0 }
 0x8a4   : > { %v2909_v58 = vpop.f32.mrf.mxu1 }
 0x8a5   : > { %v2910_v2 = vadd.f32 %v2909_v58, %v2814_v21  ;;  %6789 = vmatmul.mubr.msk.f32.vlgmr.msra.gmra.mxu0 %vm2283_vm1, %v2923_v30 }
 0x8a6   : > { %v2911_v20 = vpop.f32.mrf.mxu1  ;;  %3019 = vmatprep.mubr.f32.mxu0 %v11841_v60  ;;  %3067 = vmatpush1.msra.mxu0 %v2934_v42 }
 0x8a7   : > { %v2924_v29 = vmax.f32 %v2910_v2, 0.0  ;;  %3068 = vmatprep.subr.mxu0 %v2930_v63 }
 0x8a8   : > { %v2914_v55 = vpop.f32.mrf.mxu1  ;;  %3069 = vmatpush1.msra.mxu0 %v2929_v18 }
 0x8a9   : > { %v2915_v27 = vadd.f32 %v2914_v55, %v2819_v59  ;;  %6790 = vmatmul.mubr.msk.f32.gmra.mxu0 %vm2283_vm1, %v2924_v29  ;;  %7336 = vmatprep.subr.mxu0 %v9271_v3  ;;  %v3668_v59 = vld [vmem:[%s11735_s15 + $0x8] sm:$0xff]  ;;  %v3670_v55 = vld [vmem:[%s11735_s15 + $0x18] sm:$0xff] }
 0x8aa   : > { %v2916_v54 = vpop.f32.mrf.mxu1  ;;  %3025 = vmatprep.mubr.f32.mxu0 %v11841_v60 }
 0x8ab   : > { %v2925_v33 = vmax.f32 %v2915_v27, 0.0  ;;  %v3672_v27 = vld [vmem:[%s11735_s15 + $0x28] sm:$0xff]  ;;  %v3667_v54 = vld [vmem:[%s11735_s15] sm:$0xff] }
 0x8ac   : > { %v2919_v45 = vpop.f32.mrf.mxu1 }
 0x8ad   : > { %v2920_v41 = vadd.f32 %v2919_v45, %v2824_v32  ;;  %6791 = vmatmul.mubr.msk.f32.gmra.mxu0 %vm2283_vm1, %v2925_v33  ;;  %v3669_v32 = vld [vmem:[%s11735_s15 + $0x10] sm:$0xff]  ;;  %v3671_v45 = vld [vmem:[%s11735_s15 + $0x20] sm:$0xff] }
 0x8ae   : > { %v2921_v19 = vpop.f32.mrf.mxu1  ;;  %3031 = vmatprep.mubr.f32.mxu0 %v11841_v60 }
 0x8af   : > { %v2926_v62 = vmax.f32 %v2920_v41, 0.0  ;;  %v3673_v41 = vld [vmem:[%s11735_s15 + $0x30] sm:$0xff]  ;;  %v6266_v19 = vld [vmem:[#allocation2] sm:$0x1] }
 0x8b0   : > { %v9327_v7 = vpop.f32.mrf.mxu1 }
 0x8b1   : > { %6792 = vmatmul.mubr.msk.f32.gmra.mxu0 %vm2283_vm1, %v2926_v62 }
 0x8b2   : > { %v9330_v5 = vpop.f32.mrf.mxu1  ;;  %3102 = vmatprep.mubr.f32.mxu0 %v11841_v60 }
 0x8b4   : > { %v7352_v23 = vpop.f32.mrf.mxu1 }
 0x8b5   : > { %3593 = vrot.lane.b32.xlu0 %v7352_v23, %s11843_s20  ;;  %6793 = vmatmul.mubr.msk.f32.vlgmr.msra.gmra.mxu0 %vm2283_vm1, %v2923_v30 }
 0x8b6   : > { %v3456_v26 = vpop.f32.mrf.mxu1  ;;  %3108 = vmatprep.mubr.f32.mxu0 %v11841_v60  ;;  %7337 = vmatpush3.msra.mxu0 %v9271_v3 }
 0x8b7   : > { %3591 = vrot.lane.b32.xlu1 %v3456_v26, %s11843_s20  ;;  %7338 = vmatprep.subr.mxu0 %v2931_v4 }
 0x8b8   : > { %v7355_v53 = vpop.f32.mrf.mxu1  ;;  %7339 = vmatpush3.msra.mxu0 %v2931_v4  ;;  %v3628_v4 = vld [vmem:[%s11734_s14 + $0x8] sm:$0xff] }
 0x8b9   : > { %3597 = vrot.lane.b32.xlu0 %v7355_v53, %s11843_s20  ;;  %6794 = vmatmul.mubr.msk.f32.gmra.mxu0 %vm2283_vm1, %v2924_v29 }
 0x8ba   : > { %v3466_v11 = vpop.f32.mrf.mxu1  ;;  %3114 = vmatprep.mubr.f32.mxu0 %v11841_v60  ;;  %3240 = vmatprep.subr.mxu0 %v9215_v36 }
 0x8bb   : > { %3595 = vrot.lane.b32.xlu1 %v3466_v11, %s11843_s20 }
 0x8bd   : > { %6795 = vmatmul.mubr.msk.f32.gmra.mxu0 %vm2283_vm1, %v2925_v33 }
 0x8be   : > { %3120 = vmatprep.mubr.f32.mxu0 %v11841_v60 }
 0x8c1   : > { %6796 = vmatmul.mubr.msk.f32.gmra.mxu0 %vm2283_vm1, %v2926_v62 }
 0x8c2   : > { %7340 = vmatprep.mubr.msk.f32.mxu0 %vm2283_vm1, %v2923_v30 }
 0x8c5   : > { %7341 = vmatmul.mubr.msk.f32.vlgmr.msra.gmra.mxu0 %vm2283_vm1, %v2924_v29  ;;  %v3630_v29 = vld [vmem:[%s11734_s14 + $0x18] sm:$0xff] }
 0x8c6   : > { %7343 = vmatprep.mubr.msk.f32.mxu0 %vm2283_vm1, %v2925_v33  ;;  %3241 = vmatpush1.msra.mxu0 %v9220_v0  ;;  %v3674_v33 = vld [vmem:[%s11735_s15 + $0x38] sm:$0xff] }
 0x8c7   : > { %3242 = vmatprep.subr.mxu0 %v9226_v24  ;;  %3908 = vmatprep.mubr.f32.mxu1 %v3630_v29  ;;  %v3642_v29 = vld [vmem:[%s11734_s14 + $0x78] sm:$0xff] }
 0x8c8   : > { %3243 = vmatpush1.msra.mxu0 %v9232_v10 }
 0x8c9   : > { %7344 = vmatmul.mubr.msk.f32.gmra.mxu0 %vm2283_vm1, %v2926_v62  ;;  %3329 = vmatprep.subr.mxu0 %v9308_v49 }
 0x8ca   : > { %3276 = vmatprep.mubr.f32.mxu0 %v11841_v60 }
 0x8cd   : > { %6801 = vmatmul.mubr.msk.f32.vlgmr.msra.gmra.mxu0 %vm2283_vm1, %v9061_v17 }
 0x8ce   : > { %3282 = vmatprep.mubr.f32.mxu0 %v11841_v60  ;;  %3330 = vmatpush1.msra.mxu0 %v2934_v42 }
 0x8cf   : > { %3331 = vmatprep.subr.mxu0 %v2930_v63 }
 0x8d0   : > { %3332 = vmatpush1.msra.mxu0 %v2929_v18 }
 0x8d1   : > { %6802 = vmatmul.mubr.msk.f32.gmra.mxu0 %vm2283_vm1, %v9063_v50 }
 0x8d2   : > { %3288 = vmatprep.mubr.f32.mxu0 %v11841_v60 }
 0x8d5   : > { %6803 = vmatmul.mubr.msk.f32.gmra.mxu0 %vm2283_vm1, %v9069_v47 }
 0x8d6   : > { %3365 = vmatprep.mubr.f32.mxu0 %v11841_v60 }
 0x8d9   : > { %6805 = vmatmul.mubr.msk.f32.vlgmr.msra.gmra.mxu0 %vm2283_vm1, %v9061_v17 }
 0x8da   : > { %3371 = vmatprep.mubr.f32.mxu0 %v11841_v60 }
 0x8dd   : > { %6806 = vmatmul.mubr.msk.f32.gmra.mxu0 %vm2283_vm1, %v9063_v50 }
 0x8de   : > { %3377 = vmatprep.mubr.f32.mxu0 %v11841_v60 }
 0x8e1   : > { %6807 = vmatmul.mubr.msk.f32.gmra.mxu0 %vm2283_vm1, %v9069_v47 }
 0x8e2   : > { %3383 = vmatprep.mubr.f32.mxu0 %v11841_v60 }
 0x8e5   : > { %6808 = vmatmul.mubr.msk.f32.gmra.mxu0 %vm2283_vm1, %v9073_v57 }
 0x8e6   : > { %3803 = vmatprep.mubr.f32.mxu0 %v3628_v4 }
 0x927   : > { %v3594_v58 = vpop.permute.xlu0 %3593 }
 0x929   : > { %v3592_v39 = vpop.permute.xlu1 %3591 }
 0x92b   : > { %v3598_v20 = vpop.permute.xlu0 %3597 }
 0x92d   : > { %v3596_v30 = vpop.permute.xlu1 %3595 }
 0x965   : > { %v9375_v36 = vpop.f32.mrf.mxu0 }
 0x967   : > { %v9377_v0 = vpop.f32.mrf.mxu0 }
 0x969   : > { %v9379_v17 = vpop.f32.mrf.mxu0 }
 0x96b   : > { %v9381_v24 = vpop.f32.mrf.mxu0 }
 0x96d   : > { %v9383_v10 = vpop.f32.mrf.mxu0 }
 0x96f   : > { %v9385_v50 = vpop.f32.mrf.mxu0 }
 0x970   : > { %3499 = vrot.lane.b32.xlu1 %v9385_v50, %s11843_s20 }
 0x971   : > { %v9389_v47 = vpop.f32.mrf.mxu0 }
 0x973   : > { %v9391_v37 = vpop.f32.mrf.mxu0 }
 0x974   : > { %3501 = vrot.lane.b32.xlu1 %v9391_v37, %s11843_s20 }
 0x975   : > { %v9395_v57 = vpop.f32.mrf.mxu0 }
 0x977   : > { %v9397_v6 = vpop.f32.mrf.mxu0 }
 0x978   : > { %3497 = vrot.lane.b32.xlu1 %v9381_v24, %s11843_s20 }
 0x979   : > { %v9401_v44 = vpop.f32.mrf.mxu0 }
 0x97b   : > { %v9403_v13 = vpop.f32.mrf.mxu0 }
 0x97c   : > { %3495 = vrot.lane.b32.xlu1 %v9377_v0, %s11843_s20  ;;  %3529 = vrot.lane.b32.xlu0 %v9403_v13, %s11843_s20 }
 0x97d   : > { %v9409_v40 = vpop.f32.mrf.mxu0 }
 0x97f   : > { %v9411_v9 = vpop.f32.mrf.mxu0 }
 0x980   : > { %3485 = vrot.lane.b32.xlu1 %v9389_v47, %s11843_s20  ;;  %3531 = vrot.lane.b32.xlu0 %v9411_v9, %s11843_s20 }
 0x981   : > { %v9417_v51 = vpop.f32.mrf.mxu0 }
 0x983   : > { %v9419_v25 = vpop.f32.mrf.mxu0 }
 0x984   : > { %3483 = vrot.lane.b32.xlu1 %v9383_v10, %s11843_s20  ;;  %3533 = vrot.lane.b32.xlu0 %v9419_v25, %s11843_s20 }
 0x985   : > { %v9425_v1 = vpop.f32.mrf.mxu0 }
 0x987   : > { %v9427_v43 = vpop.f32.mrf.mxu0 }
 0x988   : > { %3481 = vrot.lane.b32.xlu1 %v9379_v17, %s11843_s20  ;;  %3527 = vrot.lane.b32.xlu0 %v9397_v6, %s11843_s20 }
 0x989   : > { %v9433_v61 = vpop.f32.mrf.mxu0 }
 0x98b   : > { %v9435_v48 = vpop.f32.mrf.mxu0 }
 0x98c   : > { %3479 = vrot.lane.b32.xlu1 %v9375_v36, %s11843_s20  ;;  %3517 = vrot.lane.b32.xlu0 %v9417_v51, %s11843_s20 }
 0x98d   : > { %v9441_v3 = vpop.f32.mrf.mxu0 }
 0x98f   : > { %v3280_v12 = vpop.f32.mrf.mxu0 }
 0x990   : > { %3549 = vrot.lane.b32.xlu1 %v9327_v7, %s11843_s20  ;;  %3515 = vrot.lane.b32.xlu0 %v9409_v40, %s11843_s20 }
 0x991   : > { %v9447_v31 = vpop.f32.mrf.mxu0 }
 0x993   : > { %v3286_v14 = vpop.f32.mrf.mxu0 }
 0x994   : > { %3513 = vrot.lane.b32.xlu0 %v9401_v44, %s11843_s20  ;;  %3543 = vrot.lane.b32.xlu1 %v9441_v3, %s11843_s20 }
 0x995   : > { %v9453_v22 = vpop.f32.mrf.mxu0 }
 0x997   : > { %v3292_v49 = vpop.f32.mrf.mxu0 }
 0x998   : > { %3511 = vrot.lane.b32.xlu0 %v9395_v57, %s11843_s20  ;;  %3545 = vrot.lane.b32.xlu1 %v9447_v31, %s11843_s20 }
 0x999   : > { %v9462_v46 = vpop.f32.mrf.mxu0 }
 0x99b   : > { %v3369_v35 = vpop.f32.mrf.mxu0 }
 0x99c   : > { %3547 = vrot.lane.b32.xlu1 %v9453_v22, %s11843_s20  ;;  %3575 = vrot.lane.b32.xlu0 %v9462_v46, %s11843_s20 }
 0x99d   : > { %v9468_v52 = vpop.f32.mrf.mxu0 }
 0x99f   : > { %v3375_v42 = vpop.f32.mrf.mxu0 }
 0x9a0   : > { %3615 = vrot.lane.b32.xlu1 %v3596_v30, %s11843_s20  ;;  %3577 = vrot.lane.b32.xlu0 %v9468_v52, %s11843_s20 }
 0x9a1   : > { %v9473_v21 = vpop.f32.mrf.mxu0 }
 0x9a3   : > { %v3381_v63 = vpop.f32.mrf.mxu0 }
 0x9a4   : > { %3613 = vrot.lane.b32.xlu1 %v3594_v58, %s11843_s20  ;;  %3579 = vrot.lane.b32.xlu0 %v9473_v21, %s11843_s20 }
 0x9a5   : > { %v9478_v2 = vpop.f32.mrf.mxu0 }
 0x9a7   : > { %v3387_v18 = vpop.f32.mrf.mxu0 }
 0x9a8   : > { %3611 = vrot.lane.b32.xlu1 %v3592_v39, %s11843_s20  ;;  %3581 = vrot.lane.b32.xlu0 %v9478_v2, %s11843_s20 }
 0x9a9   : > { %7221 = vmatprep.subr.mxu1 %v3387_v18 }
 0x9aa   : > { %7222 = vmatpush3.msra.mxu1 %v9330_v5 }
 0x9ab   : > { %7223 = vmatprep.subr.mxu1 %v3381_v63 }
 0x9ac   : > { %7224 = vmatpush3.msra.mxu1 %v3292_v49  ;;  %3617 = vrot.lane.b32.xlu0 %v3598_v20, %s11843_s20  ;;  %v3643_v20 = vld [vmem:[%s11734_s14 + $0x80] sm:$0xff] }
 0x9ad   : > { %3609 = vrot.lane.b32.xlu1 %v3387_v18, %s11843_s20  ;;  %7225 = vmatprep.subr.mxu1 %v3375_v42 }
 0x9ae   : > { %7226 = vmatpush3.msra.mxu1 %v3286_v14 }
 0x9af   : > { %7227 = vmatprep.subr.mxu1 %v3369_v35 }
 0x9b0   : > { %7228 = vmatpush3.msra.mxu1 %v3280_v12  ;;  %3565 = vrot.lane.b32.xlu0 %v9330_v5, %s11843_s20 }
 0x9b1   : > { %3607 = vrot.lane.b32.xlu1 %v3381_v63, %s11843_s20 }
 0x9b4   : > { %3563 = vrot.lane.b32.xlu0 %v3292_v49, %s11843_s20 }
 0x9b5   : > { %3603 = vrot.lane.b32.xlu1 %v3369_v35, %s11843_s20 }
 0x9b8   : > { %3561 = vrot.lane.b32.xlu0 %v3286_v14, %s11843_s20 }
 0x9b9   : > { %3682 = vperm.xlu1 %7475, %v3668_v59  }
 0x9bc   : > { %3559 = vrot.lane.b32.xlu0 %v3280_v12, %s11843_s20 }
 0x9bd   : > { %3692 = vperm.xlu1 %7475, %v3670_v55   ;;  %v3648_v55 = vld [vmem:[%s11734_s14 + $0xa8] sm:$0xff] }
 0x9c0   : > { %3605 = vrot.lane.b32.xlu0 %v3375_v42, %s11843_s20 }
 0x9c1   : > { %3702 = vperm.xlu1 %7475, %v3672_v27  }
 0x9c4   : > { %3677 = vperm.xlu0 %7476, %v3667_v54  }
 0x9c5   : > { %3712 = vperm.xlu1 %7475, %v3674_v33   ;;  %v3647_v33 = vld [vmem:[%s11734_s14 + $0xa0] sm:$0xff] }
 0x9c8   : > { %3687 = vperm.xlu0 %7476, %v3669_v32   ;;  %v3652_v32 = vld [vmem:[%s11734_s14 + $0xc8] sm:$0xff] }
 0x9cc   : > { %3697 = vperm.xlu0 %7476, %v3671_v45   ;;  %v3629_v45 = vld [vmem:[%s11734_s14 + $0x10] sm:$0xff] }
 0x9d0   : > { %3707 = vperm.xlu0 %7476, %v3673_v41  }
 0x9d4   : > { %6269 = vperm.xlu0 %7476, %v6266_v19   ;;  %v3636_v19 = vld [vmem:[%s11734_s14 + $0x48] sm:$0xff] }
 0x9e2   : > { %v3500_v62 = vpop.permute.xlu1 %3499 }
 0x9e6   : > { %v3502_v5 = vpop.permute.xlu1 %3501 }
 0x9ea   : > { %v3498_v23 = vpop.permute.xlu1 %3497 }
 0x9ee   : > { %v3496_v26 = vpop.permute.xlu1 %3495  ;;  %v3530_v53 = vpop.permute.xlu0 %3529 }
 0x9f2   : > { %v3486_v11 = vpop.permute.xlu1 %3485  ;;  %v3532_v12 = vpop.permute.xlu0 %3531 }
 0x9f6   : > { %v3484_v14 = vpop.permute.xlu1 %3483  ;;  %v3534_v4 = vpop.permute.xlu0 %3533 }
 0x9f7   : > { %7165 = vmatprep.subr.mxu0 %v3534_v4  ;;  %v3650_v4 = vld [vmem:[%s11734_s14 + $0xb8] sm:$0xff] }
 0x9f8   : > { %7166 = vmatpush3.msra.mxu0 %v3502_v5  ;;  %v3641_v5 = vld [vmem:[%s11734_s14 + $0x70] sm:$0xff] }
 0x9f9   : > { %7167 = vmatprep.subr.mxu0 %v3532_v12  ;;  %v3644_v12 = vld [vmem:[%s11734_s14 + $0x88] sm:$0xff] }
 0x9fa   : > { %v3482_v49 = vpop.permute.xlu1 %3481  ;;  %7168 = vmatpush3.msra.mxu0 %v3500_v62  ;;  %v3528_v39 = vpop.permute.xlu0 %3527  ;;  %v3634_v62 = vld [vmem:[%s11734_s14 + $0x38] sm:$0xff] }
 0x9fb   : > { %7169 = vmatprep.subr.mxu0 %v3530_v53  ;;  %v3645_v53 = vld [vmem:[%s11734_s14 + $0x90] sm:$0xff] }
 0x9fc   : > { %7170 = vmatpush3.msra.mxu0 %v3498_v23  ;;  %v3639_v23 = vld [vmem:[%s11734_s14 + $0x60] sm:$0xff] }
 0x9fd   : > { %7171 = vmatprep.subr.mxu0 %v3528_v39  ;;  %v3649_v39 = vld [vmem:[%s11734_s14 + $0xb0] sm:$0xff] }
 0x9fe   : > { %v3480_v35 = vpop.permute.xlu1 %3479  ;;  %7172 = vmatpush3.msra.mxu0 %v3496_v26  ;;  %v3518_v30 = vpop.permute.xlu0 %3517  ;;  %v3646_v26 = vld [vmem:[%s11734_s14 + $0x98] sm:$0xff] }
 0x9ff   : > { %7173 = vmatprep.subr.mxu0 %v9419_v25 }
 0xa00   : > { %7174 = vmatpush3.msra.mxu0 %v9391_v37 }
 0xa01   : > { %7175 = vmatprep.subr.mxu0 %v9411_v9 }
 0xa02   : > { %v3550_v42 = vpop.permute.xlu1 %3549  ;;  %7176 = vmatpush3.msra.mxu0 %v9385_v50  ;;  %v3516_v58 = vpop.permute.xlu0 %3515 }
 0xa03   : > { %7177 = vmatprep.subr.mxu0 %v9403_v13 }
 0xa04   : > { %7178 = vmatpush3.msra.mxu0 %v9381_v24 }
 0xa05   : > { %7179 = vmatprep.subr.mxu0 %v9397_v6  ;;  %v3627_v6 = vld [vmem:[%s11734_s14] sm:$0xff] }
 0xa06   : > { %7180 = vmatpush3.msra.mxu0 %v9377_v0  ;;  %v3514_v63 = vpop.permute.xlu0 %3513  ;;  %v3544_v18 = vpop.permute.xlu1 %3543 }
 0xa07   : > { %7181 = vmatprep.subr.mxu0 %v3518_v30  ;;  %v3655_v30 = vld [vmem:[%s11734_s14 + $0xe0] sm:$0xff] }
 0xa08   : > { %7182 = vmatpush3.msra.mxu0 %v3486_v11  ;;  %v3651_v11 = vld [vmem:[%s11734_s14 + $0xc0] sm:$0xff] }
 0xa09   : > { %7183 = vmatprep.subr.mxu0 %v3516_v58  ;;  %v3660_v58 = vld [vmem:[%s11734_s14 + $0x108] sm:$0xff] }
 0xa0a   : > { %7184 = vmatpush3.msra.mxu0 %v3484_v14  ;;  %v3512_v37 = vpop.permute.xlu0 %3511  ;;  %v3546_v9 = vpop.permute.xlu1 %3545  ;;  %v3656_v14 = vld [vmem:[%s11734_s14 + $0xe8] sm:$0xff] }
 0xa0b   : > { %7185 = vmatprep.subr.mxu0 %v3514_v63  ;;  %v3659_v63 = vld [vmem:[%s11734_s14 + $0x100] sm:$0xff] }
 0xa0c   : > { %7186 = vmatpush3.msra.mxu0 %v3482_v49  ;;  %v3661_v49 = vld [vmem:[%s11734_s14 + $0x110] sm:$0xff] }
 0xa0d   : > { %7187 = vmatprep.subr.mxu0 %v3512_v37  ;;  %v3664_v37 = vld [vmem:[%s11734_s14 + $0x128] sm:$0xff] }
 0xa0e   : > { %7188 = vmatpush3.msra.mxu0 %v3480_v35  ;;  %v3548_v50 = vpop.permute.xlu1 %3547  ;;  %v3576_v13 = vpop.permute.xlu0 %3575  ;;  %v3666_v35 = vld [vmem:[%s11734_s14 + $0x138] sm:$0xff] }
 0xa0f   : > { %7189 = vmatprep.subr.mxu0 %v9417_v51 }
 0xa10   : > { %7190 = vmatpush3.msra.mxu0 %v9389_v47  ;;  %v3633_v47 = vld [vmem:[%s11734_s14 + $0x30] sm:$0xff] }
 0xa11   : > { %7191 = vmatprep.subr.mxu0 %v9409_v40 }
 0xa12   : > { %7192 = vmatpush3.msra.mxu0 %v9383_v10  ;;  %v3578_v0 = vpop.permute.xlu0 %3577  ;;  %v3616_v24 = vpop.permute.xlu1 %3615  ;;  %v3632_v10 = vld [vmem:[%s11734_s14 + $0x28] sm:$0xff] }
 0xa13   : > { %7193 = vmatprep.subr.mxu0 %v9401_v44  ;;  %v3638_v44 = vld [vmem:[%s11734_s14 + $0x58] sm:$0xff] }
 0xa14   : > { %7194 = vmatpush3.msra.mxu0 %v9379_v17 }
 0xa15   : > { %7195 = vmatprep.subr.mxu0 %v9395_v57 }
 0xa16   : > { %7196 = vmatpush3.msra.mxu0 %v9375_v36  ;;  %v3580_v40 = vpop.permute.xlu0 %3579  ;;  %v3614_v17 = vpop.permute.xlu1 %3613  ;;  %v3637_v36 = vld [vmem:[%s11734_s14 + $0x50] sm:$0xff] }
 0xa17   : > { %3804 = vmatmul.mubr.f32.vlgmr.msra.gmra.mxu0 %v3627_v6  ;;  %v4173_v6 = vld [vmem:[%s11736_s16 + $0x378] sm:$0xff] }
 0xa18   : > { %3808 = vmatprep.mubr.f32.mxu0 %v3633_v47  ;;  %v9703_v47 = vld [vmem:[%s11736_s16 + $0x360] sm:$0xff] }
 0xa1a   : > { %v3582_v51 = vpop.permute.xlu0 %3581  ;;  %v3612_v25 = vpop.permute.xlu1 %3611 }
 0xa1b   : > { %3809 = vmatmul.mubr.f32.gmra.mxu0 %v3632_v10  ;;  %7229 = vmatprep.subr.mxu1 %v3582_v51  ;;  %v9711_v10 = vld [vmem:[%s11736_s16 + $0x2d8] sm:$0xff]  ;;  %v4154_v51 = vld [vmem:[%s11736_s16 + $0x2e0] sm:$0xff] }
 0xa1c   : > { %7230 = vmatpush3.msra.mxu1 %v3550_v42  ;;  %3813 = vmatprep.mubr.f32.mxu0 %v3638_v44  ;;  %v3654_v42 = vld [vmem:[%s11734_s14 + $0xd8] sm:$0xff]  ;;  %v9720_v44 = vld [vmem:[%s11736_s16 + $0x2d0] sm:$0xff] }
 0xa1d   : > { %7231 = vmatprep.subr.mxu1 %v3580_v40  ;;  %v4172_v40 = vld [vmem:[%s11736_s16 + $0x370] sm:$0xff] }
 0xa1e   : > { %v3618_v57 = vpop.permute.xlu0 %3617  ;;  %7232 = vmatpush3.msra.mxu1 %v3548_v50  ;;  %v4191_v50 = vld [vmem:[%s11736_s16 + $0x408] sm:$0xff] }
 0xa1f   : > { %3814 = vmatmul.mubr.f32.gmra.mxu0 %v3637_v36  ;;  %7233 = vmatprep.subr.mxu1 %v3578_v0  ;;  %v3610_v27 = vpop.permute.xlu1 %3609  ;;  %v4190_v0 = vld [vmem:[%s11736_s16 + $0x400] sm:$0xff]  ;;  %v9729_v36 = vld [vmem:[%s11736_s16 + $0x248] sm:$0xff] }
 0xa20   : > { %7356 = vmatprep.subr.mxu0 %v3618_v57  ;;  %7234 = vmatpush3.msra.mxu1 %v3546_v9  ;;  %v9676_v9 = vld [vmem:[%s11736_s16 + $0x3f8] sm:$0xff] }
 0xa21   : > { %7357 = vmatpush3.msra.mxu0 %v3618_v57  ;;  %7235 = vmatprep.subr.mxu1 %v3576_v13  ;;  %v9684_v13 = vld [vmem:[%s11736_s16 + $0x3f0] sm:$0xff]  ;;  %v4137_v57 = vld [vmem:[%s11736_s16 + $0x258] sm:$0xff] }
 0xa22   : > { %7358 = vmatprep.subr.mxu0 %v3616_v24  ;;  %3818 = vmatprep.mubr.f32.mxu0 %v3643_v20  ;;  %v3566_v59 = vpop.permute.xlu0 %3565  ;;  %v4136_v20 = vld [vmem:[%s11736_s16 + $0x250] sm:$0xff] }
 0xa23   : > { %7359 = vmatpush3.msra.mxu0 %v3616_v24  ;;  %7236 = vmatpush3.msra.mxu1 %v3544_v18  ;;  %v3665_v18 = vld [vmem:[%s11734_s14 + $0x130] sm:$0xff]  ;;  %v9693_v24 = vld [vmem:[%s11736_s16 + $0x368] sm:$0xff] }
 0xa24   : > { %3819 = vmatmul.mubr.f32.gmra.mxu0 %v3642_v29  ;;  %7237 = vmatprep.subr.mxu1 %v9478_v2  ;;  %v3608_v2 = vpop.permute.xlu1 %3607  ;;  %v9747_v29 = vld [vmem:[%s11736_s16 + $0x1b8] sm:$0xff] }
 0xa25   : > { %7360 = vmatprep.subr.mxu0 %v3614_v17  ;;  %7238 = vmatpush3.msra.mxu1 %v9327_v7  ;;  %v3653_v7 = vld [vmem:[%s11734_s14 + $0xd0] sm:$0xff] }
 0xa26   : > { %7361 = vmatpush3.msra.mxu0 %v3614_v17  ;;  %7239 = vmatprep.subr.mxu1 %v9473_v21  ;;  %v3564_v54 = vpop.permute.xlu0 %3563  ;;  %v4155_v17 = vld [vmem:[%s11736_s16 + $0x2e8] sm:$0xff] }
 0xa27   : > { %7362 = vmatprep.subr.mxu0 %v3612_v25  ;;  %3823 = vmatprep.mubr.f32.mxu0 %v3648_v55  ;;  %v9756_v55 = vld [vmem:[%s11736_s16 + $0x1b0] sm:$0xff] }
 0xa28   : > { %7363 = vmatpush3.msra.mxu0 %v3612_v25  ;;  %7240 = vmatpush3.msra.mxu1 %v9453_v22  ;;  %v3658_v22 = vld [vmem:[%s11734_s14 + $0xf8] sm:$0xff]  ;;  %v3604_v41 = vpop.permute.xlu1 %3603  ;;  %v9739_v25 = vld [vmem:[%s11736_s16 + $0x240] sm:$0xff] }
 0xa29   : > { %3824 = vmatmul.mubr.f32.gmra.mxu0 %v3647_v33  ;;  %7241 = vmatprep.subr.mxu1 %v9468_v52  ;;  %v3663_v52 = vld [vmem:[%s11734_s14 + $0x120] sm:$0xff]  ;;  %v4101_v33 = vld [vmem:[%s11736_s16 + $0x138] sm:$0xff] }
 0xa2a   : > { %7364 = vmatprep.subr.mxu0 %v3610_v27  ;;  %7242 = vmatpush3.msra.mxu1 %v9447_v31  ;;  %v3562_v21 = vpop.permute.xlu0 %3561 }
 0xa2b   : > { %7365 = vmatpush3.msra.mxu0 %v3610_v27  ;;  %7243 = vmatprep.subr.mxu1 %v9462_v46  ;;  %v3657_v46 = vld [vmem:[%s11734_s14 + $0xf0] sm:$0xff]  ;;  %v4118_v27 = vld [vmem:[%s11736_s16 + $0x1c0] sm:$0xff] }
 0xa2c   : > { %7366 = vmatprep.subr.mxu0 %v3608_v2  ;;  %3828 = vmatprep.mubr.f32.mxu0 %v3653_v7  ;;  %v9775_v7 = vld [vmem:[%s11736_s16 + $0x120] sm:$0xff] }
 0xa2d   : > { %7244 = vmatpush3.msra.mxu1 %v9441_v3  ;;  %7367 = vmatpush3.msra.mxu0 %v3608_v2  ;;  %v9783_v2 = vld [vmem:[%s11736_s16 + $0x98] sm:$0xff] }
 0xa2e   : > { %3829 = vmatmul.mubr.f32.gmra.mxu0 %v3652_v32  ;;  %7245 = vmatprep.subr.mxu1 %v3566_v59  ;;  %v3560_v31 = vpop.permute.xlu0 %3559  ;;  %v4119_v59 = vld [vmem:[%s11736_s16 + $0x1c8] sm:$0xff] }
 0xa2f   : > { %7246 = vmatpush3.msra.mxu1 %v9433_v61  ;;  %3833 = vmatprep.mubr.f32.mxu0 %v3658_v22  ;;  %v3662_v61 = vld [vmem:[%s11734_s14 + $0x118] sm:$0xff]  ;;  %v4083_v32 = vld [vmem:[%s11736_s16 + $0xa8] sm:$0xff]  ;;  %v9792_v22 = vld [vmem:[%s11736_s16 + $0x90] sm:$0xff] }
 0xa30   : > { %7247 = vmatprep.subr.mxu1 %v3564_v54  ;;  %v9765_v54 = vld [vmem:[%s11736_s16 + $0x128] sm:$0xff] }
 0xa31   : > { %7248 = vmatpush3.msra.mxu1 %v9435_v48  ;;  %v3635_v48 = vld [vmem:[%s11734_s14 + $0x40] sm:$0xff] }
 0xa32   : > { %3834 = vmatmul.mubr.f32.gmra.mxu0 %v3657_v46  ;;  %7249 = vmatprep.subr.mxu1 %v3562_v21  ;;  %v3606_v3 = vpop.permute.xlu0 %3605  ;;  %v4100_v21 = vld [vmem:[%s11736_s16 + $0x130] sm:$0xff]  ;;  %v9801_v46 = vld [vmem:[%s11736_s16 + $0x8] sm:$0xff] }
 0xa33   : > { %7250 = vmatpush3.msra.mxu1 %v9425_v1  ;;  %3838 = vmatprep.mubr.f32.mxu0 %v3663_v52  ;;  %v3631_v1 = vld [vmem:[%s11734_s14 + $0x20] sm:$0xff]  ;;  %v4065_v52 = vld [vmem:[%s11736_s16 + $0x18] sm:$0xff] }
 0xa34   : > { %7251 = vmatprep.subr.mxu1 %v3560_v31  ;;  %7368 = vmatprep.subr.mxu0 %v3606_v3  ;;  %v4082_v31 = vld [vmem:[%s11736_s16 + $0xa0] sm:$0xff] }
 0xa35   : > { %7252 = vmatpush3.msra.mxu1 %v9427_v43  ;;  %7369 = vmatpush3.msra.mxu0 %v3606_v3  ;;  %v3640_v43 = vld [vmem:[%s11734_s14 + $0x68] sm:$0xff]  ;;  %v9809_v3 = vld [vmem:[%s11736_s16] sm:$0xff] }
 0xa36   : > { %3839 = vmatmul.mubr.f32.gmra.mxu0 %v3662_v61  ;;  %3909 = vmatmul.mubr.f32.vlgmr.msra.gmra.mxu1 %v3629_v45  ;;  %v4064_v61 = vld [vmem:[%s11736_s16 + $0x10] sm:$0xff]  ;;  %v4195_v45 = vld [vmem:[%s11736_s16 + $0x428] sm:$0xff] }
 0xa37   : > { %7370 = vmatprep.subr.mxu0 %v3604_v41  ;;  %3913 = vmatprep.mubr.f32.mxu1 %v3635_v48  ;;  %v9823_v48 = vld [vmem:[%s11736_s16 + $0x418] sm:$0xff] }
 0xa38   : > { %7371 = vmatpush3.msra.mxu0 %v3604_v41  ;;  %7372 = vmatprep.mubr.msk.f32.mxu0 %vm1652_vm0, %v3631_v1 }
 0xa39   : > { %4246 = vmatprep.subr.mxu1 %v9676_v9  ;;  %4359 = vmatprep.subr.mxu0 %v4191_v50 }
 0xa3a   : > { %7373 = vmatmul.mubr.msk.f32.vlgmr.msra.gmra.mxu0 %vm1652_vm0, %v3636_v19  ;;  %3914 = vmatmul.mubr.f32.gmra.mxu1 %v3634_v62 }
 0xa3b   : > { %3918 = vmatprep.mubr.f32.mxu1 %v3640_v43  ;;  %7375 = vmatprep.mubr.msk.f32.mxu0 %vm1652_vm0, %v3641_v5 }
 0xa3c   : > { %4247 = vmatpush1.msra.mxu1 %v9684_v13  ;;  %4360 = vmatpush1.msra.mxu0 %v4190_v0 }
 0xa3d   : > { %4248 = vmatprep.subr.mxu1 %v9693_v24  ;;  %4361 = vmatprep.subr.mxu0 %v4173_v6 }
 0xa3e   : > { %3919 = vmatmul.mubr.f32.gmra.mxu1 %v3639_v23  ;;  %7376 = vmatmul.mubr.msk.f32.gmra.mxu0 %vm1652_vm0, %v3646_v26 }
 0xa3f   : > { %3923 = vmatprep.mubr.f32.mxu1 %v3645_v53  ;;  %7378 = vmatprep.mubr.msk.f32.mxu0 %vm1652_vm0, %v3651_v11 }
 0xa40   : > { %4249 = vmatpush1.msra.mxu1 %v9703_v47  ;;  %4362 = vmatpush1.msra.mxu0 %v4172_v40  ;;  %v3683_v40 = vpop.permute.xlu1 %3682 }
 0xa41   : > { %4250 = vmatprep.subr.mxu1 %v9711_v10  ;;  %4363 = vmatprep.subr.mxu0 %v4155_v17 }
 0xa42   : > { %3924 = vmatmul.mubr.f32.gmra.mxu1 %v3644_v12  ;;  %7379 = vmatmul.mubr.msk.f32.gmra.mxu0 %vm1652_vm0, %v3656_v14 }
 0xa43   : > { %3928 = vmatprep.mubr.f32.mxu1 %v3650_v4  ;;  %7381 = vmatprep.mubr.msk.f32.mxu0 %vm1652_vm0, %v3661_v49 }
 0xa44   : > { %4251 = vmatpush1.msra.mxu1 %v9720_v44  ;;  %4364 = vmatpush1.msra.mxu0 %v4154_v51 }
 0xa45   : > { %4252 = vmatprep.subr.mxu1 %v9729_v36  ;;  %4365 = vmatprep.subr.mxu0 %v4137_v57 }
 0xa46   : > { %3929 = vmatmul.mubr.f32.gmra.mxu1 %v3649_v39  ;;  %7382 = vmatmul.mubr.msk.f32.gmra.mxu0 %vm1652_vm0, %v3666_v35 }
 0xa47   : > { %3933 = vmatprep.mubr.f32.mxu1 %v3655_v30  ;;  %4407 = vmatprep.mubr.f32.mxu0 %v11841_v60 }
 0xa48   : > { %4253 = vmatpush1.msra.mxu1 %v9739_v25  ;;  %4366 = vmatpush1.msra.mxu0 %v4136_v20 }
 0xa49   : > { %4254 = vmatprep.subr.mxu1 %v9747_v29  ;;  %4367 = vmatprep.subr.mxu0 %v4119_v59 }
 0xa4a   : > { %3934 = vmatmul.mubr.f32.gmra.mxu1 %v3654_v42  ;;  %4368 = vmatpush1.msra.mxu0 %v4118_v27  ;;  %v3678_v42 = vpop.permute.xlu0 %3677 }
 0xa4b   : > { %3938 = vmatprep.mubr.f32.mxu1 %v3660_v58  ;;  %4255 = vmatpush1.msra.mxu1 %v9756_v55 }
 0xa4c   : > { %4256 = vmatprep.subr.mxu1 %v9765_v54  ;;  %4369 = vmatprep.subr.mxu0 %v4101_v33 }
 0xa4d   : > { %4257 = vmatpush1.msra.mxu1 %v9775_v7  ;;  %4370 = vmatpush1.msra.mxu0 %v4100_v21 }
 0xa4e   : > { %3939 = vmatmul.mubr.f32.gmra.mxu1 %v3659_v63  ;;  %4258 = vmatprep.subr.mxu1 %v9783_v2 }
 0xa4f   : > { %3943 = vmatprep.mubr.f32.mxu1 %v3665_v18  ;;  %4371 = vmatprep.subr.mxu0 %v4083_v32  ;;  %v3688_v32 = vpop.permute.xlu0 %3687 }
 0xa50   : > { %4259 = vmatpush1.msra.mxu1 %v9792_v22  ;;  %4372 = vmatpush1.msra.mxu0 %v4082_v31 }
 0xa51   : > { %4260 = vmatprep.subr.mxu1 %v9801_v46  ;;  %4373 = vmatprep.subr.mxu0 %v4065_v52 }
 0xa52   : > { %3944 = vmatmul.mubr.f32.gmra.mxu1 %v3664_v37  ;;  %4374 = vmatpush1.msra.mxu0 %v4064_v61 }
 0xa53   : > { %4294 = vmatprep.mubr.f32.mxu1 %v11841_v60  ;;  %4261 = vmatpush1.msra.mxu1 %v9809_v3 }
 0xa54   : > { %4585 = vmatprep.subr.mxu0 %v4195_v45  ;;  %4472 = vmatprep.subr.mxu1 %v9823_v48 }
 0xad7   : > { %v7197_v1 = vpop.f32.mrf.mxu0 }
 0xad9   : > { %v7198_v41 = vpop.f32.mrf.mxu0 }
 0xada   : > { %v7199_v39 = vadd.f32 %v7198_v41, %v7197_v1  ;;  %v9843_v41 = vld [vmem:[%s11736_s16 + $0x420] sm:$0xff] }
 0xadb   : > { %v7200_v19 = vpop.f32.mrf.mxu0 }
 0xadc   : > { %v3806_v18 = vadd.f32 %v7199_v39, %v3678_v42  ;;  %v9857_v39 = vld [vmem:[%s11736_s16 + $0x398] sm:$0xff] }
 0xadd   : > { %v7201_v62 = vpop.f32.mrf.mxu0 }
 0xade   : > { %v7202_v37 = vadd.f32 %v7201_v62, %v7200_v19  ;;  %v9848_v19 = vld [vmem:[%s11736_s16 + $0x410] sm:$0xff] }
 0xadf   : > { %v7203_v43 = vpop.f32.mrf.mxu0 }
 0xae0   : > { %v3811_v59 = vadd.f32 %v7202_v37, %v3683_v40 }
 0xae1   : > { %v7204_v5 = vpop.f32.mrf.mxu0 }
 0xae2   : > { %v7205_v51 = vadd.f32 %v7204_v5, %v7203_v43 }
 0xae4   : > { %v7206_v23 = vpop.f32.mrf.mxu0  ;;  %v3816_v61 = vadd.f32 %v7205_v51, %v3688_v32 }
 0xae6   : > { %v7207_v26 = vpop.f32.mrf.mxu0 }
 0xae7   : > { %v7208_v62 = vadd.f32 %v7207_v26, %v7206_v23  ;;  %v3693_v23 = vpop.permute.xlu1 %3692 }
 0xae9   : > { %v7209_v53 = vpop.f32.mrf.mxu0  ;;  %v3821_v40 = vadd.f32 %v7208_v62, %v3693_v23 }
 0xaeb   : > { %v7210_v11 = vpop.f32.mrf.mxu0 }
 0xaee   : > { %v9826_v12 = vpop.f32.mrf.mxu0 }
 0xaf0   : > { %v9828_v14 = vpop.f32.mrf.mxu0 }
 0xaf2   : > { %v9830_v4 = vpop.f32.mrf.mxu0 }
 0xaf4   : > { %v9832_v49 = vpop.f32.mrf.mxu0 }
 0xaf6   : > { %v9834_v35 = vpop.f32.mrf.mxu0  ;;  %v7253_v30 = vpop.f32.mrf.mxu1 }
 0xaf8   : > { %v9836_v58 = vpop.f32.mrf.mxu0  ;;  %v7254_v63 = vpop.f32.mrf.mxu1 }
 0xaf9   : > { %v7255_v50 = vadd.f32 %v7254_v63, %v7253_v30  ;;  %v9862_v30 = vld [vmem:[%s11736_s16 + $0x388] sm:$0xff] }
 0xafa   : > { %v7256_v0 = vpop.f32.mrf.mxu1  ;;  %v7374_v6 = vpop.f32.mrf.mxu0 }
 0xafb   : > { %v3911_v17 = vadd.f32 %v7255_v50, %v3806_v18  ;;  %v7211_v18 = vadd.f32 %v7210_v11, %v7209_v53  ;;  %v9889_v53 = vld [vmem:[%s11736_s16 + $0x308] sm:$0xff]  ;;  %v9894_v11 = vld [vmem:[%s11736_s16 + $0x2f8] sm:$0xff] }
 0xafc   : > { %v7257_v57 = vpop.f32.mrf.mxu1  ;;  %v4015_v20 = vpop.f32.mrf.mxu0 }
 0xafd   : > { %v7258_v27 = vadd.f32 %v7257_v57, %v7256_v0  ;;  %v4016_v33 = vadd.f32 %v4015_v20, %v3911_v17  ;;  %v9874_v0 = vld [vmem:[%s11736_s16 + $0x390] sm:$0xff]  ;;  %v3698_v20 = vpop.permute.xlu0 %3697 }
 0xafe   : > { %v7259_v21 = vpop.f32.mrf.mxu1  ;;  %v7377_v1 = vpop.f32.mrf.mxu0 }
 0xaff   : > { %v3916_v31 = vadd.f32 %v7258_v27, %v3811_v59  ;;  %v9838_v52 = vmax.f32 %v4016_v33, 0.0  ;;  %v3826_v33 = vadd.f32 %v7211_v18, %v3698_v20 }
 0xb00   : > { %v7260_v45 = vpop.f32.mrf.mxu1  ;;  %v4025_v50 = vpop.f32.mrf.mxu0 }
 0xb01   : > { %v4021_v43 = vadd.f32 %v7374_v6, %v3916_v31  ;;  %v7261_v5 = vadd.f32 %v7260_v45, %v7259_v21  ;;  %6821 = vmatmul.mubr.msk.f32.vlgmr.msra.gmra.mxu1 %vm1652_vm0, %v9838_v52  ;;  %6829 = vmatmul.mubr.msk.f32.vlgmr.msra.gmra.mxu0 %vm1652_vm0, %v9838_v52  ;;  %v9880_v6 = vld [vmem:[%s11736_s16 + $0x380] sm:$0xff]  ;;  %v7214_v45 = vadd.f32 %v9828_v14, %v9826_v12  ;;  %v3703_v12 = vpop.permute.xlu1 %3702 }
 0xb02   : > { %v7262_v42 = vpop.f32.mrf.mxu1  ;;  %4300 = vmatprep.mubr.f32.mxu1 %v11841_v60  ;;  %4413 = vmatprep.mubr.f32.mxu0 %v11841_v60  ;;  %v7380_v32 = vpop.f32.mrf.mxu0  ;;  %v9906_v31 = vld [vmem:[%s11736_s16 + $0x300] sm:$0xff] }
 0xb03   : > { %v9866_v26 = vmax.f32 %v4021_v43, 0.0  ;;  %v3921_v63 = vadd.f32 %v7261_v5, %v3816_v61  ;;  %4586 = vmatpush1.msra.mxu0 %v9843_v41  ;;  %4473 = vmatpush1.msra.mxu1 %v9848_v19  ;;  %11845 = vst [vmem:[#allocation7_spill] sm:$0xff] %v9906_v31  ;;  %v9912_v61 = vld [vmem:[%s11736_s16 + $0x2f0] sm:$0xff]  ;;  %v9923_v5 = vld [vmem:[%s11736_s16 + $0x278] sm:$0xff] }
 0xb04   : > { %v7263_v37 = vpop.f32.mrf.mxu1  ;;  %4587 = vmatprep.subr.mxu0 %v9857_v39  ;;  %4474 = vmatprep.subr.mxu1 %v9862_v30  ;;  %11846 = vst [vmem:[#allocation8_spill] sm:$0xff] %v9923_v5 }
 0xb05   : > { %v7264_v17 = vadd.f32 %v7263_v37, %v7262_v42  ;;  %v4026_v51 = vadd.f32 %v4025_v50, %v3921_v63  ;;  %6822 = vmatmul.mubr.msk.f32.gmra.mxu1 %vm1652_vm0, %v9866_v26  ;;  %6830 = vmatmul.mubr.msk.f32.gmra.mxu0 %vm1652_vm0, %v9866_v26  ;;  %v9928_v42 = vld [vmem:[%s11736_s16 + $0x268] sm:$0xff]  ;;  %v7217_v63 = vadd.f32 %v9832_v49, %v9830_v4  ;;  %v4035_v37 = vpop.f32.mrf.mxu0  ;;  %v9942_v50 = vld [vmem:[%s11736_s16 + $0x270] sm:$0xff]  ;;  %v9957_v4 = vld [vmem:[%s11736_s16 + $0x1d8] sm:$0xff] }
 0xb06   : > { %v7265_v57 = vpop.f32.mrf.mxu1  ;;  %4306 = vmatprep.mubr.f32.mxu1 %v11841_v60  ;;  %4419 = vmatprep.mubr.f32.mxu0 %v11841_v60  ;;  %11847 = vst [vmem:[#allocation9_spill] sm:$0xff] %v9942_v50  ;;  %v9962_v49 = vld [vmem:[%s11736_s16 + $0x1e8] sm:$0xff] }
 0xb07   : > { %v3926_v59 = vadd.f32 %v7264_v17, %v3821_v40  ;;  %v9898_v27 = vmax.f32 %v4026_v51, 0.0  ;;  %4588 = vmatpush1.msra.mxu0 %v9874_v0  ;;  %4475 = vmatpush1.msra.mxu1 %v9880_v6  ;;  %v9948_v40 = vld [vmem:[%s11736_s16 + $0x260] sm:$0xff]  ;;  %v3831_v17 = vadd.f32 %v7214_v45, %v3703_v12  ;;  %11848 = vst [vmem:[#allocation10_spill] sm:$0xff] %v9962_v49 }
 0xb08   : > { %v7266_v21 = vpop.f32.mrf.mxu1  ;;  %4589 = vmatprep.subr.mxu0 %v9889_v53  ;;  %4476 = vmatprep.subr.mxu1 %v9894_v11  ;;  %v9980_v12 = vld [vmem:[%s11736_s16 + $0x1e0] sm:$0xff] }
 0xb09   : > { %v4031_v62 = vadd.f32 %v7377_v1, %v3926_v59  ;;  %v7267_v43 = vadd.f32 %v7266_v21, %v7265_v57  ;;  %6823 = vmatmul.mubr.msk.f32.gmra.mxu1 %vm1652_vm0, %v9898_v27  ;;  %6831 = vmatmul.mubr.msk.f32.gmra.mxu0 %vm1652_vm0, %v9898_v27  ;;  %v3708_v59 = vpop.permute.xlu0 %3707  ;;  %11849 = vst [vmem:[#allocation11_spill] sm:$0xff] %v9980_v12 }
 0xb0a   : > { %v7268_v23 = vpop.f32.mrf.mxu1  ;;  %4312 = vmatprep.mubr.f32.mxu1 %v11841_v60  ;;  %4425 = vmatprep.mubr.f32.mxu0 %v11841_v60  ;;  %v3836_v45 = vadd.f32 %v7217_v63, %v3708_v59  ;;  %v10009_v59 = vld [vmem:[%s11736_s16 + $0x140] sm:$0xff] }
 0xb0b   : > { %v9932_v14 = vmax.f32 %v4031_v62, 0.0  ;;  %v3931_v1 = vadd.f32 %v7267_v43, %v3826_v33  ;;  %4590 = vmatpush1.msra.mxu0 %v9906_v31  ;;  %4477 = vmatpush1.msra.mxu1 %v9912_v61  ;;  %v7383_v43 = vpop.f32.mrf.mxu0  ;;  %v10228_v31 = vld [vmem:[%s11736_s16 + $0x200] sm:$0xff] }
 0xb0c   : > { %v7269_v18 = vpop.f32.mrf.mxu1  ;;  %4591 = vmatprep.subr.mxu0 %v9923_v5  ;;  %4478 = vmatprep.subr.mxu1 %v9928_v42  ;;  %v10198_v5 = vld [vmem:[%s11736_s16 + $0x280] sm:$0xff]  ;;  %11869 = vst [vmem:[#allocation31_spill] sm:$0xff] %v10228_v31 }
 0xb0d   : > { %v7270_v51 = vadd.f32 %v7269_v18, %v7268_v23  ;;  %v4036_v57 = vadd.f32 %v4035_v37, %v3931_v1  ;;  %6824 = vmatmul.mubr.msk.f32.gmra.mxu1 %vm1652_vm0, %v9932_v14  ;;  %6832 = vmatmul.mubr.msk.f32.gmra.mxu0 %vm1652_vm0, %v9932_v14  ;;  %v9975_v23 = vld [vmem:[%s11736_s16 + $0x1d0] sm:$0xff]  ;;  %v7220_v1 = vadd.f32 %v9836_v58, %v9834_v35  ;;  %v9991_v37 = vld [vmem:[%s11736_s16 + $0x148] sm:$0xff]  ;;  %v3713_v35 = vpop.permute.xlu1 %3712 }
 0xb0e   : > { %v7271_v20 = vpop.f32.mrf.mxu1  ;;  %4318 = vmatprep.mubr.f32.mxu1 %v11841_v60  ;;  %4431 = vmatprep.mubr.f32.mxu0 %v11841_v60  ;;  %11865 = vst [vmem:[#allocation27_spill] sm:$0xff] %v10198_v5 }
 0xb0f   : > { %v3936_v33 = vadd.f32 %v7270_v51, %v3831_v17  ;;  %v9966_v21 = vmax.f32 %v4036_v57, 0.0  ;;  %4592 = vmatpush1.msra.mxu0 %v9942_v50  ;;  %4479 = vmatpush1.msra.mxu1 %v9948_v40  ;;  %v9996_v17 = vld [vmem:[%s11736_s16 + $0x158] sm:$0xff]  ;;  %v10192_v50 = vld [vmem:[%s11736_s16 + $0x290] sm:$0xff] }
 0xb10   : > { %v7272_v62 = vpop.f32.mrf.mxu1  ;;  %4480 = vmatprep.subr.mxu1 %v9957_v4  ;;  %4593 = vmatprep.subr.mxu0 %v9962_v49  ;;  %11850 = vst [vmem:[#allocation12_spill] sm:$0xff] %v9996_v17  ;;  %v10168_v49 = vld [vmem:[%s11736_s16 + $0x310] sm:$0xff]  ;;  %11864 = vst [vmem:[#allocation26_spill] sm:$0xff] %v10192_v50 }
 0xb11   : > { %v4041_v63 = vadd.f32 %v7380_v32, %v3936_v33  ;;  %v7273_v18 = vadd.f32 %v7272_v62, %v7271_v20  ;;  %6825 = vmatmul.mubr.msk.f32.gmra.mxu1 %vm1652_vm0, %v9966_v21  ;;  %6833 = vmatmul.mubr.msk.f32.gmra.mxu0 %vm1652_vm0, %v9966_v21  ;;  %v4045_v20 = vpop.f32.mrf.mxu0  ;;  %v10014_v33 = vld [vmem:[%s11736_s16 + $0x150] sm:$0xff] }
 0xb12   : > { %v7274_v51 = vpop.f32.mrf.mxu1  ;;  %4324 = vmatprep.mubr.f32.mxu1 %v11841_v60  ;;  %4437 = vmatprep.mubr.f32.mxu0 %v11841_v60  ;;  %11851 = vst [vmem:[#allocation13_spill] sm:$0xff] %v10014_v33 }
 0xb13   : > { %v10000_v58 = vmax.f32 %v4041_v63, 0.0  ;;  %v3941_v32 = vadd.f32 %v7273_v18, %v3836_v45  ;;  %4481 = vmatpush1.msra.mxu1 %v9975_v23  ;;  %4594 = vmatpush1.msra.mxu0 %v9980_v12  ;;  %v3841_v45 = vadd.f32 %v7220_v1, %v3713_v35  ;;  %v10023_v18 = vld [vmem:[%s11736_s16 + $0xb8] sm:$0xff]  ;;  %v10041_v35 = vld [vmem:[%s11736_s16 + $0xb0] sm:$0xff]  ;;  %v10162_v12 = vld [vmem:[%s11736_s16 + $0x320] sm:$0xff] }
 0xb14   : > { %v7275_v57 = vpop.f32.mrf.mxu1  ;;  %4482 = vmatprep.subr.mxu1 %v9991_v37  ;;  %4595 = vmatprep.subr.mxu0 %v9996_v17  ;;  %v10028_v17 = vld [vmem:[%s11736_s16 + $0xc8] sm:$0xff]  ;;  %11861 = vst [vmem:[#allocation23_spill] sm:$0xff] %v10162_v12 }
 0xb15   : > { %v7276_v62 = vadd.f32 %v7275_v57, %v7274_v51  ;;  %v4046_v63 = vadd.f32 %v4045_v20, %v3941_v32  ;;  %6826 = vmatmul.mubr.msk.f32.gmra.mxu1 %vm1652_vm0, %v10000_v58  ;;  %6834 = vmatmul.mubr.msk.f32.gmra.mxu0 %vm1652_vm0, %v10000_v58  ;;  %11852 = vst [vmem:[#allocation14_spill] sm:$0xff] %v10028_v17  ;;  %v10046_v32 = vld [vmem:[%s11736_s16 + $0xc0] sm:$0xff]  ;;  %v10055_v20 = vld [vmem:[%s11736_s16 + $0x28] sm:$0xff] }
 0xb16   : > { %4330 = vmatprep.mubr.f32.mxu1 %v11841_v60  ;;  %4443 = vmatprep.mubr.f32.mxu0 %v11841_v60  ;;  %11853 = vst [vmem:[#allocation15_spill] sm:$0xff] %v10046_v32 }
 0xb17   : > { %v3946_v1 = vadd.f32 %v7276_v62, %v3841_v45  ;;  %v10032_v51 = vmax.f32 %v4046_v63, 0.0  ;;  %4483 = vmatpush1.msra.mxu1 %v10009_v59  ;;  %4596 = vmatpush1.msra.mxu0 %v10014_v33  ;;  %v10060_v45 = vld [vmem:[%s11736_s16 + $0x38] sm:$0xff]  ;;  %v10071_v62 = vld [vmem:[%s11736_s16 + $0x20] sm:$0xff]  ;;  %v10078_v63 = vld [vmem:[%s11736_s16 + $0x30] sm:$0xff] }
 0xb18   : > { %4484 = vmatprep.subr.mxu1 %v10023_v18  ;;  %4597 = vmatprep.subr.mxu0 %v10028_v17  ;;  %11854 = vst [vmem:[#allocation16_spill] sm:$0xff] %v10060_v45  ;;  %11855 = vst [vmem:[#allocation17_spill] sm:$0xff] %v10078_v63  ;;  %v10132_v17 = vld [vmem:[%s11736_s16 + $0x3b0] sm:$0xff]  ;;  %v10138_v33 = vld [vmem:[%s11736_s16 + $0x3a0] sm:$0xff] }
 0xb19   : > { %v4051_v57 = vadd.f32 %v7383_v43, %v3946_v1  ;;  %6827 = vmatmul.mubr.msk.f32.gmra.mxu1 %vm1652_vm0, %v10032_v51  ;;  %6835 = vmatmul.mubr.msk.f32.gmra.mxu0 %vm1652_vm0, %v10032_v51  ;;  %v10087_v1 = vld [vmem:[%s11736_s16 + $0x448] sm:$0xff]  ;;  %11859 = vst [vmem:[#allocation21_spill] sm:$0xff] %v10132_v17 }
 0xb1a   : > { %4336 = vmatprep.mubr.f32.mxu1 %v11841_v60  ;;  %4449 = vmatprep.mubr.f32.mxu0 %v11841_v60  ;;  %11856 = vst [vmem:[#allocation18_spill] sm:$0xff] %v10087_v1 }
 0xb1b   : > { %v10064_v43 = vmax.f32 %v4051_v57, 0.0  ;;  %4485 = vmatpush1.msra.mxu1 %v10041_v35  ;;  %4598 = vmatpush1.msra.mxu0 %v10046_v32  ;;  %v10092_v57 = vld [vmem:[%s11736_s16 + $0x438] sm:$0xff]  ;;  %v10108_v32 = vld [vmem:[%s11736_s16 + $0x430] sm:$0xff] }
 0xb1c   : > { %4486 = vmatprep.subr.mxu1 %v10055_v20  ;;  %4599 = vmatprep.subr.mxu0 %v10060_v45  ;;  %v10102_v45 = vld [vmem:[%s11736_s16 + $0x440] sm:$0xff] }
 0xb1d   : > { %6828 = vmatmul.mubr.msk.f32.gmra.mxu1 %vm1652_vm0, %v10064_v43  ;;  %6836 = vmatmul.mubr.msk.f32.gmra.mxu0 %vm1652_vm0, %v10064_v43  ;;  %11857 = vst [vmem:[#allocation19_spill] sm:$0xff] %v10102_v45 }
 0xb1e   : > { %4487 = vmatpush1.msra.mxu1 %v10071_v62  ;;  %4520 = vmatprep.mubr.f32.mxu1 %v11841_v60 }
 0xb1f   : > { %4600 = vmatpush1.msra.mxu0 %v10078_v63  ;;  %4633 = vmatprep.mubr.f32.mxu0 %v11841_v60  ;;  %v10122_v63 = vld [vmem:[%s11736_s16 + $0x3a8] sm:$0xff] }
 0xb20   : > { %4811 = vmatprep.subr.mxu0 %v10087_v1  ;;  %4698 = vmatprep.subr.mxu1 %v10092_v57  ;;  %v10117_v1 = vld [vmem:[%s11736_s16 + $0x3b8] sm:$0xff] }
 0xb21   : > { %6837 = vmatmul.mubr.msk.f32.vlgmr.msra.gmra.mxu1 %vm1652_vm0, %v9838_v52  ;;  %6845 = vmatmul.mubr.msk.f32.vlgmr.msra.gmra.mxu0 %vm1652_vm0, %v9838_v52  ;;  %11858 = vst [vmem:[#allocation20_spill] sm:$0xff] %v10117_v1 }
 0xb22   : > { %4526 = vmatprep.mubr.f32.mxu1 %v11841_v60  ;;  %4639 = vmatprep.mubr.f32.mxu0 %v11841_v60 }
 0xb23   : > { %4812 = vmatpush1.msra.mxu0 %v10102_v45  ;;  %4699 = vmatpush1.msra.mxu1 %v10108_v32  ;;  %v10152_v45 = vld [vmem:[%s11736_s16 + $0x318] sm:$0xff] }
 0xb24   : > { %4813 = vmatprep.subr.mxu0 %v10117_v1  ;;  %4700 = vmatprep.subr.mxu1 %v10122_v63  ;;  %v10147_v1 = vld [vmem:[%s11736_s16 + $0x328] sm:$0xff] }
 0xb25   : > { %6838 = vmatmul.mubr.msk.f32.gmra.mxu1 %vm1652_vm0, %v9866_v26  ;;  %6846 = vmatmul.mubr.msk.f32.gmra.mxu0 %vm1652_vm0, %v9866_v26  ;;  %11860 = vst [vmem:[#allocation22_spill] sm:$0xff] %v10147_v1 }
 0xb26   : > { %4532 = vmatprep.mubr.f32.mxu1 %v11841_v60  ;;  %4645 = vmatprep.mubr.f32.mxu0 %v11841_v60 }
 0xb27   : > { %4814 = vmatpush1.msra.mxu0 %v10132_v17  ;;  %4701 = vmatpush1.msra.mxu1 %v10138_v33  ;;  %v10182_v17 = vld [vmem:[%s11736_s16 + $0x288] sm:$0xff] }
 0xb28   : > { %4815 = vmatprep.subr.mxu0 %v10147_v1  ;;  %4702 = vmatprep.subr.mxu1 %v10152_v45  ;;  %v10177_v1 = vld [vmem:[%s11736_s16 + $0x298] sm:$0xff]  ;;  %11863 = vst [vmem:[#allocation25_spill] sm:$0xff] %v10182_v17 }
 0xb29   : > { %6839 = vmatmul.mubr.msk.f32.gmra.mxu1 %vm1652_vm0, %v9898_v27  ;;  %6847 = vmatmul.mubr.msk.f32.gmra.mxu0 %vm1652_vm0, %v9898_v27  ;;  %11862 = vst [vmem:[#allocation24_spill] sm:$0xff] %v10177_v1 }
 0xb2a   : > { %4538 = vmatprep.mubr.f32.mxu1 %v11841_v60  ;;  %4651 = vmatprep.mubr.f32.mxu0 %v11841_v60 }
 0xb2b   : > { %4816 = vmatpush1.msra.mxu0 %v10162_v12  ;;  %4703 = vmatpush1.msra.mxu1 %v10168_v49  ;;  %v10212_v12 = vld [vmem:[%s11736_s16 + $0x208] sm:$0xff] }
 0xb2c   : > { %4817 = vmatprep.subr.mxu0 %v10177_v1  ;;  %4704 = vmatprep.subr.mxu1 %v10182_v17  ;;  %v10207_v1 = vld [vmem:[%s11736_s16 + $0x1f8] sm:$0xff]  ;;  %11867 = vst [vmem:[#allocation29_spill] sm:$0xff] %v10212_v12  ;;  %v10223_v17 = vld [vmem:[%s11736_s16 + $0x1f0] sm:$0xff] }
 0xb2d   : > { %6840 = vmatmul.mubr.msk.f32.gmra.mxu1 %vm1652_vm0, %v9932_v14  ;;  %6848 = vmatmul.mubr.msk.f32.gmra.mxu0 %vm1652_vm0, %v9932_v14  ;;  %11866 = vst [vmem:[#allocation28_spill] sm:$0xff] %v10207_v1  ;;  %11868 = vst [vmem:[#allocation30_spill] sm:$0xff] %v10223_v17 }
 0xb2e   : > { %4544 = vmatprep.mubr.f32.mxu1 %v11841_v60  ;;  %4657 = vmatprep.mubr.f32.mxu0 %v11841_v60 }
 0xb2f   : > { %4818 = vmatpush1.msra.mxu0 %v10192_v50  ;;  %4705 = vmatpush1.msra.mxu1 %v10198_v5  ;;  %v10242_v50 = vld [vmem:[%s11736_s16 + $0x178] sm:$0xff]  ;;  %v10258_v5 = vld [vmem:[%s11736_s16 + $0x170] sm:$0xff] }
 0xb30   : > { %4706 = vmatprep.subr.mxu1 %v10207_v1  ;;  %4819 = vmatprep.subr.mxu0 %v10212_v12  ;;  %v10237_v12 = vld [vmem:[%s11736_s16 + $0x168] sm:$0xff]  ;;  %11871 = vst [vmem:[#allocation33_spill] sm:$0xff] %v10242_v50  ;;  %v10253_v1 = vld [vmem:[%s11736_s16 + $0x160] sm:$0xff]  ;;  %11873 = vst [vmem:[#allocation35_spill] sm:$0xff] %v10258_v5 }
 0xb31   : > { %6841 = vmatmul.mubr.msk.f32.gmra.mxu1 %vm1652_vm0, %v9966_v21  ;;  %6849 = vmatmul.mubr.msk.f32.gmra.mxu0 %vm1652_vm0, %v9966_v21  ;;  %11870 = vst [vmem:[#allocation32_spill] sm:$0xff] %v10237_v12  ;;  %11872 = vst [vmem:[#allocation34_spill] sm:$0xff] %v10253_v1 }
 0xb32   : > { %4550 = vmatprep.mubr.f32.mxu1 %v11841_v60  ;;  %4663 = vmatprep.mubr.f32.mxu0 %v11841_v60 }
 0xb33   : > { %4707 = vmatpush1.msra.mxu1 %v10223_v17  ;;  %4820 = vmatpush1.msra.mxu0 %v10228_v31  ;;  %v10272_v31 = vld [vmem:[%s11736_s16 + $0xe8] sm:$0xff]  ;;  %v10288_v17 = vld [vmem:[%s11736_s16 + $0xe0] sm:$0xff] }
 0xb34   : > { %4708 = vmatprep.subr.mxu1 %v10237_v12  ;;  %4821 = vmatprep.subr.mxu0 %v10242_v50  ;;  %v10267_v50 = vld [vmem:[%s11736_s16 + $0xd8] sm:$0xff]  ;;  %11875 = vst [vmem:[#allocation37_spill] sm:$0xff] %v10272_v31  ;;  %v10283_v12 = vld [vmem:[%s11736_s16 + $0xd0] sm:$0xff]  ;;  %11877 = vst [vmem:[#allocation39_spill] sm:$0xff] %v10288_v17 }
 0xb35   : > { %6842 = vmatmul.mubr.msk.f32.gmra.mxu1 %vm1652_vm0, %v10000_v58  ;;  %6850 = vmatmul.mubr.msk.f32.gmra.mxu0 %vm1652_vm0, %v10000_v58  ;;  %11874 = vst [vmem:[#allocation36_spill] sm:$0xff] %v10267_v50  ;;  %11876 = vst [vmem:[#allocation38_spill] sm:$0xff] %v10283_v12 }
 0xb36   : > { %4556 = vmatprep.mubr.f32.mxu1 %v11841_v60  ;;  %4669 = vmatprep.mubr.f32.mxu0 %v11841_v60 }
 0xb37   : > { %4709 = vmatpush1.msra.mxu1 %v10253_v1  ;;  %4822 = vmatpush1.msra.mxu0 %v10258_v5  ;;  %v10302_v5 = vld [vmem:[%s11736_s16 + $0x58] sm:$0xff]  ;;  %v10318_v1 = vld [vmem:[%s11736_s16 + $0x50] sm:$0xff] }
 0xb38   : > { %4710 = vmatprep.subr.mxu1 %v10267_v50  ;;  %4823 = vmatprep.subr.mxu0 %v10272_v31  ;;  %v10297_v31 = vld [vmem:[%s11736_s16 + $0x48] sm:$0xff]  ;;  %11879 = vst [vmem:[#allocation41_spill] sm:$0xff] %v10302_v5  ;;  %v10311_v50 = vld [vmem:[%s11736_s16 + $0x40] sm:$0xff]  ;;  %11881 = vst [vmem:[#allocation43_spill] sm:$0xff] %v10318_v1 }
 0xb39   : > { %6843 = vmatmul.mubr.msk.f32.gmra.mxu1 %vm1652_vm0, %v10032_v51  ;;  %6851 = vmatmul.mubr.msk.f32.gmra.mxu0 %vm1652_vm0, %v10032_v51  ;;  %11878 = vst [vmem:[#allocation40_spill] sm:$0xff] %v10297_v31  ;;  %11880 = vst [vmem:[#allocation42_spill] sm:$0xff] %v10311_v50 }
 0xb3a   : > { %4562 = vmatprep.mubr.f32.mxu1 %v11841_v60  ;;  %4675 = vmatprep.mubr.f32.mxu0 %v11841_v60 }
 0xb3b   : > { %4711 = vmatpush1.msra.mxu1 %v10283_v12  ;;  %4824 = vmatpush1.msra.mxu0 %v10288_v17  ;;  %v10327_v17 = vld [vmem:[%s11736_s16 + $0x468] sm:$0xff]  ;;  %v10348_v12 = vld [vmem:[%s11736_s16 + $0x450] sm:$0xff] }
 0xb3c   : > { %4712 = vmatprep.subr.mxu1 %v10297_v31  ;;  %4825 = vmatprep.subr.mxu0 %v10302_v5  ;;  %11882 = vst [vmem:[#allocation44_spill] sm:$0xff] %v10327_v17  ;;  %v10332_v5 = vld [vmem:[%s11736_s16 + $0x458] sm:$0xff]  ;;  %v10342_v31 = vld [vmem:[%s11736_s16 + $0x460] sm:$0xff]  ;;  %11885 = vst [vmem:[#allocation47_spill] sm:$0xff] %v10348_v12 }
 0xb3d   : > { %6844 = vmatmul.mubr.msk.f32.gmra.mxu1 %vm1652_vm0, %v10064_v43  ;;  %6852 = vmatmul.mubr.msk.f32.gmra.mxu0 %vm1652_vm0, %v10064_v43  ;;  %11883 = vst [vmem:[#allocation45_spill] sm:$0xff] %v10332_v5  ;;  %11884 = vst [vmem:[#allocation46_spill] sm:$0xff] %v10342_v31 }
 0xb3e   : > { %4713 = vmatpush1.msra.mxu1 %v10311_v50  ;;  %4746 = vmatprep.mubr.f32.mxu1 %v11841_v60  ;;  %v10378_v50 = vld [vmem:[%s11736_s16 + $0x3c0] sm:$0xff] }
 0xb3f   : > { %4826 = vmatpush1.msra.mxu0 %v10318_v1  ;;  %4859 = vmatprep.mubr.f32.mxu0 %v11841_v60  ;;  %v10362_v1 = vld [vmem:[%s11736_s16 + $0x3c8] sm:$0xff]  ;;  %11889 = vst [vmem:[#allocation51_spill] sm:$0xff] %v10378_v50 }
 0xb40   : > { %5037 = vmatprep.subr.mxu0 %v10327_v17  ;;  %4924 = vmatprep.subr.mxu1 %v10332_v5  ;;  %v10357_v17 = vld [vmem:[%s11736_s16 + $0x3d8] sm:$0xff]  ;;  %11887 = vst [vmem:[#allocation49_spill] sm:$0xff] %v10362_v1  ;;  %v10372_v5 = vld [vmem:[%s11736_s16 + $0x3d0] sm:$0xff] }
 0xb41   : > { %6853 = vmatmul.mubr.msk.f32.vlgmr.msra.gmra.mxu1 %vm1652_vm0, %v9838_v52  ;;  %6861 = vmatmul.mubr.msk.f32.vlgmr.msra.gmra.mxu0 %vm1652_vm0, %v9838_v52  ;;  %11886 = vst [vmem:[#allocation48_spill] sm:$0xff] %v10357_v17  ;;  %11888 = vst [vmem:[#allocation50_spill] sm:$0xff] %v10372_v5 }
 0xb42   : > { %4752 = vmatprep.mubr.f32.mxu1 %v11841_v60  ;;  %4865 = vmatprep.mubr.f32.mxu0 %v11841_v60 }
 0xb43   : > { %5038 = vmatpush1.msra.mxu0 %v10342_v31  ;;  %4925 = vmatpush1.msra.mxu1 %v10348_v12  ;;  %v10392_v31 = vld [vmem:[%s11736_s16 + $0x338] sm:$0xff]  ;;  %v10408_v12 = vld [vmem:[%s11736_s16 + $0x330] sm:$0xff] }
 0xb44   : > { %5039 = vmatprep.subr.mxu0 %v10357_v17  ;;  %4926 = vmatprep.subr.mxu1 %v10362_v1  ;;  %v10387_v17 = vld [vmem:[%s11736_s16 + $0x348] sm:$0xff]  ;;  %11891 = vst [vmem:[#allocation53_spill] sm:$0xff] %v10392_v31  ;;  %v10402_v1 = vld [vmem:[%s11736_s16 + $0x340] sm:$0xff]  ;;  %11893 = vst [vmem:[#allocation55_spill] sm:$0xff] %v10408_v12 }
 0xb45   : > { %6854 = vmatmul.mubr.msk.f32.gmra.mxu1 %vm1652_vm0, %v9866_v26  ;;  %6862 = vmatmul.mubr.msk.f32.gmra.mxu0 %vm1652_vm0, %v9866_v26  ;;  %11890 = vst [vmem:[#allocation52_spill] sm:$0xff] %v10387_v17  ;;  %11892 = vst [vmem:[#allocation54_spill] sm:$0xff] %v10402_v1 }
 0xb46   : > { %4758 = vmatprep.mubr.f32.mxu1 %v11841_v60  ;;  %4871 = vmatprep.mubr.f32.mxu0 %v11841_v60 }
 0xb47   : > { %5040 = vmatpush1.msra.mxu0 %v10372_v5  ;;  %4927 = vmatpush1.msra.mxu1 %v10378_v50  ;;  %v10422_v5 = vld [vmem:[%s11736_s16 + $0x2a8] sm:$0xff]  ;;  %v10438_v50 = vld [vmem:[%s11736_s16 + $0x2a0] sm:$0xff] }
 0xb48   : > { %5041 = vmatprep.subr.mxu0 %v10387_v17  ;;  %4928 = vmatprep.subr.mxu1 %v10392_v31  ;;  %v10417_v17 = vld [vmem:[%s11736_s16 + $0x2b8] sm:$0xff]  ;;  %11895 = vst [vmem:[#allocation57_spill] sm:$0xff] %v10422_v5  ;;  %v10432_v31 = vld [vmem:[%s11736_s16 + $0x2b0] sm:$0xff]  ;;  %11897 = vst [vmem:[#allocation59_spill] sm:$0xff] %v10438_v50 }
 0xb49   : > { %6855 = vmatmul.mubr.msk.f32.gmra.mxu1 %vm1652_vm0, %v9898_v27  ;;  %6863 = vmatmul.mubr.msk.f32.gmra.mxu0 %vm1652_vm0, %v9898_v27  ;;  %11894 = vst [vmem:[#allocation56_spill] sm:$0xff] %v10417_v17  ;;  %11896 = vst [vmem:[#allocation58_spill] sm:$0xff] %v10432_v31 }
 0xb4a   : > { %4764 = vmatprep.mubr.f32.mxu1 %v11841_v60  ;;  %4877 = vmatprep.mubr.f32.mxu0 %v11841_v60 }
 0xb4b   : > { %5042 = vmatpush1.msra.mxu0 %v10402_v1  ;;  %4929 = vmatpush1.msra.mxu1 %v10408_v12  ;;  %v10452_v1 = vld [vmem:[%s11736_s16 + $0x228] sm:$0xff]  ;;  %v10468_v12 = vld [vmem:[%s11736_s16 + $0x220] sm:$0xff] }
 0xb4c   : > { %5043 = vmatprep.subr.mxu0 %v10417_v17  ;;  %4930 = vmatprep.subr.mxu1 %v10422_v5  ;;  %v10447_v17 = vld [vmem:[%s11736_s16 + $0x218] sm:$0xff]  ;;  %11899 = vst [vmem:[#allocation61_spill] sm:$0xff] %v10452_v1  ;;  %v10463_v5 = vld [vmem:[%s11736_s16 + $0x210] sm:$0xff]  ;;  %11901 = vst [vmem:[#allocation63_spill] sm:$0xff] %v10468_v12 }
 0xb4d   : > { %6856 = vmatmul.mubr.msk.f32.gmra.mxu1 %vm1652_vm0, %v9932_v14  ;;  %6864 = vmatmul.mubr.msk.f32.gmra.mxu0 %vm1652_vm0, %v9932_v14  ;;  %11898 = vst [vmem:[#allocation60_spill] sm:$0xff] %v10447_v17  ;;  %11900 = vst [vmem:[#allocation62_spill] sm:$0xff] %v10463_v5 }
 0xb4e   : > { %4770 = vmatprep.mubr.f32.mxu1 %v11841_v60  ;;  %4883 = vmatprep.mubr.f32.mxu0 %v11841_v60 }
 0xb4f   : > { %5044 = vmatpush1.msra.mxu0 %v10432_v31  ;;  %4931 = vmatpush1.msra.mxu1 %v10438_v50  ;;  %v10482_v31 = vld [vmem:[%s11736_s16 + $0x198] sm:$0xff]  ;;  %v10498_v50 = vld [vmem:[%s11736_s16 + $0x190] sm:$0xff] }
 0xb50   : > { %4932 = vmatprep.subr.mxu1 %v10447_v17  ;;  %5045 = vmatprep.subr.mxu0 %v10452_v1  ;;  %v10477_v1 = vld [vmem:[%s11736_s16 + $0x188] sm:$0xff]  ;;  %11903 = vst [vmem:[#allocation65_spill] sm:$0xff] %v10482_v31  ;;  %v10493_v17 = vld [vmem:[%s11736_s16 + $0x180] sm:$0xff]  ;;  %11905 = vst [vmem:[#allocation67_spill] sm:$0xff] %v10498_v50 }
 0xb51   : > { %6857 = vmatmul.mubr.msk.f32.gmra.mxu1 %vm1652_vm0, %v9966_v21  ;;  %6865 = vmatmul.mubr.msk.f32.gmra.mxu0 %vm1652_vm0, %v9966_v21  ;;  %11902 = vst [vmem:[#allocation64_spill] sm:$0xff] %v10477_v1  ;;  %11904 = vst [vmem:[#allocation66_spill] sm:$0xff] %v10493_v17 }
 0xb52   : > { %4776 = vmatprep.mubr.f32.mxu1 %v11841_v60  ;;  %4889 = vmatprep.mubr.f32.mxu0 %v11841_v60 }
 0xb53   : > { %4933 = vmatpush1.msra.mxu1 %v10463_v5  ;;  %5046 = vmatpush1.msra.mxu0 %v10468_v12  ;;  %v10512_v12 = vld [vmem:[%s11736_s16 + $0x108] sm:$0xff]  ;;  %v10528_v5 = vld [vmem:[%s11736_s16 + $0x100] sm:$0xff] }
 0xb54   : > { %4934 = vmatprep.subr.mxu1 %v10477_v1  ;;  %5047 = vmatprep.subr.mxu0 %v10482_v31  ;;  %v10507_v31 = vld [vmem:[%s11736_s16 + $0xf8] sm:$0xff]  ;;  %11907 = vst [vmem:[#allocation69_spill] sm:$0xff] %v10512_v12  ;;  %v10523_v1 = vld [vmem:[%s11736_s16 + $0xf0] sm:$0xff]  ;;  %11908 = vst [vmem:[#allocation70_spill] sm:$0xff] %v10528_v5 }
 0xb55   : > { %6858 = vmatmul.mubr.msk.f32.gmra.mxu1 %vm1652_vm0, %v10000_v58  ;;  %6866 = vmatmul.mubr.msk.f32.gmra.mxu0 %vm1652_vm0, %v10000_v58  ;;  %11906 = vst [vmem:[#allocation68_spill] sm:$0xff] %v10507_v31 }
 0xb56   : > { %4782 = vmatprep.mubr.f32.mxu1 %v11841_v60  ;;  %4895 = vmatprep.mubr.f32.mxu0 %v11841_v60 }
 0xb57   : > { %4935 = vmatpush1.msra.mxu1 %v10493_v17  ;;  %5048 = vmatpush1.msra.mxu0 %v10498_v50  ;;  %v10542_v50 = vld [vmem:[%s11736_s16 + $0x78] sm:$0xff]  ;;  %v10558_v17 = vld [vmem:[%s11736_s16 + $0x70] sm:$0xff] }
 0xb58   : > { %4936 = vmatprep.subr.mxu1 %v10507_v31  ;;  %5049 = vmatprep.subr.mxu0 %v10512_v12  ;;  %v10537_v12 = vld [vmem:[%s11736_s16 + $0x68] sm:$0xff]  ;;  %11909 = vst [vmem:[#allocation71_spill] sm:$0xff] %v10542_v50  ;;  %v10551_v31 = vld [vmem:[%s11736_s16 + $0x60] sm:$0xff]  ;;  %11910 = vst [vmem:[#allocation72_spill] sm:$0xff] %v10558_v17 }
 0xb59   : > { %6859 = vmatmul.mubr.msk.f32.gmra.mxu1 %vm1652_vm0, %v10032_v51  ;;  %6867 = vmatmul.mubr.msk.f32.gmra.mxu0 %vm1652_vm0, %v10032_v51 }
 0xb5a   : > { %4788 = vmatprep.mubr.f32.mxu1 %v11841_v60  ;;  %4901 = vmatprep.mubr.f32.mxu0 %v11841_v60 }
 0xb5b   : > { %4937 = vmatpush1.msra.mxu1 %v10523_v1  ;;  %5050 = vmatpush1.msra.mxu0 %v10528_v5  ;;  %v10567_v5 = vld [vmem:[%s11736_s16 + $0x478] sm:$0xff] }
 0xb5c   : > { %4938 = vmatprep.subr.mxu1 %v10537_v12  ;;  %5051 = vmatprep.subr.mxu0 %v10542_v50  ;;  %v10578_v50 = vld [vmem:[%s11736_s16 + $0x470] sm:$0xff] }
 0xb5d   : > { %6860 = vmatmul.mubr.msk.f32.gmra.mxu1 %vm1652_vm0, %v10064_v43  ;;  %6868 = vmatmul.mubr.msk.f32.gmra.mxu0 %vm1652_vm0, %v10064_v43 }
 0xb5e   : > { %4939 = vmatpush1.msra.mxu1 %v10551_v31  ;;  %4972 = vmatprep.mubr.f32.mxu1 %v11841_v60 }
 0xb5f   : > { %5052 = vmatpush1.msra.mxu0 %v10558_v17  ;;  %5085 = vmatprep.mubr.f32.mxu0 %v11841_v60  ;;  %v10587_v17 = vld [vmem:[%s11736_s16 + $0x3e8] sm:$0xff] }
 0xb60   : > { %5263 = vmatprep.subr.mxu0 %v9676_v9  ;;  %5150 = vmatprep.subr.mxu1 %v10567_v5  ;;  %v10598_v9 = vld [vmem:[%s11736_s16 + $0x3e0] sm:$0xff] }
 0xb61   : > { %6869 = vmatmul.mubr.msk.f32.vlgmr.msra.gmra.mxu1 %vm1652_vm0, %v9838_v52  ;;  %6877 = vmatmul.mubr.msk.f32.vlgmr.msra.gmra.mxu0 %vm1652_vm0, %v9838_v52 }
 0xb62   : > { %4978 = vmatprep.mubr.f32.mxu1 %v11841_v60  ;;  %5091 = vmatprep.mubr.f32.mxu0 %v11841_v60 }
 0xb63   : > { %5264 = vmatpush1.msra.mxu0 %v9684_v13  ;;  %5151 = vmatpush1.msra.mxu1 %v10578_v50  ;;  %v10607_v13 = vld [vmem:[%s11736_s16 + $0x358] sm:$0xff] }
 0xb64   : > { %5265 = vmatprep.subr.mxu0 %v9693_v24  ;;  %5152 = vmatprep.subr.mxu1 %v10587_v17  ;;  %v10618_v24 = vld [vmem:[%s11736_s16 + $0x350] sm:$0xff] }
 0xb65   : > { %6870 = vmatmul.mubr.msk.f32.gmra.mxu1 %vm1652_vm0, %v9866_v26  ;;  %6878 = vmatmul.mubr.msk.f32.gmra.mxu0 %vm1652_vm0, %v9866_v26 }
 0xb66   : > { %4984 = vmatprep.mubr.f32.mxu1 %v11841_v60  ;;  %5097 = vmatprep.mubr.f32.mxu0 %v11841_v60 }
 0xb67   : > { %5266 = vmatpush1.msra.mxu0 %v9703_v47  ;;  %5153 = vmatpush1.msra.mxu1 %v10598_v9  ;;  %v10627_v47 = vld [vmem:[%s11736_s16 + $0x2c8] sm:$0xff] }
 0xb68   : > { %5267 = vmatprep.subr.mxu0 %v9711_v10  ;;  %5154 = vmatprep.subr.mxu1 %v10607_v13  ;;  %v10638_v10 = vld [vmem:[%s11736_s16 + $0x2c0] sm:$0xff] }
 0xb69   : > { %6871 = vmatmul.mubr.msk.f32.gmra.mxu1 %vm1652_vm0, %v9898_v27  ;;  %6879 = vmatmul.mubr.msk.f32.gmra.mxu0 %vm1652_vm0, %v9898_v27 }
 0xb6a   : > { %4990 = vmatprep.mubr.f32.mxu1 %v11841_v60  ;;  %5103 = vmatprep.mubr.f32.mxu0 %v11841_v60 }
 0xb6b   : > { %5268 = vmatpush1.msra.mxu0 %v9720_v44  ;;  %5155 = vmatpush1.msra.mxu1 %v10618_v24  ;;  %v10647_v44 = vld [vmem:[%s11736_s16 + $0x238] sm:$0xff] }
 0xb6c   : > { %5269 = vmatprep.subr.mxu0 %v9729_v36  ;;  %5156 = vmatprep.subr.mxu1 %v10627_v47  ;;  %v10658_v36 = vld [vmem:[%s11736_s16 + $0x230] sm:$0xff] }
 0xb6d   : > { %6872 = vmatmul.mubr.msk.f32.gmra.mxu1 %vm1652_vm0, %v9932_v14  ;;  %6880 = vmatmul.mubr.msk.f32.gmra.mxu0 %vm1652_vm0, %v9932_v14  ;;  %11911 = vst [vmem:[#allocation73_spill] sm:$0xff] %v10658_v36 }
 0xb6e   : > { %4996 = vmatprep.mubr.f32.mxu1 %v11841_v60  ;;  %5109 = vmatprep.mubr.f32.mxu0 %v11841_v60 }
 0xb6f   : > { %5270 = vmatpush1.msra.mxu0 %v9739_v25  ;;  %5157 = vmatpush1.msra.mxu1 %v10638_v10  ;;  %v10667_v25 = vld [vmem:[%s11736_s16 + $0x1a8] sm:$0xff] }
 0xb70   : > { %5158 = vmatprep.subr.mxu1 %v10647_v44  ;;  %5271 = vmatprep.subr.mxu0 %v9747_v29  ;;  %v10678_v29 = vld [vmem:[%s11736_s16 + $0x1a0] sm:$0xff] }
 0xb71   : > { %6873 = vmatmul.mubr.msk.f32.gmra.mxu1 %vm1652_vm0, %v9966_v21  ;;  %6881 = vmatmul.mubr.msk.f32.gmra.mxu0 %vm1652_vm0, %v9966_v21 }
 0xb72   : > { %5002 = vmatprep.mubr.f32.mxu1 %v11841_v60  ;;  %5115 = vmatprep.mubr.f32.mxu0 %v11841_v60 }
 0xb73   : > { %5159 = vmatpush1.msra.mxu1 %v10658_v36  ;;  %5272 = vmatpush1.msra.mxu0 %v9756_v55  ;;  %v10687_v36 = vld [vmem:[%s11736_s16 + $0x118] sm:$0xff]  ;;  %v10698_v55 = vld [vmem:[%s11736_s16 + $0x110] sm:$0xff] }
 0xb74   : > { %5160 = vmatprep.subr.mxu1 %v10667_v25  ;;  %5273 = vmatprep.subr.mxu0 %v9765_v54  ;;  %v10707_v54 = vld [vmem:[%s11736_s16 + $0x88] sm:$0xff] }
 0xb75   : > { %6874 = vmatmul.mubr.msk.f32.gmra.mxu1 %vm1652_vm0, %v10000_v58  ;;  %6882 = vmatmul.mubr.msk.f32.gmra.mxu0 %vm1652_vm0, %v10000_v58 }
 0xb76   : > { %5008 = vmatprep.mubr.f32.mxu1 %v11841_v60  ;;  %5121 = vmatprep.mubr.f32.mxu0 %v11841_v60 }
 0xb77   : > { %5161 = vmatpush1.msra.mxu1 %v10678_v29  ;;  %5274 = vmatpush1.msra.mxu0 %v9775_v7  ;;  %v10716_v7 = vld [vmem:[%s11736_s16 + $0x80] sm:$0xff] }
 0xb78   : > { %5162 = vmatprep.subr.mxu1 %v10687_v36  ;;  %5275 = vmatprep.subr.mxu0 %v9783_v2  ;;  %v7478_v2 = vld [vmem:[%s11736_s16 + $0x408] sm:$0xff] }
 0xb79   : > { %6875 = vmatmul.mubr.msk.f32.gmra.mxu1 %vm1652_vm0, %v10032_v51  ;;  %6883 = vmatmul.mubr.msk.f32.gmra.mxu0 %vm1652_vm0, %v10032_v51 }
 0xb7a   : > { %5014 = vmatprep.mubr.f32.mxu1 %v11841_v60  ;;  %5127 = vmatprep.mubr.f32.mxu0 %v11841_v60 }
 0xb7b   : > { %5163 = vmatpush1.msra.mxu1 %v10698_v55  ;;  %5276 = vmatpush1.msra.mxu0 %v9792_v22  ;;  %v7479_v22 = vld [vmem:[%s11736_s16 + $0x400] sm:$0xff] }
 0xb7c   : > { %5164 = vmatprep.subr.mxu1 %v10707_v54  ;;  %5277 = vmatprep.subr.mxu0 %v9801_v46  ;;  %v7480_v46 = vld [vmem:[%s11736_s16 + $0x378] sm:$0xff] }
 0xb7d   : > { %6876 = vmatmul.mubr.msk.f32.gmra.mxu1 %vm1652_vm0, %v10064_v43  ;;  %6884 = vmatmul.mubr.msk.f32.gmra.mxu0 %vm1652_vm0, %v10064_v43 }
 0xb7e   : > { %5165 = vmatpush1.msra.mxu1 %v10716_v7  ;;  %5198 = vmatprep.mubr.f32.mxu1 %v11841_v60 }
 0xb7f   : > { %5278 = vmatpush1.msra.mxu0 %v9809_v3  ;;  %5311 = vmatprep.mubr.f32.mxu0 %v11841_v60  ;;  %v7481_v3 = vld [vmem:[%s11736_s16 + $0x370] sm:$0xff] }
 0xb80   : > { %5489 = vmatprep.subr.mxu0 %v9823_v48  ;;  %5376 = vmatprep.subr.mxu1 %v7478_v2  ;;  %v7482_v48 = vld [vmem:[%s11736_s16 + $0x2e8] sm:$0xff]  ;;  %v11933_v2 = vld [vmem:[#allocation42_spill] sm:$0xff] }
 0xb81   : > { %6885 = vmatmul.mubr.msk.f32.vlgmr.msra.gmra.mxu1 %vm1652_vm0, %v9838_v52  ;;  %6893 = vmatmul.mubr.msk.f32.vlgmr.msra.gmra.mxu0 %vm1652_vm0, %v8704_v34  ;;  %v7483_v52 = vld [vmem:[%s11736_s16 + $0x2e0] sm:$0xff] }
 0xb82   : > { %5204 = vmatprep.mubr.f32.mxu1 %v11841_v60  ;;  %5317 = vmatprep.mubr.f32.mxu0 %v11841_v60 }
 0xb83   : > { %5490 = vmatpush1.msra.mxu0 %v9848_v19  ;;  %5377 = vmatpush1.msra.mxu1 %v7479_v22  ;;  %v7484_v19 = vld [vmem:[%s11736_s16 + $0x258] sm:$0xff]  ;;  %v11934_v22 = vld [vmem:[#allocation45_spill] sm:$0xff] }
 0xb84   : > { %5491 = vmatprep.subr.mxu0 %v9862_v30  ;;  %5378 = vmatprep.subr.mxu1 %v7480_v46  ;;  %v7485_v30 = vld [vmem:[%s11736_s16 + $0x250] sm:$0xff] }
 0xb85   : > { %6886 = vmatmul.mubr.msk.f32.gmra.mxu1 %vm1652_vm0, %v9866_v26  ;;  %6894 = vmatmul.mubr.msk.f32.gmra.mxu0 %vm1652_vm0, %v8712_v38  ;;  %v7486_v26 = vld [vmem:[%s11736_s16 + $0x1c8] sm:$0xff]  ;;  %v11935_v46 = vld [vmem:[#allocation18_spill] sm:$0xff] }
 0xb86   : > { %5210 = vmatprep.mubr.f32.mxu1 %v11841_v60  ;;  %5323 = vmatprep.mubr.f32.mxu0 %v11841_v60 }
 0xb87   : > { %5492 = vmatpush1.msra.mxu0 %v9880_v6  ;;  %5379 = vmatpush1.msra.mxu1 %v7481_v3  ;;  %v7487_v6 = vld [vmem:[%s11736_s16 + $0x1c0] sm:$0xff] }
 0xb88   : > { %5493 = vmatprep.subr.mxu0 %v9894_v11  ;;  %5380 = vmatprep.subr.mxu1 %v7482_v48  ;;  %v7488_v11 = vld [vmem:[%s11736_s16 + $0x138] sm:$0xff] }
 0xb89   : > { %6887 = vmatmul.mubr.msk.f32.gmra.mxu1 %vm1652_vm0, %v9898_v27  ;;  %6895 = vmatmul.mubr.msk.f32.gmra.mxu0 %vm1652_vm0, %v8719_v28  ;;  %v7489_v27 = vld [vmem:[%s11736_s16 + $0x130] sm:$0xff] }
 0xb8a   : > { %5216 = vmatprep.mubr.f32.mxu1 %v11841_v60  ;;  %5329 = vmatprep.mubr.f32.mxu0 %v11841_v60 }
 0xb8b   : > { %5494 = vmatpush1.msra.mxu0 %v9912_v61  ;;  %5381 = vmatpush1.msra.mxu1 %v7483_v52  ;;  %v7490_v61 = vld [vmem:[%s11736_s16 + $0xa8] sm:$0xff] }
 0xb8c   : > { %5495 = vmatprep.subr.mxu0 %v9928_v42  ;;  %5382 = vmatprep.subr.mxu1 %v7484_v19  ;;  %v7491_v42 = vld [vmem:[%s11736_s16 + $0xa0] sm:$0xff] }
 0xb8d   : > { %6888 = vmatmul.mubr.msk.f32.gmra.mxu1 %vm1652_vm0, %v9932_v14  ;;  %6896 = vmatmul.mubr.msk.f32.gmra.mxu0 %vm1652_vm0, %v8737_v15  ;;  %v7492_v14 = vld [vmem:[%s11736_s16 + $0x18] sm:$0xff] }
 0xb8e   : > { %5222 = vmatprep.mubr.f32.mxu1 %v11841_v60  ;;  %5335 = vmatprep.mubr.f32.mxu0 %v11841_v60 }
 0xb8f   : > { %5496 = vmatpush1.msra.mxu0 %v9948_v40  ;;  %5383 = vmatpush1.msra.mxu1 %v7485_v30  ;;  %v11912_v40 = vld [vmem:[#allocation6_spill] sm:$0xff]  ;;  %v11936_v30 = vld [vmem:[#allocation47_spill] sm:$0xff] }
 0xb90   : > { %5384 = vmatprep.subr.mxu1 %v7486_v26  ;;  %5497 = vmatprep.subr.mxu0 %v9957_v4  ;;  %v7493_v4 = vld [vmem:[%s11736_s16 + $0x10] sm:$0xff]  ;;  %v11937_v26 = vld [vmem:[#allocation19_spill] sm:$0xff] }
 0xb91   : > { %6889 = vmatmul.mubr.msk.f32.gmra.mxu1 %vm1652_vm0, %v9966_v21  ;;  %6897 = vmatmul.mubr.msk.f32.gmra.mxu0 %vm1652_vm0, %v8750_v56  ;;  %v7494_v21 = vld [vmem:[%s11736_s16 + $0x428] sm:$0xff] }
 0xb92   : > { %5228 = vmatprep.mubr.f32.mxu1 %v11841_v60  ;;  %5341 = vmatprep.mubr.f32.mxu0 %v11841_v60 }
 0xb93   : > { %5385 = vmatpush1.msra.mxu1 %v7487_v6  ;;  %5498 = vmatpush1.msra.mxu0 %v9975_v23  ;;  %v11917_v23 = vld [vmem:[#allocation9_spill] sm:$0xff] }
 0xb94   : > { %5386 = vmatprep.subr.mxu1 %v7488_v11  ;;  %5499 = vmatprep.subr.mxu0 %v9991_v37  ;;  %v11919_v37 = vld [vmem:[#allocation28_spill] sm:$0xff]  ;;  %v11938_v6 = vld [vmem:[#allocation49_spill] sm:$0xff] }
 0xb95   : > { %6890 = vmatmul.mubr.msk.f32.gmra.mxu1 %vm1652_vm0, %v10000_v58  ;;  %6898 = vmatmul.mubr.msk.f32.gmra.mxu0 %vm1652_vm0, %v8764_v16  ;;  %v11920_v58 = vld [vmem:[#allocation11_spill] sm:$0xff]  ;;  %v11939_v11 = vld [vmem:[#allocation20_spill] sm:$0xff] }
 0xb96   : > { %5234 = vmatprep.mubr.f32.mxu1 %v11841_v60  ;;  %5347 = vmatprep.mubr.f32.mxu0 %v11841_v60 }
 0xb97   : > { %5387 = vmatpush1.msra.mxu1 %v7489_v27  ;;  %5500 = vmatpush1.msra.mxu0 %v10009_v59  ;;  %v11921_v59 = vld [vmem:[#allocation30_spill] sm:$0xff] }
 0xb98   : > { %5388 = vmatprep.subr.mxu1 %v7490_v61  ;;  %5501 = vmatprep.subr.mxu0 %v10023_v18  ;;  %v11923_v18 = vld [vmem:[#allocation32_spill] sm:$0xff] }
 0xb99   : > { %6891 = vmatmul.mubr.msk.f32.gmra.mxu1 %vm1652_vm0, %v10032_v51  ;;  %6899 = vmatmul.mubr.msk.f32.gmra.mxu0 %vm1652_vm0, %v8770_v8  ;;  %v11924_v51 = vld [vmem:[#allocation13_spill] sm:$0xff] }
 0xb9a   : > { %5240 = vmatprep.mubr.f32.mxu1 %v11841_v60  ;;  %5353 = vmatprep.mubr.f32.mxu0 %v11841_v60 }
 0xb9b   : > { %5389 = vmatpush1.msra.mxu1 %v7491_v42  ;;  %5502 = vmatpush1.msra.mxu0 %v10041_v35  ;;  %v11925_v35 = vld [vmem:[#allocation34_spill] sm:$0xff] }
 0xb9c   : > { %5390 = vmatprep.subr.mxu1 %v7492_v14  ;;  %5503 = vmatprep.subr.mxu0 %v10055_v20  ;;  %v11927_v20 = vld [vmem:[#allocation36_spill] sm:$0xff] }
 0xb9d   : > { %6892 = vmatmul.mubr.msk.f32.gmra.mxu1 %vm1652_vm0, %v10064_v43  ;;  %6900 = vmatmul.mubr.msk.f32.gmra.mxu0 %vm1652_vm0, %v11912_v40  ;;  %v11929_v43 = vld [vmem:[#allocation38_spill] sm:$0xff] }
 0xb9e   : > { %5391 = vmatpush1.msra.mxu1 %v7493_v4  ;;  %5424 = vmatprep.mubr.f32.mxu1 %v11841_v60  ;;  %v11940_v4 = vld [vmem:[#allocation51_spill] sm:$0xff] }
 0xb9f   : > { %5504 = vmatpush1.msra.mxu0 %v10071_v62  ;;  %5537 = vmatprep.mubr.f32.mxu0 %v11841_v60  ;;  %v11930_v62 = vld [vmem:[#allocation16_spill] sm:$0xff] }
 0xba0   : > { %5715 = vmatprep.subr.mxu0 %v10092_v57  ;;  %5602 = vmatprep.subr.mxu1 %v7494_v21  ;;  %v11932_v57 = vld [vmem:[#allocation17_spill] sm:$0xff] }
 0xba1   : > { %6901 = vmatmul.mubr.msk.f32.vlgmr.msra.gmra.mxu1 %vm1652_vm0, %v8704_v34  ;;  %6909 = vmatmul.mubr.msk.f32.vlgmr.msra.gmra.mxu0 %vm1652_vm0, %v8704_v34  ;;  %v11941_v21 = vld [vmem:[#allocation21_spill] sm:$0xff] }
 0xba2   : > { %5430 = vmatprep.mubr.f32.mxu1 %v11841_v60  ;;  %5543 = vmatprep.mubr.f32.mxu0 %v11841_v60 }
 0xba3   : > { %5716 = vmatpush1.msra.mxu0 %v10108_v32  ;;  %5603 = vmatpush1.msra.mxu1 %v9843_v41  ;;  %v11913_v41 = vld [vmem:[#allocation7_spill] sm:$0xff]  ;;  %v11926_v32 = vld [vmem:[#allocation14_spill] sm:$0xff] }
 0xba4   : > { %5717 = vmatprep.subr.mxu0 %v10122_v63  ;;  %5604 = vmatprep.subr.mxu1 %v9857_v39  ;;  %v11914_v39 = vld [vmem:[#allocation25_spill] sm:$0xff]  ;;  %v11931_v63 = vld [vmem:[#allocation40_spill] sm:$0xff] }
 0xba5   : > { %6902 = vmatmul.mubr.msk.f32.gmra.mxu1 %vm1652_vm0, %v8712_v38  ;;  %6910 = vmatmul.mubr.msk.f32.gmra.mxu0 %vm1652_vm0, %v8712_v38 }
 0xba6   : > { %5436 = vmatprep.mubr.f32.mxu1 %v11841_v60  ;;  %5549 = vmatprep.mubr.f32.mxu0 %v11841_v60 }
 0xba7   : > { %5718 = vmatpush1.msra.mxu0 %v10138_v33  ;;  %5605 = vmatpush1.msra.mxu1 %v9874_v0  ;;  %v11915_v0 = vld [vmem:[#allocation8_spill] sm:$0xff] }
 0xba8   : > { %5719 = vmatprep.subr.mxu0 %v10152_v45  ;;  %5606 = vmatprep.subr.mxu1 %v9889_v53  ;;  %v11916_v53 = vld [vmem:[#allocation27_spill] sm:$0xff]  ;;  %v11922_v33 = vld [vmem:[#allocation12_spill] sm:$0xff] }
 0xba9   : > { %6903 = vmatmul.mubr.msk.f32.gmra.mxu1 %vm1652_vm0, %v8719_v28  ;;  %6911 = vmatmul.mubr.msk.f32.gmra.mxu0 %vm1652_vm0, %v8719_v28  ;;  %v11928_v45 = vld [vmem:[#allocation15_spill] sm:$0xff] }
 0xbaa   : > { %5442 = vmatprep.mubr.f32.mxu1 %v11841_v60  ;;  %5555 = vmatprep.mubr.f32.mxu0 %v11841_v60 }
 0xbab   : > { %5720 = vmatpush1.msra.mxu0 %v10168_v49  ;;  %5607 = vmatpush1.msra.mxu1 %v11913_v41  ;;  %v11918_v49 = vld [vmem:[#allocation10_spill] sm:$0xff]  ;;  %v11942_v41 = vld [vmem:[#allocation53_spill] sm:$0xff] }
 0xbac   : > { %5721 = vmatprep.subr.mxu0 %v11914_v39  ;;  %5608 = vmatprep.subr.mxu1 %v11915_v0  ;;  %v11943_v39 = vld [vmem:[#allocation22_spill] sm:$0xff] }
 0xbad   : > { %6904 = vmatmul.mubr.msk.f32.gmra.mxu1 %vm1652_vm0, %v8737_v15  ;;  %6912 = vmatmul.mubr.msk.f32.gmra.mxu0 %vm1652_vm0, %v8737_v15 }
 0xbae   : > { %5448 = vmatprep.mubr.f32.mxu1 %v11841_v60  ;;  %5561 = vmatprep.mubr.f32.mxu0 %v11841_v60 }
 0xbaf   : > { %5722 = vmatpush1.msra.mxu0 %v11916_v53  ;;  %5609 = vmatpush1.msra.mxu1 %v11917_v23 }
 0xbb0   : > { %5610 = vmatprep.subr.mxu1 %v11918_v49  ;;  %5723 = vmatprep.subr.mxu0 %v11919_v37  ;;  %v11944_v37 = vld [vmem:[#allocation55_spill] sm:$0xff] }
 0xbb1   : > { %6905 = vmatmul.mubr.msk.f32.gmra.mxu1 %vm1652_vm0, %v8750_v56  ;;  %6913 = vmatmul.mubr.msk.f32.gmra.mxu0 %vm1652_vm0, %v8750_v56 }
 0xbb2   : > { %5454 = vmatprep.mubr.f32.mxu1 %v11841_v60  ;;  %5567 = vmatprep.mubr.f32.mxu0 %v11841_v60 }
 0xbb3   : > { %5611 = vmatpush1.msra.mxu1 %v11920_v58  ;;  %5724 = vmatpush1.msra.mxu0 %v11921_v59  ;;  %v11945_v58 = vld [vmem:[#allocation23_spill] sm:$0xff]  ;;  %v11946_v59 = vld [vmem:[#allocation57_spill] sm:$0xff] }
 0xbb4   : > { %5612 = vmatprep.subr.mxu1 %v11922_v33  ;;  %5725 = vmatprep.subr.mxu0 %v11923_v18  ;;  %v11947_v33 = vld [vmem:[#allocation24_spill] sm:$0xff] }
 0xbb5   : > { %6906 = vmatmul.mubr.msk.f32.gmra.mxu1 %vm1652_vm0, %v8764_v16  ;;  %6914 = vmatmul.mubr.msk.f32.gmra.mxu0 %vm1652_vm0, %v8764_v16 }
 0xbb6   : > { %5460 = vmatprep.mubr.f32.mxu1 %v11841_v60  ;;  %5573 = vmatprep.mubr.f32.mxu0 %v11841_v60 }
 0xbb7   : > { %5613 = vmatpush1.msra.mxu1 %v11924_v51  ;;  %5726 = vmatpush1.msra.mxu0 %v11925_v35 }
 0xbb8   : > { %5614 = vmatprep.subr.mxu1 %v11926_v32  ;;  %5727 = vmatprep.subr.mxu0 %v11927_v20  ;;  %v11948_v20 = vld [vmem:[#allocation59_spill] sm:$0xff] }
 0xbb9   : > { %6907 = vmatmul.mubr.msk.f32.gmra.mxu1 %vm1652_vm0, %v8770_v8  ;;  %6915 = vmatmul.mubr.msk.f32.gmra.mxu0 %vm1652_vm0, %v8770_v8 }
 0xbba   : > { %5466 = vmatprep.mubr.f32.mxu1 %v11841_v60  ;;  %5579 = vmatprep.mubr.f32.mxu0 %v11841_v60 }
 0xbbb   : > { %5615 = vmatpush1.msra.mxu1 %v11928_v45  ;;  %5728 = vmatpush1.msra.mxu0 %v11929_v43  ;;  %v11949_v45 = vld [vmem:[#allocation26_spill] sm:$0xff]  ;;  %v11950_v43 = vld [vmem:[#allocation29_spill] sm:$0xff] }
 0xbbc   : > { %5616 = vmatprep.subr.mxu1 %v11930_v62  ;;  %5729 = vmatprep.subr.mxu0 %v11931_v63  ;;  %v11951_v62 = vld [vmem:[#allocation60_spill] sm:$0xff] }
 0xbbd   : > { %6908 = vmatmul.mubr.msk.f32.gmra.mxu1 %vm1652_vm0, %v11912_v40  ;;  %6916 = vmatmul.mubr.msk.f32.gmra.mxu0 %vm1652_vm0, %v11912_v40 }
 0xbbe   : > { %5617 = vmatpush1.msra.mxu1 %v11932_v57  ;;  %5650 = vmatprep.mubr.f32.mxu1 %v11841_v60 }
 0xbbf   : > { %5730 = vmatpush1.msra.mxu0 %v11933_v2  ;;  %5763 = vmatprep.mubr.f32.mxu0 %v11841_v60 }
 0xbc0   : > { %5941 = vmatprep.subr.mxu0 %v11934_v22  ;;  %5828 = vmatprep.subr.mxu1 %v11935_v46  ;;  %v11952_v46 = vld [vmem:[#allocation31_spill] sm:$0xff] }
 0xbc1   : > { %v10924_v3 = vpop.f32.mrf.mxu1  ;;  %v10926_v48 = vpop.f32.mrf.mxu0  ;;  %6917 = vmatmul.mubr.msk.f32.vlgmr.msra.gmra.mxu1 %vm1652_vm0, %v8704_v34  ;;  %6925 = vmatmul.mubr.msk.f32.vlgmr.msra.gmra.mxu0 %vm1652_vm0, %v8704_v34 }
 0xbc2   : > { %5656 = vmatprep.mubr.f32.mxu1 %v11841_v60  ;;  %5769 = vmatprep.mubr.f32.mxu0 %v11841_v60 }
 0xbc3   : > { %v10934_v52 = vpop.f32.mrf.mxu1  ;;  %v10936_v19 = vpop.f32.mrf.mxu0  ;;  %5942 = vmatpush1.msra.mxu0 %v11936_v30  ;;  %5829 = vmatpush1.msra.mxu1 %v11937_v26  ;;  %v11953_v30 = vld [vmem:[#allocation62_spill] sm:$0xff]  ;;  %v11954_v26 = vld [vmem:[#allocation33_spill] sm:$0xff] }
 0xbc4   : > { %5943 = vmatprep.subr.mxu0 %v11938_v6  ;;  %5830 = vmatprep.subr.mxu1 %v11939_v11  ;;  %v11955_v6 = vld [vmem:[#allocation64_spill] sm:$0xff] }
 0xbc5   : > { %v10942_v27 = vpop.f32.mrf.mxu1  ;;  %v10944_v61 = vpop.f32.mrf.mxu0  ;;  %6918 = vmatmul.mubr.msk.f32.gmra.mxu1 %vm1652_vm0, %v8712_v38  ;;  %6926 = vmatmul.mubr.msk.f32.gmra.mxu0 %vm1652_vm0, %v8712_v38 }
 0xbc6   : > { %5662 = vmatprep.mubr.f32.mxu1 %v11841_v60  ;;  %5775 = vmatprep.mubr.f32.mxu0 %v11841_v60 }
 0xbc7   : > { %v10952_v42 = vpop.f32.mrf.mxu1  ;;  %v10954_v14 = vpop.f32.mrf.mxu0  ;;  %5944 = vmatpush1.msra.mxu0 %v11940_v4  ;;  %5831 = vmatpush1.msra.mxu1 %v11941_v21 }
 0xbc8   : > { %5945 = vmatprep.subr.mxu0 %v11942_v41  ;;  %5832 = vmatprep.subr.mxu1 %v11943_v39  ;;  %v11956_v39 = vld [vmem:[#allocation35_spill] sm:$0xff] }
 0xbc9   : > { %v10960_v0 = vpop.f32.mrf.mxu1  ;;  %v10962_v53 = vpop.f32.mrf.mxu0  ;;  %6919 = vmatmul.mubr.msk.f32.gmra.mxu1 %vm1652_vm0, %v8719_v28  ;;  %6927 = vmatmul.mubr.msk.f32.gmra.mxu0 %vm1652_vm0, %v8719_v28 }
 0xbca   : > { %5668 = vmatprep.mubr.f32.mxu1 %v11841_v60  ;;  %5781 = vmatprep.mubr.f32.mxu0 %v11841_v60 }
 0xbcb   : > { %v10970_v23 = vpop.f32.mrf.mxu1  ;;  %v10972_v49 = vpop.f32.mrf.mxu0  ;;  %5946 = vmatpush1.msra.mxu0 %v11944_v37  ;;  %5833 = vmatpush1.msra.mxu1 %v11945_v58  ;;  %v11957_v37 = vld [vmem:[#allocation66_spill] sm:$0xff]  ;;  %v11958_v58 = vld [vmem:[#allocation37_spill] sm:$0xff] }
 0xbcc   : > { %5947 = vmatprep.subr.mxu0 %v11946_v59  ;;  %5834 = vmatprep.subr.mxu1 %v11947_v33  ;;  %v11959_v59 = vld [vmem:[#allocation68_spill] sm:$0xff] }
 0xbcd   : > { %v10978_v18 = vpop.f32.mrf.mxu1  ;;  %v10980_v51 = vpop.f32.mrf.mxu0  ;;  %6920 = vmatmul.mubr.msk.f32.gmra.mxu1 %vm1652_vm0, %v8737_v15  ;;  %6928 = vmatmul.mubr.msk.f32.gmra.mxu0 %vm1652_vm0, %v8737_v15 }
 0xbce   : > { %5674 = vmatprep.mubr.f32.mxu1 %v11841_v60  ;;  %5787 = vmatprep.mubr.f32.mxu0 %v11841_v60 }
 0xbcf   : > { %v10988_v35 = vpop.f32.mrf.mxu1  ;;  %v10990_v32 = vpop.f32.mrf.mxu0  ;;  %5948 = vmatpush1.msra.mxu0 %v11948_v20  ;;  %5835 = vmatpush1.msra.mxu1 %v11949_v45 }
 0xbd0   : > { %5836 = vmatprep.subr.mxu1 %v11950_v43  ;;  %5949 = vmatprep.subr.mxu0 %v11951_v62  ;;  %v11960_v62 = vld [vmem:[#allocation39_spill] sm:$0xff] }
 0xbd1   : > { %v10996_v63 = vpop.f32.mrf.mxu1  ;;  %v10998_v57 = vpop.f32.mrf.mxu0  ;;  %6921 = vmatmul.mubr.msk.f32.gmra.mxu1 %vm1652_vm0, %v8750_v56  ;;  %6929 = vmatmul.mubr.msk.f32.gmra.mxu0 %vm1652_vm0, %v8750_v56 }
 0xbd2   : > { %5680 = vmatprep.mubr.f32.mxu1 %v11841_v60  ;;  %5793 = vmatprep.mubr.f32.mxu0 %v11841_v60 }
 0xbd3   : > { %v11006_v2 = vpop.f32.mrf.mxu1  ;;  %v11008_v22 = vpop.f32.mrf.mxu0  ;;  %5837 = vmatpush1.msra.mxu1 %v11952_v46  ;;  %5950 = vmatpush1.msra.mxu0 %v11953_v30  ;;  %v11961_v46 = vld [vmem:[#allocation41_spill] sm:$0xff] }
 0xbd4   : > { %5838 = vmatprep.subr.mxu1 %v11954_v26  ;;  %5951 = vmatprep.subr.mxu0 %v11955_v6  ;;  %v11962_v6 = vld [vmem:[#allocation43_spill] sm:$0xff] }
 0xbd5   : > { %v11014_v11 = vpop.f32.mrf.mxu1  ;;  %v11016_v4 = vpop.f32.mrf.mxu0  ;;  %6922 = vmatmul.mubr.msk.f32.gmra.mxu1 %vm1652_vm0, %v8764_v16  ;;  %6930 = vmatmul.mubr.msk.f32.gmra.mxu0 %vm1652_vm0, %v8764_v16 }
 0xbd6   : > { %5686 = vmatprep.mubr.f32.mxu1 %v11841_v60  ;;  %5799 = vmatprep.mubr.f32.mxu0 %v11841_v60 }
 0xbd7   : > { %v11024_v21 = vpop.f32.mrf.mxu1  ;;  %v11026_v41 = vpop.f32.mrf.mxu0  ;;  %5839 = vmatpush1.msra.mxu1 %v11956_v39  ;;  %5952 = vmatpush1.msra.mxu0 %v11957_v37 }
 0xbd8   : > { %5840 = vmatprep.subr.mxu1 %v11958_v58  ;;  %5953 = vmatprep.subr.mxu0 %v11959_v59  ;;  %v11966_v59 = vld [vmem:[#allocation46_spill] sm:$0xff] }
 0xbd9   : > { %v11032_v33 = vpop.f32.mrf.mxu1  ;;  %v11034_v20 = vpop.f32.mrf.mxu0  ;;  %6923 = vmatmul.mubr.msk.f32.gmra.mxu1 %vm1652_vm0, %v8770_v8  ;;  %6931 = vmatmul.mubr.msk.f32.gmra.mxu0 %vm1652_vm0, %v8770_v8 }
 0xbda   : > { %5692 = vmatprep.mubr.f32.mxu1 %v11841_v60  ;;  %5805 = vmatprep.mubr.f32.mxu0 %v11841_v60 }
 0xbdb   : > { %v11042_v45 = vpop.f32.mrf.mxu1  ;;  %v11044_v43 = vpop.f32.mrf.mxu0  ;;  %5841 = vmatpush1.msra.mxu1 %v11960_v62  ;;  %5954 = vmatpush1.msra.mxu0 %v10523_v1 }
 0xbdc   : > { %5842 = vmatprep.subr.mxu1 %v11961_v46  ;;  %5955 = vmatprep.subr.mxu0 %v10537_v12  ;;  %v11963_v12 = vld [vmem:[#allocation44_spill] sm:$0xff] }
 0xbdd   : > { %v11050_v30 = vpop.f32.mrf.mxu1  ;;  %v11052_v26 = vpop.f32.mrf.mxu0  ;;  %6924 = vmatmul.mubr.msk.f32.gmra.mxu1 %vm1652_vm0, %v11912_v40  ;;  %6932 = vmatmul.mubr.msk.f32.gmra.mxu0 %vm1652_vm0, %v11912_v40 }
 0xbde   : > { %5843 = vmatpush1.msra.mxu1 %v11962_v6  ;;  %5876 = vmatprep.mubr.f32.mxu1 %v11841_v60  ;;  %v11971_v6 = vld [vmem:[#allocation52_spill] sm:$0xff] }
 0xbdf   : > { %v11060_v39 = vpop.f32.mrf.mxu1  ;;  %v4453_v1 = vpop.f32.mrf.mxu0  ;;  %5956 = vmatpush1.msra.mxu0 %v10551_v31  ;;  %5989 = vmatprep.mubr.f32.mxu0 %v11841_v60  ;;  %v11967_v31 = vld [vmem:[#allocation48_spill] sm:$0xff] }
 0xbe0   : > { %6054 = vmatprep.subr.mxu1 %v11963_v12  ;;  %6167 = vmatprep.subr.mxu0 %v10567_v5  ;;  %v11970_v5 = vld [vmem:[#allocation50_spill] sm:$0xff] }
 0xbe1   : > { %v11066_v37 = vpop.f32.mrf.mxu1  ;;  %v11068_v58 = vpop.f32.mrf.mxu0  ;;  %6933 = vmatmul.mubr.msk.f32.vlgmr.msra.gmra.mxu1 %vm1652_vm0, %v8704_v34  ;;  %6941 = vmatmul.mubr.msk.f32.vlgmr.msra.gmra.mxu0 %vm1652_vm0, %v8704_v34 }
 0xbe2   : > { %11964 = vst [vmem:[#allocation6_spill] sm:$0xff] %v11066_v37  ;;  %11965 = vst [vmem:[#allocation7_spill] sm:$0xff] %v11068_v58  ;;  %6055 = vmatpush1.msra.mxu1 %v11966_v59  ;;  %5882 = vmatprep.mubr.f32.mxu1 %v11841_v60  ;;  %v11974_v59 = vld [vmem:[#allocation54_spill] sm:$0xff] }
 0xbe3   : > { %6056 = vmatprep.subr.mxu1 %v11967_v31  ;;  %v11077_v62 = vpop.f32.mrf.mxu1  ;;  %v11079_v46 = vpop.f32.mrf.mxu0  ;;  %5995 = vmatprep.mubr.f32.mxu0 %v11841_v60  ;;  %v11975_v31 = vld [vmem:[#allocation56_spill] sm:$0xff] }
 0xbe4   : > { %11968 = vst [vmem:[#allocation25_spill] sm:$0xff] %v11077_v62  ;;  %11969 = vst [vmem:[#allocation8_spill] sm:$0xff] %v11079_v46  ;;  %6057 = vmatpush1.msra.mxu1 %v11970_v5  ;;  %6168 = vmatpush1.msra.mxu0 %v10578_v50  ;;  %v11978_v50 = vld [vmem:[#allocation58_spill] sm:$0xff] }
 0xbe5   : > { %6058 = vmatprep.subr.mxu1 %v11971_v6  ;;  %v11085_v12 = vpop.f32.mrf.mxu1  ;;  %v11087_v37 = vpop.f32.mrf.mxu0  ;;  %6934 = vmatmul.mubr.msk.f32.gmra.mxu1 %vm1652_vm0, %v8712_v38  ;;  %v11979_v6 = vld [vmem:[#allocation61_spill] sm:$0xff] }
 0xbe6   : > { %11972 = vst [vmem:[#allocation27_spill] sm:$0xff] %v11085_v12  ;;  %11973 = vst [vmem:[#allocation9_spill] sm:$0xff] %v11087_v37  ;;  %6942 = vmatmul.mubr.msk.f32.gmra.mxu0 %vm1652_vm0, %v8712_v38  ;;  %6059 = vmatpush1.msra.mxu1 %v11974_v59  ;;  %v11981_v59 = vld [vmem:[#allocation63_spill] sm:$0xff] }
 0xbe7   : > { %6060 = vmatprep.subr.mxu1 %v11975_v31  ;;  %v11095_v62 = vpop.f32.mrf.mxu1  ;;  %v11097_v5 = vpop.f32.mrf.mxu0  ;;  %5888 = vmatprep.mubr.f32.mxu1 %v11841_v60  ;;  %v11982_v31 = vld [vmem:[#allocation65_spill] sm:$0xff] }
 0xbe8   : > { %11976 = vst [vmem:[#allocation10_spill] sm:$0xff] %v11095_v62  ;;  %11977 = vst [vmem:[#allocation28_spill] sm:$0xff] %v11097_v5  ;;  %6061 = vmatpush1.msra.mxu1 %v11978_v50  ;;  %6001 = vmatprep.mubr.f32.mxu0 %v11841_v60 }
 0xbe9   : > { %6062 = vmatprep.subr.mxu1 %v11979_v6  ;;  %v11103_v12 = vpop.f32.mrf.mxu1  ;;  %v11105_v58 = vpop.f32.mrf.mxu0  ;;  %6935 = vmatmul.mubr.msk.f32.gmra.mxu1 %vm1652_vm0, %v8719_v28  ;;  %v11984_v6 = vld [vmem:[#allocation67_spill] sm:$0xff] }
 0xbea   : > { %11980 = vst [vmem:[#allocation11_spill] sm:$0xff] %v11103_v12  ;;  %6943 = vmatmul.mubr.msk.f32.gmra.mxu0 %vm1652_vm0, %v8719_v28  ;;  %6063 = vmatpush1.msra.mxu1 %v11981_v59  ;;  %v11985_v12 = vld [vmem:[#allocation69_spill] sm:$0xff]  ;;  %v11987_v59 = vld [vmem:[#allocation70_spill] sm:$0xff] }
 0xbeb   : > { %6064 = vmatprep.subr.mxu1 %v11982_v31  ;;  %v11113_v62 = vpop.f32.mrf.mxu1  ;;  %v11115_v50 = vpop.f32.mrf.mxu0  ;;  %5894 = vmatprep.mubr.f32.mxu1 %v11841_v60  ;;  %v11988_v31 = vld [vmem:[#allocation71_spill] sm:$0xff] }
 0xbec   : > { %11983 = vst [vmem:[#allocation30_spill] sm:$0xff] %v11113_v62  ;;  %6065 = vmatpush1.msra.mxu1 %v11984_v6  ;;  %6007 = vmatprep.mubr.f32.mxu0 %v11841_v60 }
 0xbed   : > { %6066 = vmatprep.subr.mxu1 %v11985_v12  ;;  %v11121_v46 = vpop.f32.mrf.mxu1  ;;  %v11123_v37 = vpop.f32.mrf.mxu0  ;;  %6936 = vmatmul.mubr.msk.f32.gmra.mxu1 %vm1652_vm0, %v8737_v15  ;;  %v11990_v12 = vld [vmem:[#allocation72_spill] sm:$0xff] }
 0xbee   : > { %11986 = vst [vmem:[#allocation12_spill] sm:$0xff] %v11121_v46  ;;  %6944 = vmatmul.mubr.msk.f32.gmra.mxu0 %vm1652_vm0, %v8737_v15  ;;  %6067 = vmatpush1.msra.mxu1 %v11987_v59 }
 0xbef   : > { %6169 = vmatprep.subr.mxu0 %v10587_v17  ;;  %6068 = vmatprep.subr.mxu1 %v11988_v31  ;;  %v11132_v6 = vpop.f32.mrf.mxu1  ;;  %v11134_v62 = vpop.f32.mrf.mxu0 }
 0xbf0   : > { %11989 = vst [vmem:[#allocation32_spill] sm:$0xff] %v11132_v6  ;;  %6170 = vmatpush1.msra.mxu0 %v10598_v9  ;;  %6069 = vmatpush1.msra.mxu1 %v11990_v12  ;;  %v11992_v12 = vld [vmem:[#allocation73_spill] sm:$0xff] }
 0xbf1   : > { %5900 = vmatprep.mubr.f32.mxu1 %v11841_v60  ;;  %6013 = vmatprep.mubr.f32.mxu0 %v11841_v60  ;;  %v11140_v46 = vpop.f32.mrf.mxu1  ;;  %v11142_v5 = vpop.f32.mrf.mxu0 }
 0xbf2   : > { %11991 = vst [vmem:[#allocation13_spill] sm:$0xff] %v11140_v46  ;;  %6323 = vmatprep.subr.mxu1 %v4453_v1  ;;  %6937 = vmatmul.mubr.msk.f32.gmra.mxu1 %vm1652_vm0, %v8750_v56 }
 0xbf3   : > { %6945 = vmatmul.mubr.msk.f32.gmra.mxu0 %vm1652_vm0, %v8750_v56  ;;  %6171 = vmatprep.subr.mxu0 %v10607_v13  ;;  %v11149_v17 = vpop.f32.mrf.mxu1  ;;  %v11151_v9 = vpop.f32.mrf.mxu0 }
 0xbf4   : > { %6172 = vmatpush1.msra.mxu0 %v10618_v24  ;;  %5906 = vmatprep.mubr.f32.mxu1 %v11841_v60 }
 0xbf5   : > { %6019 = vmatprep.mubr.f32.mxu0 %v11841_v60  ;;  %v11156_v59 = vpop.f32.mrf.mxu1  ;;  %v11158_v1 = vpop.f32.mrf.mxu0  ;;  %6173 = vmatprep.subr.mxu0 %v10627_v47 }
 0xbf6   : > { %6938 = vmatmul.mubr.msk.f32.gmra.mxu1 %vm1652_vm0, %v8764_v16  ;;  %6174 = vmatpush1.msra.mxu0 %v10638_v10 }
 0xbf7   : > { %6946 = vmatmul.mubr.msk.f32.gmra.mxu0 %vm1652_vm0, %v8764_v16  ;;  %v11166_v13 = vpop.f32.mrf.mxu1  ;;  %v11168_v24 = vpop.f32.mrf.mxu0  ;;  %5912 = vmatprep.mubr.f32.mxu1 %v11841_v60 }
 0xbf8   : > { %6025 = vmatprep.mubr.f32.mxu0 %v11841_v60  ;;  %6175 = vmatprep.subr.mxu0 %v10647_v44 }
 0xbf9   : > { %v11173_v31 = vpop.f32.mrf.mxu1  ;;  %v11175_v47 = vpop.f32.mrf.mxu0  ;;  %6176 = vmatpush1.msra.mxu0 %v11992_v12 }
 0xbfa   : > { %6939 = vmatmul.mubr.msk.f32.gmra.mxu1 %vm1652_vm0, %v8770_v8  ;;  %6177 = vmatprep.subr.mxu0 %v10667_v25 }
 0xbfb   : > { %6947 = vmatmul.mubr.msk.f32.gmra.mxu0 %vm1652_vm0, %v8770_v8  ;;  %v11183_v10 = vpop.f32.mrf.mxu1  ;;  %v11185_v6 = vpop.f32.mrf.mxu0  ;;  %5918 = vmatprep.mubr.f32.mxu1 %v11841_v60 }
 0xbfc   : > { %6031 = vmatprep.mubr.f32.mxu0 %v11841_v60  ;;  %6178 = vmatpush1.msra.mxu0 %v10678_v29 }
 0xbfd   : > { %v11190_v44 = vpop.f32.mrf.mxu1  ;;  %v11192_v12 = vpop.f32.mrf.mxu0  ;;  %6179 = vmatprep.subr.mxu0 %v10687_v36 }
 0xbfe   : > { %6940 = vmatmul.mubr.msk.f32.gmra.mxu1 %vm1652_vm0, %v11912_v40  ;;  %6180 = vmatpush1.msra.mxu0 %v10698_v55 }
 0xbff   : > { %6948 = vmatmul.mubr.msk.f32.gmra.mxu0 %vm1652_vm0, %v11912_v40  ;;  %v11200_v25 = vpop.f32.mrf.mxu1  ;;  %v11202_v46 = vpop.f32.mrf.mxu0  ;;  %6181 = vmatprep.subr.mxu0 %v10707_v54 }
 0xc00   : > { %6102 = vmatprep.mubr.f32.mxu1 %v11841_v60  ;;  %6182 = vmatpush1.msra.mxu0 %v10716_v7 }
 0xc01   : > { %6215 = vmatprep.mubr.f32.mxu0 %v11841_v60  ;;  %v11208_v36 = vpop.f32.mrf.mxu1  ;;  %v11210_v29 = vpop.f32.mrf.mxu0 }
 0xc02   : > { %11993 = vst [vmem:[#allocation34_spill] sm:$0xff] %v11208_v36  ;;  %6949 = vmatmul.mubr.msk.f32.vlgmr.msra.gmra.mxu1 %vm1652_vm0, %v8704_v34 }
 0xc03   : > { %6957 = vmatmul.mubr.msk.f32.vlgmr.msra.gmra.mxu0 %vm1652_vm0, %v8704_v34  ;;  %6324 = vmatpush1.msra.mxu1 %v11052_v26  ;;  %v11217_v55 = vpop.f32.mrf.mxu1  ;;  %v11219_v54 = vpop.f32.mrf.mxu0 }
 0xc04   : > { %6325 = vmatprep.subr.mxu1 %v11044_v43  ;;  %6108 = vmatprep.mubr.f32.mxu1 %v11841_v60 }
 0xc05   : > { %6326 = vmatpush1.msra.mxu1 %v11034_v20  ;;  %6221 = vmatprep.mubr.f32.mxu0 %v11841_v60  ;;  %v11225_v7 = vpop.f32.mrf.mxu1  ;;  %v11227_v36 = vpop.f32.mrf.mxu0 }
 0xc06   : > { %6327 = vmatprep.subr.mxu1 %v11026_v41  ;;  %6950 = vmatmul.mubr.msk.f32.gmra.mxu1 %vm1652_vm0, %v8712_v38 }
 0xc07   : > { %6958 = vmatmul.mubr.msk.f32.gmra.mxu0 %vm1652_vm0, %v8712_v38  ;;  %6328 = vmatpush1.msra.mxu1 %v11016_v4  ;;  %v11235_v34 = vpop.f32.mrf.mxu1  ;;  %v11237_v43 = vpop.f32.mrf.mxu0 }
 0xc08   : > { %6329 = vmatprep.subr.mxu1 %v11008_v22  ;;  %6114 = vmatprep.mubr.f32.mxu1 %v11841_v60 }
 0xc09   : > { %6330 = vmatpush1.msra.mxu1 %v10998_v57  ;;  %6227 = vmatprep.mubr.f32.mxu0 %v11841_v60  ;;  %v11243_v41 = vpop.f32.mrf.mxu1  ;;  %v11245_v20 = vpop.f32.mrf.mxu0 }
 0xc0a   : > { %6331 = vmatprep.subr.mxu1 %v10990_v32  ;;  %6951 = vmatmul.mubr.msk.f32.gmra.mxu1 %vm1652_vm0, %v8719_v28 }
 0xc0b   : > { %6959 = vmatmul.mubr.msk.f32.gmra.mxu0 %vm1652_vm0, %v8719_v28  ;;  %6332 = vmatpush1.msra.mxu1 %v10980_v51  ;;  %v11253_v38 = vpop.f32.mrf.mxu1  ;;  %v11255_v22 = vpop.f32.mrf.mxu0 }
 0xc0c   : > { %6333 = vmatprep.subr.mxu1 %v10972_v49  ;;  %6120 = vmatprep.mubr.f32.mxu1 %v11841_v60 }
 0xc0d   : > { %6334 = vmatpush1.msra.mxu1 %v10962_v53  ;;  %6233 = vmatprep.mubr.f32.mxu0 %v11841_v60  ;;  %v11261_v32 = vpop.f32.mrf.mxu1  ;;  %v11263_v57 = vpop.f32.mrf.mxu0 }
 0xc0e   : > { %6335 = vmatprep.subr.mxu1 %v10954_v14  ;;  %6952 = vmatmul.mubr.msk.f32.gmra.mxu1 %vm1652_vm0, %v8737_v15 }
 0xc0f   : > { %6960 = vmatmul.mubr.msk.f32.gmra.mxu0 %vm1652_vm0, %v8737_v15  ;;  %6336 = vmatpush1.msra.mxu1 %v10944_v61  ;;  %v11271_v28 = vpop.f32.mrf.mxu1  ;;  %v11273_v49 = vpop.f32.mrf.mxu0 }
 0xc10   : > { %6337 = vmatprep.subr.mxu1 %v10936_v19  ;;  %6126 = vmatprep.mubr.f32.mxu1 %v11841_v60 }
 0xc11   : > { %6338 = vmatpush1.msra.mxu1 %v10926_v48  ;;  %6239 = vmatprep.mubr.f32.mxu0 %v11841_v60  ;;  %v11279_v14 = vpop.f32.mrf.mxu1  ;;  %v11281_v53 = vpop.f32.mrf.mxu0 }
 0xc12   : > { %6339 = vmatprep.subr.mxu1 %v11060_v39  ;;  %6953 = vmatmul.mubr.msk.f32.gmra.mxu1 %vm1652_vm0, %v8750_v56 }
 0xc13   : > { %6961 = vmatmul.mubr.msk.f32.gmra.mxu0 %vm1652_vm0, %v8750_v56  ;;  %6340 = vmatpush1.msra.mxu1 %v11050_v30  ;;  %v11289_v15 = vpop.f32.mrf.mxu1  ;;  %v4887_v19 = vpop.f32.mrf.mxu0 }
 0xc14   : > { %6341 = vmatprep.subr.mxu1 %v11042_v45  ;;  %6132 = vmatprep.mubr.f32.mxu1 %v11841_v60 }
 0xc15   : > { %6342 = vmatpush1.msra.mxu1 %v11032_v33  ;;  %6245 = vmatprep.mubr.f32.mxu0 %v11841_v60  ;;  %v11295_v48 = vpop.f32.mrf.mxu1  ;;  %v4891_v61 = vpop.f32.mrf.mxu0 }
 0xc16   : > { %6343 = vmatprep.subr.mxu1 %v11024_v21  ;;  %6954 = vmatmul.mubr.msk.f32.gmra.mxu1 %vm1652_vm0, %v8764_v16 }
 0xc17   : > { %6962 = vmatmul.mubr.msk.f32.gmra.mxu0 %vm1652_vm0, %v8764_v16  ;;  %6344 = vmatpush1.msra.mxu1 %v11014_v11  ;;  %v11303_v56 = vpop.f32.mrf.mxu1  ;;  %v4893_v51 = vpop.f32.mrf.mxu0 }
 0xc18   : > { %6345 = vmatprep.subr.mxu1 %v11006_v2  ;;  %6138 = vmatprep.mubr.f32.mxu1 %v11841_v60 }
 0xc19   : > { %6346 = vmatpush1.msra.mxu1 %v10996_v63  ;;  %6251 = vmatprep.mubr.f32.mxu0 %v11841_v60  ;;  %v11309_v4 = vpop.f32.mrf.mxu1  ;;  %v4897_v21 = vpop.f32.mrf.mxu0 }
 0xc1a   : > { %6347 = vmatprep.subr.mxu1 %v10988_v35  ;;  %6955 = vmatmul.mubr.msk.f32.gmra.mxu1 %vm1652_vm0, %v8770_v8 }
 0xc1b   : > { %6963 = vmatmul.mubr.msk.f32.gmra.mxu0 %vm1652_vm0, %v8770_v8  ;;  %6348 = vmatpush1.msra.mxu1 %v10978_v18  ;;  %v11317_v16 = vpop.f32.mrf.mxu1  ;;  %v4899_v2 = vpop.f32.mrf.mxu0 }
 0xc1c   : > { %6349 = vmatprep.subr.mxu1 %v10970_v23  ;;  %6144 = vmatprep.mubr.f32.mxu1 %v11841_v60 }
 0xc1d   : > { %6350 = vmatpush1.msra.mxu1 %v10960_v0  ;;  %6257 = vmatprep.mubr.f32.mxu0 %v11841_v60  ;;  %v4790_v35 = vpop.f32.mrf.mxu1  ;;  %v4903_v63 = vpop.f32.mrf.mxu0 }
 0xc1e   : > { %6351 = vmatprep.subr.mxu1 %v10952_v42  ;;  %6956 = vmatmul.mubr.msk.f32.gmra.mxu1 %vm1652_vm0, %v11912_v40 }
 0xc1f   : > { %6964 = vmatmul.mubr.msk.f32.gmra.mxu0 %vm1652_vm0, %v11912_v40  ;;  %6352 = vmatpush1.msra.mxu1 %v10942_v27  ;;  %v4792_v8 = vpop.f32.mrf.mxu1  ;;  %v4905_v23 = vpop.f32.mrf.mxu0 }
 0xc20   : > { %6353 = vmatprep.subr.mxu1 %v10934_v52  ;;  %6394 = vmatprep.subr.mxu0 %v4905_v23 }
 0xc21   : > { %6354 = vmatpush1.msra.mxu1 %v10924_v3  ;;  %v11331_v0 = vpop.f32.mrf.mxu1  ;;  %v11333_v18 = vpop.f32.mrf.mxu0  ;;  %6395 = vmatpush1.msra.mxu0 %v4903_v63 }
 0xc22   : > { %6355 = vmatprep.subr.mxu1 %v11202_v46  ;;  %6396 = vmatprep.subr.mxu0 %v4899_v2 }
 0xc23   : > { %6356 = vmatpush2.msra.mxu1 %v11192_v12  ;;  %v11337_v40 = vpop.f32.mrf.mxu1  ;;  %v11339_v27 = vpop.f32.mrf.mxu0  ;;  %6397 = vmatpush1.msra.mxu0 %v4897_v21  ;;  %v12010_v21 = vld [vmem:[#allocation6_spill] sm:$0xff] }
 0xc24   : > { %6357 = vmatprep.subr.mxu1 %v11185_v6  ;;  %6398 = vmatprep.subr.mxu0 %v4893_v51  ;;  %v12008_v51 = vld [vmem:[#allocation25_spill] sm:$0xff] }
 0xc25   : > { %6358 = vmatpush2.msra.mxu1 %v11175_v47  ;;  %v11343_v3 = vpop.f32.mrf.mxu1  ;;  %v11345_v52 = vpop.f32.mrf.mxu0  ;;  %6399 = vmatpush1.msra.mxu0 %v4891_v61 }
 0xc26   : > { %6359 = vmatprep.subr.mxu1 %v11168_v24  ;;  %6400 = vmatprep.subr.mxu0 %v4887_v19 }
 0xc27   : > { %6360 = vmatpush2.msra.mxu1 %v11158_v1  ;;  %v11349_v42 = vpop.f32.mrf.mxu1  ;;  %v11351_v11 = vpop.f32.mrf.mxu0  ;;  %6401 = vmatpush1.msra.mxu0 %v11281_v53 }
 0xc28   : > { %6361 = vmatprep.subr.mxu1 %v11151_v9  ;;  %6402 = vmatprep.subr.mxu0 %v11273_v49  ;;  %v12003_v49 = vld [vmem:[#allocation30_spill] sm:$0xff] }
 0xc29   : > { %6362 = vmatpush2.msra.mxu1 %v11142_v5  ;;  %v11357_v33 = vpop.f32.mrf.mxu1  ;;  %v11359_v45 = vpop.f32.mrf.mxu0  ;;  %6403 = vmatpush1.msra.mxu0 %v11263_v57 }
 0xc2a   : > { %6363 = vmatprep.subr.mxu1 %v11134_v62  ;;  %6404 = vmatprep.subr.mxu0 %v11255_v22  ;;  %v11994_v62 = vld [vmem:[#allocation28_spill] sm:$0xff] }
 0xc2b   : > { %6364 = vmatpush2.msra.mxu1 %v11123_v37  ;;  %v11365_v30 = vpop.f32.mrf.mxu1  ;;  %v11367_v26 = vpop.f32.mrf.mxu0  ;;  %6405 = vmatpush1.msra.mxu0 %v11245_v20  ;;  %v11995_v37 = vld [vmem:[#allocation9_spill] sm:$0xff]  ;;  %v12001_v20 = vld [vmem:[#allocation4_spill] sm:$0xff] }
 0xc2c   : > { %6365 = vmatprep.subr.mxu1 %v11115_v50  ;;  %6406 = vmatprep.subr.mxu0 %v11237_v43  ;;  %v11996_v50 = vld [vmem:[#allocation8_spill] sm:$0xff]  ;;  %v12002_v22 = vsub.s32 1, %v12001_v20 }
 0xc2d   : > { %6366 = vmatpush2.msra.mxu1 %v11105_v58  ;;  %v11373_v39 = vpop.f32.mrf.mxu1  ;;  %v11375_v46 = vpop.f32.mrf.mxu0  ;;  %6407 = vmatpush1.msra.mxu0 %v11227_v36  ;;  %v11997_v58 = vld [vmem:[#allocation7_spill] sm:$0xff] }
 0xc2e   : > { %6367 = vmatprep.subr.mxu1 %v11994_v62  ;;  %6408 = vmatprep.subr.mxu0 %v11219_v54  ;;  %v12000_v54 = vld [vmem:[#allocation12_spill] sm:$0xff] }
 0xc2f   : > { %6368 = vmatpush2.msra.mxu1 %v11995_v37  ;;  %v11381_v5 = vpop.f32.mrf.mxu1  ;;  %v11383_v6 = vpop.f32.mrf.mxu0  ;;  %6409 = vmatpush1.msra.mxu0 %v11210_v29 }
 0xc30   : > { %6369 = vmatprep.subr.mxu1 %v11996_v50  ;;  %6410 = vmatprep.subr.mxu0 %v4792_v8 }
 0xc31   : > { %6370 = vmatpush2.msra.mxu1 %v11997_v58  ;;  %v11388_v9 = vpop.f32.mrf.mxu1  ;;  %v11390_v1 = vpop.f32.mrf.mxu0  ;;  %6411 = vmatpush1.msra.mxu0 %v4790_v35 }
 0xc32   : > { %6371 = vmatprep.subr.mxu1 %v11200_v25  ;;  %6412 = vmatprep.subr.mxu0 %v11317_v16 }
 0xc33   : > { %6372 = vmatpush2.msra.mxu1 %v11190_v44  ;;  %v11395_v24 = vpop.f32.mrf.mxu1  ;;  %v5113_v47 = vpop.f32.mrf.mxu0  ;;  %6413 = vmatpush1.msra.mxu0 %v11309_v4  ;;  %v12009_v4 = vld [vmem:[#allocation34_spill] sm:$0xff] }
 0xc34   : > { %6373 = vmatprep.subr.mxu1 %v11183_v10  ;;  %6414 = vmatprep.subr.mxu0 %v11303_v56  ;;  %v11998_v10 = vld [vmem:[#allocation13_spill] sm:$0xff] }
 0xc35   : > { %6374 = vmatpush2.msra.mxu1 %v11173_v31  ;;  %v11401_v12 = vpop.f32.mrf.mxu1  ;;  %v5117_v36 = vpop.f32.mrf.mxu0  ;;  %6415 = vmatpush1.msra.mxu0 %v11295_v48  ;;  %v11415_v31 = vld [vmem:[%s11737_s17] sm:$0xff] }
 0xc36   : > { %6375 = vmatprep.subr.mxu1 %v11166_v13  ;;  %6416 = vmatprep.subr.mxu0 %v11289_v15  ;;  %v6285_v57 = vrot.slane %v11415_v31, %v12002_v22  ;;  %v12005_v15 = vld [vmem:[#allocation10_spill] sm:$0xff]  ;;  %v12007_v48 = vld [vmem:[#allocation27_spill] sm:$0xff] }
 0xc37   : > { %6376 = vmatpush2.msra.mxu1 %v11156_v59  ;;  %v11407_v44 = vpop.f32.mrf.mxu1  ;;  %v5119_v25 = vpop.f32.mrf.mxu0  ;;  %6417 = vmatpush1.msra.mxu0 %v11279_v14  ;;  %v11999_v59 = vld [vmem:[#allocation32_spill] sm:$0xff]  ;;  %v12004_v14 = vld [vmem:[#allocation11_spill] sm:$0xff] }
 0xc38   : > { %6377 = vmatprep.subr.mxu1 %v11149_v17  ;;  %6418 = vmatprep.subr.mxu0 %v11271_v28  ;;  %v6292_v28 = vsub.s32 3, %v12001_v20 }
 0xc39   : > { %6378 = vmatpush2.msra.mxu1 %v11998_v10  ;;  %v11418_v13 = vpop.f32.mrf.mxu1  ;;  %v5123_v29 = vpop.f32.mrf.mxu0  ;;  %6419 = vmatpush1.msra.mxu0 %v11261_v32  ;;  %v6300_v32 = vsub.s32 5, %v12001_v20 }
 0xc3a   : > { %6379 = vmatprep.subr.mxu1 %v11999_v59  ;;  %6420 = vmatprep.subr.mxu0 %v11253_v38 }
 0xc3b   : > { %6380 = vmatpush2.msra.mxu1 %v12000_v54  ;;  %v5012_v17 = vpop.f32.mrf.mxu1  ;;  %v5125_v43 = vpop.f32.mrf.mxu0  ;;  %6421 = vmatpush1.msra.mxu0 %v11243_v41  ;;  %v12006_v41 = vld [vmem:[#allocation5_spill] sm:$0xff] }
 0xc3c   : > { %6381 = vmatprep.subr.mxu1 %v12003_v49  ;;  %6422 = vmatprep.subr.mxu0 %v11235_v34  ;;  %v6281_v19 = vrot.slane %v11415_v31, %v12006_v41  ;;  %v6293_v34 = vrot.slane %v11415_v31, %v6292_v28 }
 0xc3d   : > { %6382 = vmatpush2.msra.mxu1 %v12004_v14  ;;  %v5016_v38 = vpop.f32.mrf.mxu1  ;;  %v5129_v53 = vpop.f32.mrf.mxu0  ;;  %6423 = vmatpush1.msra.mxu0 %v11225_v7  ;;  %v6301_v7 = vrot.slane %v11415_v31, %v6300_v32 }
 0xc3e   : > { %6383 = vmatprep.subr.mxu1 %v12005_v15  ;;  %6424 = vmatprep.subr.mxu0 %v11217_v55 }
 0xc3f   : > { %6384 = vmatpush2.msra.mxu1 %v12007_v48  ;;  %v5018_v61 = vpop.f32.mrf.mxu1  ;;  %v5131_v56 = vpop.f32.mrf.mxu0  ;;  %6387 = vmatprep.mubr.f32.mxu1 %v6285_v57 }
 0xc40   : > { %6385 = vmatprep.subr.mxu1 %v12008_v51  ;;  %6425 = vmatpush1.msra.mxu0 %v12009_v4 }
 0xc41   : > { %6386 = vmatpush2.msra.mxu1 %v12010_v21  ;;  %6426 = vmatprep.subr.mxu0 %v5131_v56  ;;  %v11444_v55 = vpop.f32.mrf.mxu1  ;;  %v11446_v16 = vpop.f32.mrf.mxu0 }
 0xc42   : > { %6388 = vmatmul.mubr.f32.vlgmr.msra.gmra.mxu1 %v6281_v19  ;;  %6427 = vmatpush2.msra.mxu0 %v5129_v53 }
 0xc43   : > { %6428 = vmatprep.subr.mxu0 %v5125_v43  ;;  %v11448_v2 = vpop.f32.mrf.mxu1  ;;  %v11450_v35 = vpop.f32.mrf.mxu0  ;;  %6458 = vmatprep.mubr.f32.mxu0 %v6293_v34 }
 0xc44   : > { %6429 = vmatpush2.msra.mxu0 %v5123_v29  ;;  %6529 = vmatprep.mubr.f32.mxu1 %v6301_v7 }
 0xc45   : > { %6430 = vmatprep.subr.mxu0 %v5119_v25  ;;  %v11452_v63 = vpop.f32.mrf.mxu1  ;;  %v11454_v8 = vpop.f32.mrf.mxu0 }
 0xc46   : > { %6431 = vmatpush2.msra.mxu0 %v5117_v36 }
 0xc47   : > { %6432 = vmatprep.subr.mxu0 %v5113_v47  ;;  %v11456_v23 = vpop.f32.mrf.mxu1  ;;  %v11458_v62 = vpop.f32.mrf.mxu0 }
 0xc48   : > { %6433 = vmatpush2.msra.mxu0 %v11390_v1 }
 0xc49   : > { %6434 = vmatprep.subr.mxu0 %v11383_v6  ;;  %v11462_v37 = vpop.f32.mrf.mxu1  ;;  %v11464_v50 = vpop.f32.mrf.mxu0 }
 0xc4a   : > { %6435 = vmatpush2.msra.mxu0 %v11375_v46 }
 0xc4b   : > { %6436 = vmatprep.subr.mxu0 %v11367_v26  ;;  %v11468_v58 = vpop.f32.mrf.mxu1  ;;  %v11470_v36 = vpop.f32.mrf.mxu0 }
 0xc4c   : > { %6437 = vmatpush2.msra.mxu0 %v11359_v45 }
 0xc4d   : > { %6438 = vmatprep.subr.mxu0 %v11351_v11  ;;  %v11474_v47 = vpop.f32.mrf.mxu1  ;;  %v5331_v1 = vpop.f32.mrf.mxu0 }
 0xc4e   : > { %6439 = vmatpush2.msra.mxu0 %v11345_v52 }
 0xc4f   : > { %6440 = vmatprep.subr.mxu0 %v11339_v27  ;;  %v11478_v6 = vpop.f32.mrf.mxu1  ;;  %v5333_v46 = vpop.f32.mrf.mxu0 }
 0xc50   : > { %6441 = vmatpush2.msra.mxu0 %v11333_v18 }
 0xc51   : > { %6442 = vmatprep.subr.mxu0 %v5018_v61  ;;  %v11481_v26 = vpop.f32.mrf.mxu1  ;;  %v5337_v25 = vpop.f32.mrf.mxu0 }
 0xc52   : > { %6443 = vmatpush2.msra.mxu0 %v5016_v38 }
 0xc53   : > { %6444 = vmatprep.subr.mxu0 %v5012_v17  ;;  %v11483_v45 = vpop.f32.mrf.mxu1  ;;  %v5339_v11 = vpop.f32.mrf.mxu0 }
 0xc54   : > { %6445 = vmatpush2.msra.mxu0 %v11418_v13  ;;  %v6288_v13 = vsub.s32 2, %v12001_v20 }
 0xc55   : > { %6446 = vmatprep.subr.mxu0 %v11407_v44  ;;  %v11487_v52 = vpop.f32.mrf.mxu1  ;;  %v5343_v27 = vpop.f32.mrf.mxu0 }
 0xc56   : > { %6447 = vmatpush2.msra.mxu0 %v11401_v12 }
 0xc57   : > { %6448 = vmatprep.subr.mxu0 %v11395_v24  ;;  %v11491_v18 = vpop.f32.mrf.mxu1  ;;  %v5345_v10 = vpop.f32.mrf.mxu0 }
 0xc58   : > { %6449 = vmatpush2.msra.mxu0 %v11388_v9  ;;  %v6289_v9 = vrot.slane %v11415_v31, %v6288_v13 }
 0xc59   : > { %6450 = vmatprep.subr.mxu0 %v11381_v5  ;;  %v5236_v29 = vpop.f32.mrf.mxu1  ;;  %v5349_v59 = vpop.f32.mrf.mxu0 }
 0xc5a   : > { %6451 = vmatpush2.msra.mxu0 %v11373_v39 }
 0xc5b   : > { %6452 = vmatprep.subr.mxu0 %v11365_v30  ;;  %v5238_v44 = vpop.f32.mrf.mxu1  ;;  %v5351_v54 = vpop.f32.mrf.mxu0 }
 0xc5c   : > { %6453 = vmatpush2.msra.mxu0 %v11357_v33 }
 0xc5d   : > { %6454 = vmatprep.subr.mxu0 %v11349_v42  ;;  %v5242_v24 = vpop.f32.mrf.mxu1  ;;  %v5355_v12 = vpop.f32.mrf.mxu0  ;;  %v6308_v42 = vsub.s32 7, %v12001_v20 }
 0xc5e   : > { %6455 = vmatpush2.msra.mxu0 %v11343_v3 }
 0xc5f   : > { %6456 = vmatprep.subr.mxu0 %v11337_v40  ;;  %v5244_v5 = vpop.f32.mrf.mxu1  ;;  %v5357_v17 = vpop.f32.mrf.mxu0  ;;  %v6309_v40 = vrot.slane %v11415_v31, %v6308_v42 }
 0xc60   : > { %6457 = vmatpush2.msra.mxu0 %v11331_v0  ;;  %6465 = vmatprep.subr.mxu1 %v5357_v17 }
 0xc61   : > { %6459 = vmatmul.mubr.f32.vlgmr.msra.gmra.mxu0 %v6289_v9  ;;  %v11504_v30 = vpop.f32.mrf.mxu1  ;;  %v11506_v39 = vpop.f32.mrf.mxu0  ;;  %6466 = vmatpush1.msra.mxu1 %v5355_v12 }
 0xc62   : > { %6467 = vmatprep.subr.mxu1 %v5351_v54  ;;  %6600 = vmatprep.mubr.f32.mxu0 %v6309_v40 }
 0xc63   : > { %v11509_v33 = vpop.f32.mrf.mxu1  ;;  %v11511_v43 = vpop.f32.mrf.mxu0  ;;  %6468 = vmatpush1.msra.mxu1 %v5349_v59 }
 0xc64   : > { %6469 = vmatprep.subr.mxu1 %v5345_v10 }
 0xc65   : > { %v11514_v3 = vpop.f32.mrf.mxu1  ;;  %v11516_v0 = vpop.f32.mrf.mxu0  ;;  %6470 = vmatpush1.msra.mxu1 %v5343_v27 }
 0xc66   : > { %6471 = vmatprep.subr.mxu1 %v5339_v11 }
 0xc67   : > { %v11518_v22 = vpop.f32.mrf.mxu1  ;;  %v11520_v57 = vpop.f32.mrf.mxu0  ;;  %6472 = vmatpush1.msra.mxu1 %v5337_v25 }
 0xc68   : > { %6473 = vmatprep.subr.mxu1 %v5333_v46 }
 0xc69   : > { %v11522_v28 = vpop.f32.mrf.mxu1  ;;  %v11524_v49 = vpop.f32.mrf.mxu0  ;;  %6474 = vmatpush1.msra.mxu1 %v5331_v1 }
 0xc6a   : > { %6475 = vmatprep.subr.mxu1 %v11470_v36 }
 0xc6b   : > { %v11527_v32 = vpop.f32.mrf.mxu1  ;;  %v5553_v14 = vpop.f32.mrf.mxu0  ;;  %6476 = vmatpush1.msra.mxu1 %v11464_v50 }
 0xc6c   : > { %6477 = vmatprep.subr.mxu1 %v11458_v62 }
 0xc6d   : > { %v11531_v38 = vpop.f32.mrf.mxu1  ;;  %v5557_v53 = vpop.f32.mrf.mxu0  ;;  %6478 = vmatpush1.msra.mxu1 %v11454_v8 }
 0xc6e   : > { %6479 = vmatprep.subr.mxu1 %v11450_v35 }
 0xc6f   : > { %v11535_v15 = vpop.f32.mrf.mxu1  ;;  %v5559_v19 = vpop.f32.mrf.mxu0  ;;  %6480 = vmatpush1.msra.mxu1 %v11446_v16 }
 0xc70   : > { %6481 = vmatprep.subr.mxu1 %v5244_v5  ;;  %v6296_v5 = vsub.s32 4, %v12001_v20 }
 0xc71   : > { %v11538_v48 = vpop.f32.mrf.mxu1  ;;  %v5563_v61 = vpop.f32.mrf.mxu0  ;;  %6482 = vmatpush1.msra.mxu1 %v5242_v24 }
 0xc72   : > { %6483 = vmatprep.subr.mxu1 %v5238_v44  ;;  %v6297_v40 = vrot.slane %v11415_v31, %v6296_v5 }
 0xc73   : > { %v11540_v56 = vpop.f32.mrf.mxu1  ;;  %v5565_v34 = vpop.f32.mrf.mxu0  ;;  %6484 = vmatpush1.msra.mxu1 %v5236_v29 }
 0xc74   : > { %6485 = vmatprep.subr.mxu1 %v11491_v18 }
 0xc75   : > { %v11543_v51 = vpop.f32.mrf.mxu1  ;;  %v5569_v4 = vpop.f32.mrf.mxu0  ;;  %6486 = vmatpush1.msra.mxu1 %v11487_v52 }
 0xc76   : > { %6487 = vmatprep.subr.mxu1 %v11483_v45 }
 0xc77   : > { %v5458_v7 = vpop.f32.mrf.mxu1  ;;  %v5571_v21 = vpop.f32.mrf.mxu0  ;;  %6488 = vmatpush1.msra.mxu1 %v11481_v26 }
 0xc78   : > { %6489 = vmatprep.subr.mxu1 %v11478_v6 }
 0xc79   : > { %v5462_v16 = vpop.f32.mrf.mxu1  ;;  %v5575_v35 = vpop.f32.mrf.mxu0  ;;  %6490 = vmatpush1.msra.mxu1 %v11474_v47 }
 0xc7a   : > { %6491 = vmatprep.subr.mxu1 %v11468_v58 }
 0xc7b   : > { %v5464_v8 = vpop.f32.mrf.mxu1  ;;  %v5577_v62 = vpop.f32.mrf.mxu0  ;;  %6492 = vmatpush1.msra.mxu1 %v11462_v37 }
 0xc7c   : > { %6493 = vmatprep.subr.mxu1 %v11456_v23 }
 0xc7d   : > { %v5468_v50 = vpop.f32.mrf.mxu1  ;;  %v5581_v36 = vpop.f32.mrf.mxu0  ;;  %6494 = vmatpush1.msra.mxu1 %v11452_v63 }
 0xc7e   : > { %6495 = vmatprep.subr.mxu1 %v11448_v2 }
 0xc7f   : > { %v5470_v1 = vpop.f32.mrf.mxu1  ;;  %v5583_v6 = vpop.f32.mrf.mxu0  ;;  %6496 = vmatpush1.msra.mxu1 %v11444_v55 }
 0xc80   : > { %6497 = vmatprep.subr.mxu1 %v5583_v6 }
 0xc81   : > { %v11556_v47 = vpop.f32.mrf.mxu1  ;;  %v11558_v58 = vpop.f32.mrf.mxu0  ;;  %6498 = vmatpush2.msra.mxu1 %v5581_v36 }
 0xc82   : > { %6499 = vmatprep.subr.mxu1 %v5577_v62 }
 0xc83   : > { %v11560_v37 = vpop.f32.mrf.mxu1  ;;  %v11562_v23 = vpop.f32.mrf.mxu0  ;;  %6500 = vmatpush2.msra.mxu1 %v5575_v35 }
 0xc84   : > { %6501 = vmatprep.subr.mxu1 %v5571_v21 }
 0xc85   : > { %v11564_v63 = vpop.f32.mrf.mxu1  ;;  %v11566_v2 = vpop.f32.mrf.mxu0  ;;  %6502 = vmatpush2.msra.mxu1 %v5569_v4 }
 0xc86   : > { %6503 = vmatprep.subr.mxu1 %v5565_v34 }
 0xc87   : > { %v11568_v55 = vpop.f32.mrf.mxu1  ;;  %v11570_v46 = vpop.f32.mrf.mxu0  ;;  %6504 = vmatpush2.msra.mxu1 %v5563_v61 }
 0xc88   : > { %6505 = vmatprep.subr.mxu1 %v5559_v19 }
 0xc89   : > { %v11572_v26 = vpop.f32.mrf.mxu1  ;;  %v11574_v25 = vpop.f32.mrf.mxu0  ;;  %6506 = vmatpush2.msra.mxu1 %v5557_v53 }
 0xc8a   : > { %6507 = vmatprep.subr.mxu1 %v5553_v14 }
 0xc8b   : > { %v11576_v45 = vpop.f32.mrf.mxu1  ;;  %v11578_v11 = vpop.f32.mrf.mxu0  ;;  %6508 = vmatpush2.msra.mxu1 %v11524_v49 }
 0xc8c   : > { %6509 = vmatprep.subr.mxu1 %v11520_v57 }
 0xc8d   : > { %v11582_v52 = vpop.f32.mrf.mxu1  ;;  %v5783_v27 = vpop.f32.mrf.mxu0  ;;  %6510 = vmatpush2.msra.mxu1 %v11516_v0 }
 0xc8e   : > { %6511 = vmatprep.subr.mxu1 %v11511_v43 }
 0xc8f   : > { %v11586_v18 = vpop.f32.mrf.mxu1  ;;  %v5785_v10 = vpop.f32.mrf.mxu0  ;;  %6512 = vmatpush2.msra.mxu1 %v11506_v39 }
 0xc90   : > { %6513 = vmatprep.subr.mxu1 %v5470_v1 }
 0xc91   : > { %v11589_v29 = vpop.f32.mrf.mxu1  ;;  %v5789_v59 = vpop.f32.mrf.mxu0  ;;  %6514 = vmatpush2.msra.mxu1 %v5468_v50 }
 0xc92   : > { %6515 = vmatprep.subr.mxu1 %v5464_v8 }
 0xc93   : > { %v11591_v13 = vpop.f32.mrf.mxu1  ;;  %v5791_v44 = vpop.f32.mrf.mxu0  ;;  %6516 = vmatpush2.msra.mxu1 %v5462_v16 }
 0xc94   : > { %6517 = vmatprep.subr.mxu1 %v5458_v7 }
 0xc95   : > { %v11593_v54 = vpop.f32.mrf.mxu1  ;;  %v5795_v24 = vpop.f32.mrf.mxu0  ;;  %6518 = vmatpush2.msra.mxu1 %v11543_v51 }
 0xc96   : > { %6519 = vmatprep.subr.mxu1 %v11540_v56 }
 0xc97   : > { %v5684_v12 = vpop.f32.mrf.mxu1  ;;  %v5797_v9 = vpop.f32.mrf.mxu0  ;;  %6520 = vmatpush2.msra.mxu1 %v11538_v48 }
 0xc98   : > { %6521 = vmatprep.subr.mxu1 %v11535_v15 }
 0xc99   : > { %v5688_v17 = vpop.f32.mrf.mxu1  ;;  %v5801_v39 = vpop.f32.mrf.mxu0  ;;  %6522 = vmatpush2.msra.mxu1 %v11531_v38 }
 0xc9a   : > { %6523 = vmatprep.subr.mxu1 %v11527_v32 }
 0xc9b   : > { %v5690_v42 = vpop.f32.mrf.mxu1  ;;  %v5803_v43 = vpop.f32.mrf.mxu0  ;;  %6524 = vmatpush2.msra.mxu1 %v11522_v28 }
 0xc9c   : > { %6525 = vmatprep.subr.mxu1 %v11518_v22 }
 0xc9d   : > { %v5694_v0 = vpop.f32.mrf.mxu1  ;;  %v5807_v57 = vpop.f32.mrf.mxu0  ;;  %6526 = vmatpush2.msra.mxu1 %v11514_v3 }
 0xc9e   : > { %6527 = vmatprep.subr.mxu1 %v11509_v33 }
 0xc9f   : > { %v5696_v49 = vpop.f32.mrf.mxu1  ;;  %v5809_v14 = vpop.f32.mrf.mxu0  ;;  %6528 = vmatpush2.msra.mxu1 %v11504_v30 }
 0xca0   : > { %6530 = vmatmul.mubr.f32.vlgmr.msra.gmra.mxu1 %v6297_v40  ;;  %6536 = vmatprep.subr.mxu0 %v5809_v14 }
 0xca1   : > { %v11608_v32 = vpop.f32.mrf.mxu1  ;;  %v11610_v38 = vpop.f32.mrf.mxu0  ;;  %6537 = vmatpush1.msra.mxu0 %v5807_v57  ;;  %6671 = vmatprep.mubr.f32.mxu1 %v11841_v60 }
 0xca2   : > { %6538 = vmatprep.subr.mxu0 %v5803_v43 }
 0xca3   : > { %v11613_v22 = vpop.f32.mrf.mxu1  ;;  %v11615_v28 = vpop.f32.mrf.mxu0  ;;  %6539 = vmatpush1.msra.mxu0 %v5801_v39 }
 0xca4   : > { %6540 = vmatprep.subr.mxu0 %v5797_v9 }
 0xca5   : > { %v11617_v33 = vpop.f32.mrf.mxu1  ;;  %6541 = vmatpush1.msra.mxu0 %v5795_v24 }
 0xca6   : > { %v11619_v30 = vpop.f32.mrf.mxu0  ;;  %6542 = vmatprep.subr.mxu0 %v5791_v44 }
 0xca7   : > { %v11621_v3 = vpop.f32.mrf.mxu1  ;;  %6543 = vmatpush1.msra.mxu0 %v5789_v59 }
 0xca8   : > { %v11623_v53 = vpop.f32.mrf.mxu0  ;;  %6544 = vmatprep.subr.mxu0 %v5785_v10 }
 0xca9   : > { %v11625_v60 = vpop.f32.mrf.mxu1  ;;  %6545 = vmatpush1.msra.mxu0 %v5783_v27 }
 0xcaa   : > { %v11627_v15 = vpop.f32.mrf.mxu0  ;;  %6546 = vmatprep.subr.mxu0 %v11578_v11 }
 0xcab   : > { %v11630_v19 = vpop.f32.mrf.mxu1  ;;  %6547 = vmatpush1.msra.mxu0 %v11574_v25 }
 0xcac   : > { %v6005_v48 = vpop.f32.mrf.mxu0  ;;  %6548 = vmatprep.subr.mxu0 %v11570_v46 }
 0xcad   : > { %v11634_v61 = vpop.f32.mrf.mxu1  ;;  %6549 = vmatpush1.msra.mxu0 %v11566_v2 }
 0xcae   : > { %v6009_v56 = vpop.f32.mrf.mxu0  ;;  %6550 = vmatprep.subr.mxu0 %v11562_v23 }
 0xcaf   : > { %v11638_v34 = vpop.f32.mrf.mxu1  ;;  %6551 = vmatpush1.msra.mxu0 %v11558_v58 }
 0xcb0   : > { %v6011_v51 = vpop.f32.mrf.mxu0  ;;  %6552 = vmatprep.subr.mxu0 %v5696_v49 }
 0xcb1   : > { %6553 = vmatpush1.msra.mxu0 %v5694_v0 }
 0xcb2   : > { %v11641_v4 = vpop.f32.mrf.mxu1  ;;  %6554 = vmatprep.subr.mxu0 %v5690_v42  ;;  %v6304_v42 = vsub.s32 6, %v12001_v20 }
 0xcb3   : > { %v6015_v7 = vpop.f32.mrf.mxu0  ;;  %6555 = vmatpush1.msra.mxu0 %v5688_v17 }
 0xcb4   : > { %v11643_v21 = vpop.f32.mrf.mxu1  ;;  %6556 = vmatprep.subr.mxu0 %v5684_v12  ;;  %v6305_v57 = vrot.slane %v11415_v31, %v6304_v42 }
 0xcb5   : > { %v6017_v16 = vpop.f32.mrf.mxu0  ;;  %6557 = vmatpush1.msra.mxu0 %v11593_v54 }
 0xcb6   : > { %v5908_v35 = vpop.f32.mrf.mxu1  ;;  %6558 = vmatprep.subr.mxu0 %v11591_v13 }
 0xcb7   : > { %v6021_v8 = vpop.f32.mrf.mxu0  ;;  %6559 = vmatpush1.msra.mxu0 %v11589_v29 }
 0xcb8   : > { %v5910_v62 = vpop.f32.mrf.mxu1  ;;  %6560 = vmatprep.subr.mxu0 %v11586_v18 }
 0xcb9   : > { %v6023_v50 = vpop.f32.mrf.mxu0  ;;  %6561 = vmatpush1.msra.mxu0 %v11582_v52 }
 0xcba   : > { %v5914_v36 = vpop.f32.mrf.mxu1  ;;  %6562 = vmatprep.subr.mxu0 %v11576_v45 }
 0xcbb   : > { %v6027_v1 = vpop.f32.mrf.mxu0  ;;  %6563 = vmatpush1.msra.mxu0 %v11572_v26 }
 0xcbc   : > { %v5916_v6 = vpop.f32.mrf.mxu1  ;;  %6564 = vmatprep.subr.mxu0 %v11568_v55 }
 0xcbd   : > { %v6029_v58 = vpop.f32.mrf.mxu0  ;;  %6565 = vmatpush1.msra.mxu0 %v11564_v63 }
 0xcbe   : > { %v5920_v23 = vpop.f32.mrf.mxu1  ;;  %6566 = vmatprep.subr.mxu0 %v11560_v37 }
 0xcbf   : > { %v6033_v2 = vpop.f32.mrf.mxu0  ;;  %6567 = vmatpush1.msra.mxu0 %v11556_v47 }
 0xcc0   : > { %v5922_v46 = vpop.f32.mrf.mxu1 }
 0xcc1   : > { %v6035_v25 = vpop.f32.mrf.mxu0 }
 0xcc2   : > { %6568 = vmatprep.subr.mxu0 %v6035_v25  ;;  %v11656_v11 = vpop.f32.mrf.mxu1 }
 0xcc3   : > { %v11658_v45 = vpop.f32.mrf.mxu0  ;;  %6569 = vmatpush2.msra.mxu0 %v6033_v2 }
 0xcc4   : > { %6570 = vmatprep.subr.mxu0 %v6029_v58  ;;  %v11660_v26 = vpop.f32.mrf.mxu1 }
 0xcc5   : > { %v11662_v55 = vpop.f32.mrf.mxu0  ;;  %6571 = vmatpush2.msra.mxu0 %v6027_v1 }
 0xcc6   : > { %6572 = vmatprep.subr.mxu0 %v6023_v50  ;;  %v11664_v63 = vpop.f32.mrf.mxu1 }
 0xcc7   : > { %v11666_v37 = vpop.f32.mrf.mxu0  ;;  %6573 = vmatpush2.msra.mxu0 %v6021_v8 }
 0xcc8   : > { %6574 = vmatprep.subr.mxu0 %v6017_v16  ;;  %v11668_v47 = vpop.f32.mrf.mxu1  ;;  %v7526_v16 = vmov 1966171168  }
 0xcc9   : > { %v11670_v52 = vpop.f32.mrf.mxu0  ;;  %6575 = vmatpush2.msra.mxu0 %v6015_v7 }
 0xcca   : > { %6576 = vmatprep.subr.mxu0 %v6011_v51  ;;  %v11672_v27 = vpop.f32.mrf.mxu1 }
 0xccb   : > { %v6229_v18 = vpop.f32.mrf.mxu0  ;;  %6577 = vmatpush2.msra.mxu0 %v6009_v56 }
 0xccc   : > { %6578 = vmatprep.subr.mxu0 %v6005_v48  ;;  %v11674_v10 = vpop.f32.mrf.mxu1 }
 0xccd   : > { %v6231_v29 = vpop.f32.mrf.mxu0  ;;  %6579 = vmatpush2.msra.mxu0 %v11627_v15 }
 0xcce   : > { %6580 = vmatprep.subr.mxu0 %v11623_v53  ;;  %v11678_v59 = vpop.f32.mrf.mxu1 }
 0xccf   : > { %v6235_v13 = vpop.f32.mrf.mxu0  ;;  %6581 = vmatpush2.msra.mxu0 %v11619_v30 }
 0xcd0   : > { %6582 = vmatprep.subr.mxu0 %v11615_v28  ;;  %v6124_v44 = vpop.f32.mrf.mxu1 }
 0xcd1   : > { %v6237_v54 = vpop.f32.mrf.mxu0  ;;  %6583 = vmatpush2.msra.mxu0 %v11610_v38 }
 0xcd2   : > { %6584 = vmatprep.subr.mxu0 %v5922_v46  ;;  %v6128_v12 = vpop.f32.mrf.mxu1 }
 0xcd3   : > { %v6241_v24 = vpop.f32.mrf.mxu0  ;;  %6585 = vmatpush2.msra.mxu0 %v5920_v23 }
 0xcd4   : > { %6586 = vmatprep.subr.mxu0 %v5916_v6  ;;  %v6130_v17 = vpop.f32.mrf.mxu1 }
 0xcd5   : > { %v6243_v9 = vpop.f32.mrf.mxu0  ;;  %6587 = vmatpush2.msra.mxu0 %v5914_v36 }
 0xcd6   : > { %6588 = vmatprep.subr.mxu0 %v5910_v62  ;;  %v6134_v40 = vpop.f32.mrf.mxu1 }
 0xcd7   : > { %v6247_v5 = vpop.f32.mrf.mxu0  ;;  %6589 = vmatpush2.msra.mxu0 %v5908_v35  ;;  %v6684_v35 = vunpack.c.l.s4 %v7526_v16 }
 0xcd8   : > { %6590 = vmatprep.subr.mxu0 %v11643_v21  ;;  %v6136_v14 = vpop.f32.mrf.mxu1 }
 0xcd9   : > { %v6249_v39 = vpop.f32.mrf.mxu0  ;;  %6591 = vmatpush2.msra.mxu0 %v11641_v4  ;;  %v6685_v58 = vunpack.c.0.s8 %v6684_v35 }
 0xcda   : > { %6592 = vmatprep.subr.mxu0 %v11638_v34  ;;  %v6140_v28 = vpop.f32.mrf.mxu1 }
 0xcdb   : > { %v6253_v43 = vpop.f32.mrf.mxu0  ;;  %6593 = vmatpush2.msra.mxu0 %v11634_v61  ;;  %v6688_v25 = vsub.s32 %v6685_v58, %v12001_v20 }
 0xcdc   : > { %6594 = vmatprep.subr.mxu0 %v11630_v19  ;;  %v6142_v30 = vpop.f32.mrf.mxu1 }
 0xcdd   : > { %v6255_v0 = vpop.f32.mrf.mxu0  ;;  %6595 = vmatpush2.msra.mxu0 %v11625_v60 }
 0xcde   : > { %6596 = vmatprep.subr.mxu0 %v11621_v3  ;;  %v6146_v31 = vpop.f32.mrf.mxu1  ;;  %v6270_v3 = vpop.permute.xlu0 %6269 }
 0xcdf   : > { %v6259_v49 = vpop.f32.mrf.mxu0  ;;  %6597 = vmatpush2.msra.mxu0 %v11617_v33  ;;  %v6275_v15 = vrot.slane %v6270_v3, %v12006_v41 }
 0xce0   : > { %6598 = vmatprep.subr.mxu0 %v11613_v22  ;;  %v6965_v22 = vld [vmem:[%s11737_s17 + $0x8] ss:$0 sm:$0xff] }
 0xce1   : > { %v6261_v38 = vpop.f32.mrf.mxu0  ;;  %6599 = vmatpush2.msra.mxu0 %v11608_v32  ;;  %v6148_v32 = vpop.f32.mrf.mxu1 }
 0xce2   : > { %6601 = vmatmul.mubr.f32.vlgmr.msra.gmra.mxu0 %v6305_v57  ;;  %6607 = vmatprep.subr.mxu1 %v6261_v38 }
 0xce3   : > { %6608 = vmatpush1.msra.mxu1 %v6259_v49 }
 0xce4   : > { %6609 = vmatprep.subr.mxu1 %v6255_v0 }
 0xce5   : > { %6610 = vmatpush1.msra.mxu1 %v6253_v43 }
 0xce6   : > { %6611 = vmatprep.subr.mxu1 %v6249_v39 }
 0xce7   : > { %6612 = vmatpush1.msra.mxu1 %v6247_v5 }
 0xce8   : > { %6613 = vmatprep.subr.mxu1 %v6243_v9 }
 0xce9   : > { %6614 = vmatpush1.msra.mxu1 %v6241_v24 }
 0xcea   : > { %6615 = vmatprep.subr.mxu1 %v6237_v54 }
 0xceb   : > { %6616 = vmatpush1.msra.mxu1 %v6235_v13 }
 0xcec   : > { %6617 = vmatprep.subr.mxu1 %v6231_v29 }
 0xced   : > { %6618 = vmatpush1.msra.mxu1 %v6229_v18 }
 0xcee   : > { %6619 = vmatprep.subr.mxu1 %v11670_v52 }
 0xcef   : > { %6620 = vmatpush1.msra.mxu1 %v11666_v37 }
 0xcf0   : > { %6621 = vmatprep.subr.mxu1 %v11662_v55 }
 0xcf1   : > { %6622 = vmatpush1.msra.mxu1 %v11658_v45 }
 0xcf2   : > { %6623 = vmatprep.subr.mxu1 %v6148_v32 }
 0xcf3   : > { %6624 = vmatpush1.msra.mxu1 %v6146_v31 }
 0xcf4   : > { %6625 = vmatprep.subr.mxu1 %v6142_v30 }
 0xcf5   : > { %6626 = vmatpush1.msra.mxu1 %v6140_v28 }
 0xcf6   : > { %6627 = vmatprep.subr.mxu1 %v6136_v14 }
 0xcf7   : > { %6628 = vmatpush1.msra.mxu1 %v6134_v40 }
 0xcf8   : > { %6629 = vmatprep.subr.mxu1 %v6130_v17 }
 0xcf9   : > { %6630 = vmatpush1.msra.mxu1 %v6128_v12 }
 0xcfa   : > { %6631 = vmatprep.subr.mxu1 %v6124_v44 }
 0xcfb   : > { %6632 = vmatpush1.msra.mxu1 %v11678_v59 }
 0xcfc   : > { %6633 = vmatprep.subr.mxu1 %v11674_v10 }
 0xcfd   : > { %6634 = vmatpush1.msra.mxu1 %v11672_v27 }
 0xcfe   : > { %6635 = vmatprep.subr.mxu1 %v11668_v47 }
 0xcff   : > { %6636 = vmatpush1.msra.mxu1 %v11664_v63 }
 0xd00   : > { %6637 = vmatprep.subr.mxu1 %v11660_v26  ;;  %v12012_v26 = vlaneseq }
 0xd01   : > { %6638 = vmatpush1.msra.mxu1 %v11656_v11 }
 0xd02   : > { %6672 = vmatmul.mubr.f32.vlgmr.msra.gmra.mxu1 %v6965_v22  ;;  %v6389_v33 = vpop.f32.mrf.mxu1  ;;  %vm6700_vm5 = vcmp.lt.s32.totalorder %v12012_v26, 256 }
 0xd03   : > { %v6390_v61 = vadd.f32 %v6389_v33, %v6275_v15 }
 0xd04   : > { %v6391_v60 = vpop.f32.mrf.mxu1 }
 0xd05   : > { %v6392_v34 = vadd.f32 %v6391_v60, %v6275_v15 }
 0xd21   : > { %v6460_v53 = vpop.f32.mrf.mxu0 }
 0xd22   : > { %v6461_v51 = vadd.f32 %v6460_v53, %v6390_v61 }
 0xd23   : > { %v6462_v19 = vpop.f32.mrf.mxu0 }
 0xd24   : > { %v6463_v7 = vadd.f32 %v6462_v19, %v6392_v34 }
 0xd60   : > { %v6531_v48 = vpop.f32.mrf.mxu1 }
 0xd61   : > { %v6532_v21 = vadd.f32 %v6531_v48, %v6461_v51 }
 0xd62   : > { %v6533_v4 = vpop.f32.mrf.mxu1 }
 0xd63   : > { %v6534_v62 = vadd.f32 %v6533_v4, %v6463_v7 }
 0xda2   : > { %v6602_v56 = vpop.f32.mrf.mxu0 }
 0xda3   : > { %v6603_v50 = vadd.f32 %v6602_v56, %v6532_v21 }
 0xda4   : > { %v6604_v8 = vpop.f32.mrf.mxu0 }
 0xda5   : > { %v6605_v1 = vadd.f32 %v6604_v8, %v6534_v62 }
 0xdc2   : > { %v6673_v36 = vpop.f32.mrf.mxu1 }
 0xdc3   : > { %v6674_v6 = vadd.f32 %v6673_v36, %v6603_v50 }
 0xdc4   : > { %v6675_v41 = vpop.f32.mrf.mxu1 }
 0xdc5   : > { %v6676_v23 = vadd.f32 %v6675_v41, %v6605_v1  ;;  %v6678_v2 = vmax.f32 %v6674_v6, 0.0 }
 0xdc7   : > { %v6679_v46 = vmax.f32 %v6676_v23, 0.0 }
 0xdc9   : > { %v6682_v11 = vcombine.low %v6678_v2, %v6679_v46 }
 0xdcb   : > { %v6689_v45 = vrot.slane %v6682_v11, %v6688_v25 }
 0xdcd   : > { %v6696_v55 = vrot.slane %v6689_v45, %v6688_v25 }
 0xdcf   : > { %6702 = vst.msk [vmem:[%s599_s24] sm:$0x3] %vm6700_vm5, %v6696_v55 }
 0xdd0 PF: > { %s12013_s20 = sld [smem:[#allocation3_spill]] }
 0xdd6   : > { %s31_s20 = sadd.s32 1, %s12013_s20  }
 0xdd7   : > { %p28_p4 = scmp.ge.s32.totalorder %s31_s20, 4  }
 0xdd9   :  { %30 = sbr.rel (!%p28_p4) target bundleno = 5 (0x5), region = 126 }

</bundles_post_ra>
